<compile_context>
chip_gen: v5e
topology: v5e:2x2
jax: 0.10.0
libtpu: 0.0.40
codegen_flags: <defaults>
</compile_context>

<pallas_src>
import functools

import jax
import jax.numpy as jnp
from jax import lax
from jax.experimental import pallas as pl
from jax.experimental.pallas import tpu as pltpu

EXPANSION = 4
LANE = 128                      # lane-dense channel padding target
COMPUTE_DTYPE = jnp.bfloat16    # MXU input dtype; accumulation stays f32
_M_GRAN = 256                   # M-tile granularity for the 1x1 matmul kernels
_HALO_LEFT = 8                  # sublane-aligned column offset of halo interior


def _round_up(x, m):
    return ((x + m - 1) // m) * m


def _tpu_defaults():
    """Generation-aware VMEM limit / M tile (v7x: 64 MiB VMEM, v5e/v6e: 128)."""
    vmem_limit, tile_m = 48 * 1024 * 1024, 512          # safe everywhere (v7x)
    try:
        info = pltpu.get_tpu_info()
        cap = getattr(info, "vmem_capacity_bytes", None)
        if cap is not None and cap >= 100 * 1024 * 1024:   # v5e / v6e
            vmem_limit, tile_m = 96 * 1024 * 1024, 1024
    except Exception:
        pass
    return vmem_limit, tile_m


_VMEM_LIMIT, TILE_M = _tpu_defaults()
_COMPILER_PARAMS = pltpu.CompilerParams(
    dimension_semantics=("parallel",),       # shard grid across TCs (v7x)
    vmem_limit_bytes=_VMEM_LIMIT,
)


def _choose_tm(m):
    """MXU-granular M tile; avoid over-padding; >=2 grid steps when possible."""
    if m <= _M_GRAN:
        return _round_up(m, 8)
    tm = min(TILE_M, _round_up(m, _M_GRAN))
    if pl.cdiv(m, tm) < 2:                   # keep both v7x TCs busy
        tm = _round_up(pl.cdiv(m, 2), _M_GRAN)
    return tm


def _pad_rows(a, mult):
    m = a.shape[0]
    mp = _round_up(m, mult)
    if mp == m:
        return a
    return jnp.pad(a, ((0, mp - m), (0, 0)))


# ---------------------------------------------------------------------------
# Pallas kernels
# ---------------------------------------------------------------------------
def _fused_c1_c2_kernel(x_ref, w1_ref, b1_ref, w2_ref, b2_ref, o_ref, h1p_ref,
                        *, H, W):
    """Per image: conv1(1x1)+bn1+relu -> conv2(3x3, stride1, pad1)+bn2+relu.

    h1 lives only in the bf16 VMEM halo scratch; conv2 is 9 accumulating MXU
    matmuls over shifted windows of the scratch (no materialized im2col).
    """
    cin = x_ref.shape[-1]
    c1 = w1_ref.shape[1]
    c2 = w2_ref.shape[-1]
    wp = h1p_ref.shape[1]

    # conv1 as a channel matmul on the flattened image.
    x2d = x_ref[0].reshape(H * W, cin)                          # bf16
    h1 = jnp.dot(x2d, w1_ref[...], preferred_element_type=jnp.float32)
    h1 = jnp.maximum(h1 + b1_ref[...], 0.0)                     # f32

    # Zero only the halo border (cheap; correct even when the grid axis is
    # sharded across TensorCores, unlike a program_id==0 one-time init).
    border_row = jnp.zeros((wp, c1), h1p_ref.dtype)
    h1p_ref[0] = border_row
    h1p_ref[H + 1] = border_row
    h1p_ref[1:H + 1, 0:_HALO_LEFT, :] = jnp.zeros((H, _HALO_LEFT, c1),
                                                  h1p_ref.dtype)
    h1p_ref[1:H + 1, _HALO_LEFT + W:, :] = jnp.zeros(
        (H, wp - (_HALO_LEFT + W), c1), h1p_ref.dtype)

    # Interior starts at a sublane-aligned column -> the big store is unmasked.
    h1p_ref[1:H + 1, _HALO_LEFT:_HALO_LEFT + W, :] = (
        h1.reshape(H, W, c1).astype(h1p_ref.dtype))

    # conv2 (3x3, pad 1) + bn2 + relu as 9 accumulating MXU matmuls.
    # TODO(synk): group taps per kh (K = 3*c1) for better MXU K-utilisation on
    #             v6e/v7x once that can be done without a VMEM concat copy.
    acc = jnp.zeros((H * W, c2), jnp.float32)
    for kh in range(3):
        for kw in range(3):
            col = _HALO_LEFT - 1 + kw
            tap = h1p_ref[kh:kh + H, col:col + W, :]
            acc += jnp.dot(tap.reshape(H * W, c1), w2_ref[3 * kh + kw],
                           preferred_element_type=jnp.float32)
    o_ref[0] = jnp.maximum(acc + b2_ref[...], 0.0).astype(o_ref.dtype)


def _conv3_proj_kernel(h2_ref, xs_ref, w3_ref, b3_ref, ws_ref, bs_ref, o_ref):
    """out = relu(h2@w3 + b3 + xs@ws + bs) -- conv3 + projection shortcut."""
    acc = jnp.dot(h2_ref[...], w3_ref[...], preferred_element_type=jnp.float32)
    acc += jnp.dot(xs_ref[...], ws_ref[...], preferred_element_type=jnp.float32)
    acc += b3_ref[...] + bs_ref[...]
    o_ref[...] = jnp.maximum(acc, 0.0).astype(o_ref.dtype)


def _conv3_identity_kernel(h2_ref, r_ref, w3_ref, b3_ref, o_ref):
    """out = relu(h2@w3 + b3 + residual) -- conv3 + identity shortcut."""
    acc = jnp.dot(h2_ref[...], w3_ref[...], preferred_element_type=jnp.float32)
    acc += b3_ref[...] + r_ref[...].astype(jnp.float32)
    o_ref[...] = jnp.maximum(acc, 0.0).astype(o_ref.dtype)


# ---------------------------------------------------------------------------
# Pallas wrappers (grid / BlockSpec plumbing)
# ---------------------------------------------------------------------------
def _fused_conv1_conv2(x_nhwc, w1, b1, w2, b2):
    n, h, w, cin = x_nhwc.shape
    c1 = w1.shape[1]
    c2 = w2.shape[-1]
    wp_scr = _round_up(_HALO_LEFT + w + 1, 8)
    out = pl.pallas_call(
        functools.partial(_fused_c1_c2_kernel, H=h, W=w),
        out_shape=jax.ShapeDtypeStruct((n, h * w, c2), COMPUTE_DTYPE),
        grid=(n,),
        in_specs=[pl.BlockSpec((1, h, w, cin), lambda i: (i, 0, 0, 0)),
                  pl.BlockSpec((cin, c1), lambda i: (0, 0)),
                  pl.BlockSpec((1, c1), lambda i: (0, 0)),
                  pl.BlockSpec((9, c1, c2), lambda i: (0, 0, 0)),
                  pl.BlockSpec((1, c2), lambda i: (0, 0))],
        out_specs=pl.BlockSpec((1, h * w, c2), lambda i: (i, 0, 0)),
        scratch_shapes=[pltpu.VMEM((h + 2, wp_scr, c1), COMPUTE_DTYPE)],
        compiler_params=_COMPILER_PARAMS,
    )(x_nhwc, w1, b1, w2, b2)
    return out                              # (N, H*W, C2), bf16


def _conv3_add_relu(h2, w3, b3, resid, ws=None, bs=None,
                    out_dtype=COMPUTE_DTYPE):
    """conv3(1x1)+bn3 + [projection shortcut] + residual add + ReLU, M-tiled."""
    m, k = h2.shape
    co = w3.shape[1]
    kr = resid.shape[1]
    tm = _choose_tm(m)
    h2p = _pad_rows(h2, tm)
    rp = _pad_rows(resid, tm)
    mp = h2p.shape[0]
    grid = (mp // tm,)
    if ws is not None:
        out = pl.pallas_call(
            _conv3_proj_kernel,
            out_shape=jax.ShapeDtypeStruct((mp, co), out_dtype),
            grid=grid,
            in_specs=[pl.BlockSpec((tm, k), lambda i: (i, 0)),
                      pl.BlockSpec((tm, kr), lambda i: (i, 0)),
                      pl.BlockSpec((k, co), lambda i: (0, 0)),
                      pl.BlockSpec((1, co), lambda i: (0, 0)),
                      pl.BlockSpec((kr, co), lambda i: (0, 0)),
                      pl.BlockSpec((1, co), lambda i: (0, 0))],
            out_specs=pl.BlockSpec((tm, co), lambda i: (i, 0)),
            compiler_params=_COMPILER_PARAMS,
        )(h2p, rp, w3, b3, ws, bs)
    else:
        out = pl.pallas_call(
            _conv3_identity_kernel,
            out_shape=jax.ShapeDtypeStruct((mp, co), out_dtype),
            grid=grid,
            in_specs=[pl.BlockSpec((tm, k), lambda i: (i, 0)),
                      pl.BlockSpec((tm, kr), lambda i: (i, 0)),
                      pl.BlockSpec((k, co), lambda i: (0, 0)),
                      pl.BlockSpec((1, co), lambda i: (0, 0))],
            out_specs=pl.BlockSpec((tm, co), lambda i: (i, 0)),
            compiler_params=_COMPILER_PARAMS,
        )(h2p, rp, w3, b3)
    return out[:m] if mp != m else out


# ---------------------------------------------------------------------------
# Parameters (deterministic; shapes follow the PyTorch module)
# ---------------------------------------------------------------------------
def init_bottleneck_params(key, in_planes, planes, stride=1):
    """Raw params (conv weights + folded inference-mode BN scale/bias)."""
    eps = 1e-5
    out_planes = EXPANSION * planes

    def bn_fold(k, c):
        k1, k2, k3, k4 = jax.random.split(k, 4)
        gamma = 1.0 + 0.1 * jax.random.normal(k1, (c,), jnp.float32)
        beta = 0.1 * jax.random.normal(k2, (c,), jnp.float32)
        mean = 0.1 * jax.random.normal(k3, (c,), jnp.float32)
        var = jax.random.uniform(k4, (c,), jnp.float32, 0.5, 1.5)
        scale = gamma / jnp.sqrt(var + eps)
        bias = beta - mean * scale
        return scale.reshape(1, c), bias.reshape(1, c)

    keys = jax.random.split(key, 8)
    p = {}
    p['w1'] = 0.2 * jax.random.normal(keys[0], (in_planes, planes), jnp.float32)
    p['s1'], p['b1'] = bn_fold(keys[1], planes)
    # conv2 taps: (9, Cin, Cout), tap index = 3*kh + kw.
    p['w2'] = 0.2 * jax.random.normal(keys[2], (9, planes, planes), jnp.float32)
    p['s2'], p['b2'] = bn_fold(keys[3], planes)
    p['w3'] = 0.2 * jax.random.normal(keys[4], (planes, out_planes), jnp.float32)
    p['s3'], p['b3'] = bn_fold(keys[5], out_planes)
    if stride != 1 or in_planes != out_planes:
        p['ws'] = 0.2 * jax.random.normal(keys[6], (in_planes, out_planes),
                                          jnp.float32)
        p['ss'], p['bs'] = bn_fold(keys[7], out_planes)
    return p


def prepare_params(raw, in_planes, planes, dtype=COMPUTE_DTYPE):
    """Fold BN scale into the weights, zero-pad channels to multiples of 128
    (lane-dense), cast matmul weights to bf16 (biases stay f32)."""
    out_planes = EXPANSION * planes
    cin_p = _round_up(in_planes, LANE)
    c1_p = _round_up(planes, LANE)
    out_p = _round_up(out_planes, LANE)

    def fold_pad(w, s, b, ci, co, ci_p, co_p):
        wf = w * s                                           # fold BN scale
        wp = jnp.zeros((ci_p, co_p), jnp.float32).at[:ci, :co].set(wf)
        bp = jnp.zeros((1, co_p), jnp.float32).at[:, :co].set(b)
        return wp.astype(dtype), bp

    p = {}
    p['w1'], p['b1'] = fold_pad(raw['w1'], raw['s1'], raw['b1'],
                                in_planes, planes, cin_p, c1_p)
    w2f = raw['w2'] * raw['s2'].reshape(1, 1, planes)
    w2p = jnp.zeros((9, c1_p, c1_p), jnp.float32).at[:, :planes, :planes].set(w2f)
    p['w2'] = w2p.astype(dtype)                               # (9, c1_p, c1_p)
    p['b2'] = jnp.zeros((1, c1_p), jnp.float32).at[:, :planes].set(raw['b2'])
    p['w3'], p['b3'] = fold_pad(raw['w3'], raw['s3'], raw['b3'],
                                planes, out_planes, c1_p, out_p)
    if 'ws' in raw:
        p['ws'], p['bs'] = fold_pad(raw['ws'], raw['ss'], raw['bs'],
                                    in_planes, out_planes, cin_p, out_p)
    return p


# ---------------------------------------------------------------------------
# Bottleneck forward (NCHW in / NCHW out, like the PyTorch module)
# ---------------------------------------------------------------------------
def bottleneck_forward(x_nchw, params, planes, stride=1):
    n, cin, h, w = x_nchw.shape
    out_planes = EXPANSION * planes
    cin_p, c1_p = params['w1'].shape
    out_p = params['w3'].shape[1]

    # NCHW -> NHWC, lane-dense channel pad, bf16 for the MXU.
    x = jnp.transpose(x_nchw, (0, 2, 3, 1))
    x = jnp.pad(x, ((0, 0), (0, 0), (0, 0), (0, cin_p - cin)))
    x = x.astype(COMPUTE_DTYPE)

    # conv1+bn1+relu fused with conv2(3x3)+bn2+relu; h1 never leaves VMEM.
    h2 = _fused_conv1_conv2(x, params['w1'], params['b1'],
                            params['w2'], params['b2'])       # (N, H*W, c1_p)
    if stride == 1:
        ho, wo = h, w
        h2_2d = h2.reshape(n * h * w, c1_p)
        xs = x
    else:
        # Stride applied by subsampling the in-VMEM stride-1 conv2 result.
        ho = (h - 1) // stride + 1
        wo = (w - 1) // stride + 1
        h2_2d = h2.reshape(n, h, w, c1_p)[:, ::stride, ::stride, :]
        h2_2d = h2_2d.reshape(n * ho * wo, c1_p)
        xs = x[:, ::stride, ::stride, :]

    mo = n * ho * wo
    xs2d = xs.reshape(mo, cin_p)

    # conv3 + bn3 + (projection shortcut) + residual add + relu in ONE kernel.
    if 'ws' in params:
        out = _conv3_add_relu(h2_2d, params['w3'], params['b3'], xs2d,
                              ws=params['ws'], bs=params['bs'])
    else:
        assert stride == 1 and cin == out_planes, "identity shortcut shape"
        out = _conv3_add_relu(h2_2d, params['w3'], params['b3'], xs2d)

    out = out.reshape(n, ho, wo, out_p)[:, :, :, :out_planes]
    # Module-boundary conversion (the f32 cast fuses with the transpose copy).
    return jnp.transpose(out, (0, 3, 1, 2)).astype(jnp.float32)


# ---------------------------------------------------------------------------
# Pure-JAX reference (independent math, same bf16 rounding points)
# ---------------------------------------------------------------------------
def _reference_forward(x_nchw, raw, planes, stride, dtype=COMPUTE_DTYPE):
    x = jnp.transpose(x_nchw, (0, 2, 3, 1)).astype(dtype)
    h1 = jnp.einsum('nhwc,cd->nhwd', x, raw['w1'].astype(dtype),
                    preferred_element_type=jnp.float32)
    h1 = jax.nn.relu(h1 * raw['s1'] + raw['b1']).astype(dtype)
    w2 = raw['w2'].reshape(3, 3, planes, planes).astype(dtype)   # HWIO
    h2 = lax.conv_general_dilated(h1, w2, (stride, stride), ((1, 1), (1, 1)),
                                  dimension_numbers=('NHWC', 'HWIO', 'NHWC'),
                                  preferred_element_type=jnp.float32)
    h2 = jax.nn.relu(h2 * raw['s2'] + raw['b2']).astype(dtype)
    h3 = jnp.einsum('nhwc,cd->nhwd', h2, raw['w3'].astype(dtype),
                    preferred_element_type=jnp.float32) * raw['s3'] + raw['b3']
    xs = x[:, ::stride, ::stride, :]
    if 'ws' in raw:
        short = jnp.einsum('nhwc,cd->nhwd', xs, raw['ws'].astype(dtype),
                           preferred_element_type=jnp.float32)
        short = short * raw['ss'] + raw['bs']
    else:
        short = xs.astype(jnp.float32)
    out = jax.nn.relu(h3 + short)
    return jnp.transpose(out, (0, 3, 1, 2))


if __name__ == "__main__":
    key = jax.random.PRNGKey(0)
    configs = [
        # (in_planes, planes, stride)
        (8, 4, 1),    # projection shortcut, fused conv1+conv2, fused conv3+proj
        (16, 4, 1),   # identity shortcut
        (8, 4, 2),    # strided downsampling block
    ]
    n, h, w = 2, 16, 16
    for cfg_idx, (in_planes, planes, stride) in enumerate(configs):
        key, kx, kp = jax.random.split(key, 3)
        x = jax.random.normal(kx, (n, in_planes, h, w), jnp.float32)
        raw = init_bottleneck_params(kp, in_planes, planes, stride)
        params = prepare_params(raw, in_planes, planes)

        out = bottleneck_forward(x, params, planes, stride)
        out = jax.block_until_ready(out)

        ref = _reference_forward(x, raw, planes, stride)
        ho = (h - 1) // stride + 1
        wo = (w - 1) // stride + 1
        assert out.shape == (n, EXPANSION * planes, ho, wo), (cfg_idx, out.shape)
        err = float(jnp.max(jnp.abs(out - ref)))
        assert jnp.allclose(out, ref, atol=3e-2, rtol=3e-2), (cfg_idx, err)
    print("KERNEL_OK")
</pallas_src>

<mosaic_0001>
module attributes {stable_mosaic.version = 11 : i64} {
  func.func @_fused_c1_c2_kernel(%arg0: i32, %arg1: memref<1x16x16x128xbf16, #tpu.memory_space<vmem>>, %arg2: memref<128x128xbf16, #tpu.memory_space<vmem>>, %arg3: memref<1x128xf32, #tpu.memory_space<vmem>>, %arg4: memref<9x128x128xbf16, #tpu.memory_space<vmem>>, %arg5: memref<1x128xf32, #tpu.memory_space<vmem>>, %arg6: memref<1x256x128xbf16, #tpu.memory_space<vmem>>, %arg7: memref<18x32x128xbf16, #tpu.memory_space<vmem>>) attributes {dimension_semantics = [#tpu.dimension_semantics<parallel>], iteration_bounds = array<i64: 2>, scalar_prefetch = 0 : i64, scratch_operands = 1 : i64, tpu.core_type = #tpu.core_type<tc>, window_params = [{transform_indices = @transform_0, window_bounds = array<i64: 1, 16, 16, 128>}, {pipeline_mode = #tpu.pipeline_mode<synchronous>, transform_indices = @transform_1, window_bounds = array<i64: 128, 128>}, {pipeline_mode = #tpu.pipeline_mode<synchronous>, transform_indices = @transform_2, window_bounds = array<i64: 1, 128>}, {pipeline_mode = #tpu.pipeline_mode<synchronous>, transform_indices = @transform_3, window_bounds = array<i64: 9, 128, 128>}, {pipeline_mode = #tpu.pipeline_mode<synchronous>, transform_indices = @transform_4, window_bounds = array<i64: 1, 128>}, {transform_indices = @transform_5, window_bounds = array<i64: 1, 256, 128>}]} {
    %c0 = arith.constant 0 : index
    %c0_0 = arith.constant 0 : index
    %c0_1 = arith.constant 0 : index
    %c0_2 = arith.constant 0 : index
    %0 = vector.load %arg1[%c0, %c0_0, %c0_1, %c0_2] : memref<1x16x16x128xbf16, #tpu.memory_space<vmem>>, vector<1x16x16x128xbf16>
    %1 = vector.shape_cast %0 : vector<1x16x16x128xbf16> to vector<16x16x128xbf16>
    %2 = vector.shape_cast %1 : vector<16x16x128xbf16> to vector<256x128xbf16>
    %c0_3 = arith.constant 0 : index
    %c0_4 = arith.constant 0 : index
    %3 = vector.load %arg2[%c0_3, %c0_4] : memref<128x128xbf16, #tpu.memory_space<vmem>>, vector<128x128xbf16>
    %cst = arith.constant dense<0.000000e+00> : vector<256x128xf32>
    %4 = tpu.matmul %2, %3, %cst {dimension_numbers = #tpu.dot_dimension_numbers<[1], [0], [0], [1], [0, 0, 1, 1], [], []>} : vector<256x128xbf16>, vector<128x128xbf16>, vector<256x128xf32> -> vector<256x128xf32>
    %c0_5 = arith.constant 0 : index
    %c0_6 = arith.constant 0 : index
    %5 = vector.load %arg3[%c0_5, %c0_6] : memref<1x128xf32, #tpu.memory_space<vmem>>, vector<1x128xf32>
    %6 = vector.broadcast %5 : vector<1x128xf32> to vector<256x128xf32>
    %7 = arith.addf %4, %6 : vector<256x128xf32>
    %cst_7 = arith.constant 0.000000e+00 : f32
    %8 = vector.broadcast %cst_7 : f32 to vector<256x128xf32>
    %9 = arith.maximumf %7, %8 : vector<256x128xf32>
    %cst_8 = arith.constant 0.000000e+00 : bf16
    %10 = vector.broadcast %cst_8 : bf16 to vector<32x128xbf16>
    %c0_9 = arith.constant 0 : index
    %c0_10 = arith.constant 0 : index
    %c0_11 = arith.constant 0 : index
    %11 = vector.load %arg7[%c0_9, %c0_10, %c0_11] : memref<18x32x128xbf16, #tpu.memory_space<vmem>>, vector<1x32x128xbf16>
    %12 = vector.shape_cast %11 : vector<1x32x128xbf16> to vector<32x128xbf16>
    %13 = vector.shape_cast %10 : vector<32x128xbf16> to vector<1x32x128xbf16>
    tpu.vector_store %arg7[%c0_9, %c0_10, %c0_11], %13 {strides = array<i32>} : memref<18x32x128xbf16, #tpu.memory_space<vmem>>, vector<1x32x128xbf16>,
    %c17 = arith.constant 17 : index
    %c0_12 = arith.constant 0 : index
    %c0_13 = arith.constant 0 : index
    %14 = vector.load %arg7[%c17, %c0_12, %c0_13] : memref<18x32x128xbf16, #tpu.memory_space<vmem>>, vector<1x32x128xbf16>
    %15 = vector.shape_cast %14 : vector<1x32x128xbf16> to vector<32x128xbf16>
    %16 = vector.shape_cast %10 : vector<32x128xbf16> to vector<1x32x128xbf16>
    tpu.vector_store %arg7[%c17, %c0_12, %c0_13], %16 {strides = array<i32>} : memref<18x32x128xbf16, #tpu.memory_space<vmem>>, vector<1x32x128xbf16>,
    %cst_14 = arith.constant 0.000000e+00 : bf16
    %17 = vector.broadcast %cst_14 : bf16 to vector<16x8x128xbf16>
    %c1 = arith.constant 1 : index
    %c0_15 = arith.constant 0 : index
    %c0_16 = arith.constant 0 : index
    %18 = vector.load %arg7[%c1, %c0_15, %c0_16] : memref<18x32x128xbf16, #tpu.memory_space<vmem>>, vector<16x8x128xbf16>
    tpu.vector_store %arg7[%c1, %c0_15, %c0_16], %17 {strides = array<i32>} : memref<18x32x128xbf16, #tpu.memory_space<vmem>>, vector<16x8x128xbf16>,
    %cst_17 = arith.constant 0.000000e+00 : bf16
    %19 = vector.broadcast %cst_17 : bf16 to vector<16x8x128xbf16>
    %c1_18 = arith.constant 1 : index
    %c24 = arith.constant 24 : index
    %c0_19 = arith.constant 0 : index
    %20 = vector.load %arg7[%c1_18, %c24, %c0_19] : memref<18x32x128xbf16, #tpu.memory_space<vmem>>, vector<16x8x128xbf16>
    tpu.vector_store %arg7[%c1_18, %c24, %c0_19], %19 {strides = array<i32>} : memref<18x32x128xbf16, #tpu.memory_space<vmem>>, vector<16x8x128xbf16>,
    %21 = vector.shape_cast %9 : vector<256x128xf32> to vector<16x16x128xf32>
    %22 = arith.truncf %21 : vector<16x16x128xf32> to vector<16x16x128xbf16>
    %c1_20 = arith.constant 1 : index
    %c8 = arith.constant 8 : index
    %c0_21 = arith.constant 0 : index
    %23 = vector.load %arg7[%c1_20, %c8, %c0_21] : memref<18x32x128xbf16, #tpu.memory_space<vmem>>, vector<16x16x128xbf16>
    tpu.vector_store %arg7[%c1_20, %c8, %c0_21], %22 {strides = array<i32>} : memref<18x32x128xbf16, #tpu.memory_space<vmem>>, vector<16x16x128xbf16>,
    %cst_22 = arith.constant 0.000000e+00 : f32
    %24 = vector.broadcast %cst_22 : f32 to vector<256x128xf32>
    %c0_23 = arith.constant 0 : index
    %c7 = arith.constant 7 : index
    %c0_24 = arith.constant 0 : index
    %25 = vector.load %arg7[%c0_23, %c7, %c0_24] : memref<18x32x128xbf16, #tpu.memory_space<vmem>>, vector<16x16x128xbf16>
    %26 = vector.shape_cast %25 : vector<16x16x128xbf16> to vector<256x128xbf16>
    %c0_25 = arith.constant 0 : index
    %c0_26 = arith.constant 0 : index
    %c0_27 = arith.constant 0 : index
    %27 = vector.load %arg4[%c0_25, %c0_26, %c0_27] : memref<9x128x128xbf16, #tpu.memory_space<vmem>>, vector<1x128x128xbf16>
    %28 = vector.shape_cast %27 : vector<1x128x128xbf16> to vector<128x128xbf16>
    %cst_28 = arith.constant dense<0.000000e+00> : vector<256x128xf32>
    %29 = tpu.matmul %26, %28, %cst_28 {dimension_numbers = #tpu.dot_dimension_numbers<[1], [0], [0], [1], [0, 0, 1, 1], [], []>} : vector<256x128xbf16>, vector<128x128xbf16>, vector<256x128xf32> -> vector<256x128xf32>
    %30 = arith.addf %24, %29 : vector<256x128xf32>
    %c0_29 = arith.constant 0 : index
    %c8_30 = arith.constant 8 : index
    %c0_31 = arith.constant 0 : index
    %31 = vector.load %arg7[%c0_29, %c8_30, %c0_31] : memref<18x32x128xbf16, #tpu.memory_space<vmem>>, vector<16x16x128xbf16>
    %32 = vector.shape_cast %31 : vector<16x16x128xbf16> to vector<256x128xbf16>
    %c1_32 = arith.constant 1 : index
    %c0_33 = arith.constant 0 : index
    %c0_34 = arith.constant 0 : index
    %33 = vector.load %arg4[%c1_32, %c0_33, %c0_34] : memref<9x128x128xbf16, #tpu.memory_space<vmem>>, vector<1x128x128xbf16>
    %34 = vector.shape_cast %33 : vector<1x128x128xbf16> to vector<128x128xbf16>
    %cst_35 = arith.constant dense<0.000000e+00> : vector<256x128xf32>
    %35 = tpu.matmul %32, %34, %cst_35 {dimension_numbers = #tpu.dot_dimension_numbers<[1], [0], [0], [1], [0, 0, 1, 1], [], []>} : vector<256x128xbf16>, vector<128x128xbf16>, vector<256x128xf32> -> vector<256x128xf32>
    %36 = arith.addf %30, %35 : vector<256x128xf32>
    %c0_36 = arith.constant 0 : index
    %c9 = arith.constant 9 : index
    %c0_37 = arith.constant 0 : index
    %37 = vector.load %arg7[%c0_36, %c9, %c0_37] : memref<18x32x128xbf16, #tpu.memory_space<vmem>>, vector<16x16x128xbf16>
    %38 = vector.shape_cast %37 : vector<16x16x128xbf16> to vector<256x128xbf16>
    %c2 = arith.constant 2 : index
    %c0_38 = arith.constant 0 : index
    %c0_39 = arith.constant 0 : index
    %39 = vector.load %arg4[%c2, %c0_38, %c0_39] : memref<9x128x128xbf16, #tpu.memory_space<vmem>>, vector<1x128x128xbf16>
    %40 = vector.shape_cast %39 : vector<1x128x128xbf16> to vector<128x128xbf16>
    %cst_40 = arith.constant dense<0.000000e+00> : vector<256x128xf32>
    %41 = tpu.matmul %38, %40, %cst_40 {dimension_numbers = #tpu.dot_dimension_numbers<[1], [0], [0], [1], [0, 0, 1, 1], [], []>} : vector<256x128xbf16>, vector<128x128xbf16>, vector<256x128xf32> -> vector<256x128xf32>
    %42 = arith.addf %36, %41 : vector<256x128xf32>
    %c1_41 = arith.constant 1 : index
    %c7_42 = arith.constant 7 : index
    %c0_43 = arith.constant 0 : index
    %43 = vector.load %arg7[%c1_41, %c7_42, %c0_43] : memref<18x32x128xbf16, #tpu.memory_space<vmem>>, vector<16x16x128xbf16>
    %44 = vector.shape_cast %43 : vector<16x16x128xbf16> to vector<256x128xbf16>
    %c3 = arith.constant 3 : index
    %c0_44 = arith.constant 0 : index
    %c0_45 = arith.constant 0 : index
    %45 = vector.load %arg4[%c3, %c0_44, %c0_45] : memref<9x128x128xbf16, #tpu.memory_space<vmem>>, vector<1x128x128xbf16>
    %46 = vector.shape_cast %45 : vector<1x128x128xbf16> to vector<128x128xbf16>
    %cst_46 = arith.constant dense<0.000000e+00> : vector<256x128xf32>
    %47 = tpu.matmul %44, %46, %cst_46 {dimension_numbers = #tpu.dot_dimension_numbers<[1], [0], [0], [1], [0, 0, 1, 1], [], []>} : vector<256x128xbf16>, vector<128x128xbf16>, vector<256x128xf32> -> vector<256x128xf32>
    %48 = arith.addf %42, %47 : vector<256x128xf32>
    %c1_47 = arith.constant 1 : index
    %c8_48 = arith.constant 8 : index
    %c0_49 = arith.constant 0 : index
    %49 = vector.load %arg7[%c1_47, %c8_48, %c0_49] : memref<18x32x128xbf16, #tpu.memory_space<vmem>>, vector<16x16x128xbf16>
    %50 = vector.shape_cast %49 : vector<16x16x128xbf16> to vector<256x128xbf16>
    %c4 = arith.constant 4 : index
    %c0_50 = arith.constant 0 : index
    %c0_51 = arith.constant 0 : index
    %51 = vector.load %arg4[%c4, %c0_50, %c0_51] : memref<9x128x128xbf16, #tpu.memory_space<vmem>>, vector<1x128x128xbf16>
    %52 = vector.shape_cast %51 : vector<1x128x128xbf16> to vector<128x128xbf16>
    %cst_52 = arith.constant dense<0.000000e+00> : vector<256x128xf32>
    %53 = tpu.matmul %50, %52, %cst_52 {dimension_numbers = #tpu.dot_dimension_numbers<[1], [0], [0], [1], [0, 0, 1, 1], [], []>} : vector<256x128xbf16>, vector<128x128xbf16>, vector<256x128xf32> -> vector<256x128xf32>
    %54 = arith.addf %48, %53 : vector<256x128xf32>
    %c1_53 = arith.constant 1 : index
    %c9_54 = arith.constant 9 : index
    %c0_55 = arith.constant 0 : index
    %55 = vector.load %arg7[%c1_53, %c9_54, %c0_55] : memref<18x32x128xbf16, #tpu.memory_space<vmem>>, vector<16x16x128xbf16>
    %56 = vector.shape_cast %55 : vector<16x16x128xbf16> to vector<256x128xbf16>
    %c5 = arith.constant 5 : index
    %c0_56 = arith.constant 0 : index
    %c0_57 = arith.constant 0 : index
    %57 = vector.load %arg4[%c5, %c0_56, %c0_57] : memref<9x128x128xbf16, #tpu.memory_space<vmem>>, vector<1x128x128xbf16>
    %58 = vector.shape_cast %57 : vector<1x128x128xbf16> to vector<128x128xbf16>
    %cst_58 = arith.constant dense<0.000000e+00> : vector<256x128xf32>
    %59 = tpu.matmul %56, %58, %cst_58 {dimension_numbers = #tpu.dot_dimension_numbers<[1], [0], [0], [1], [0, 0, 1, 1], [], []>} : vector<256x128xbf16>, vector<128x128xbf16>, vector<256x128xf32> -> vector<256x128xf32>
    %60 = arith.addf %54, %59 : vector<256x128xf32>
    %c2_59 = arith.constant 2 : index
    %c7_60 = arith.constant 7 : index
    %c0_61 = arith.constant 0 : index
    %61 = vector.load %arg7[%c2_59, %c7_60, %c0_61] : memref<18x32x128xbf16, #tpu.memory_space<vmem>>, vector<16x16x128xbf16>
    %62 = vector.shape_cast %61 : vector<16x16x128xbf16> to vector<256x128xbf16>
    %c6 = arith.constant 6 : index
    %c0_62 = arith.constant 0 : index
    %c0_63 = arith.constant 0 : index
    %63 = vector.load %arg4[%c6, %c0_62, %c0_63] : memref<9x128x128xbf16, #tpu.memory_space<vmem>>, vector<1x128x128xbf16>
    %64 = vector.shape_cast %63 : vector<1x128x128xbf16> to vector<128x128xbf16>
    %cst_64 = arith.constant dense<0.000000e+00> : vector<256x128xf32>
    %65 = tpu.matmul %62, %64, %cst_64 {dimension_numbers = #tpu.dot_dimension_numbers<[1], [0], [0], [1], [0, 0, 1, 1], [], []>} : vector<256x128xbf16>, vector<128x128xbf16>, vector<256x128xf32> -> vector<256x128xf32>
    %66 = arith.addf %60, %65 : vector<256x128xf32>
    %c2_65 = arith.constant 2 : index
    %c8_66 = arith.constant 8 : index
    %c0_67 = arith.constant 0 : index
    %67 = vector.load %arg7[%c2_65, %c8_66, %c0_67] : memref<18x32x128xbf16, #tpu.memory_space<vmem>>, vector<16x16x128xbf16>
    %68 = vector.shape_cast %67 : vector<16x16x128xbf16> to vector<256x128xbf16>
    %c7_68 = arith.constant 7 : index
    %c0_69 = arith.constant 0 : index
    %c0_70 = arith.constant 0 : index
    %69 = vector.load %arg4[%c7_68, %c0_69, %c0_70] : memref<9x128x128xbf16, #tpu.memory_space<vmem>>, vector<1x128x128xbf16>
    %70 = vector.shape_cast %69 : vector<1x128x128xbf16> to vector<128x128xbf16>
    %cst_71 = arith.constant dense<0.000000e+00> : vector<256x128xf32>
    %71 = tpu.matmul %68, %70, %cst_71 {dimension_numbers = #tpu.dot_dimension_numbers<[1], [0], [0], [1], [0, 0, 1, 1], [], []>} : vector<256x128xbf16>, vector<128x128xbf16>, vector<256x128xf32> -> vector<256x128xf32>
    %72 = arith.addf %66, %71 : vector<256x128xf32>
    %c2_72 = arith.constant 2 : index
    %c9_73 = arith.constant 9 : index
    %c0_74 = arith.constant 0 : index
    %73 = vector.load %arg7[%c2_72, %c9_73, %c0_74] : memref<18x32x128xbf16, #tpu.memory_space<vmem>>, vector<16x16x128xbf16>
    %74 = vector.shape_cast %73 : vector<16x16x128xbf16> to vector<256x128xbf16>
    %c8_75 = arith.constant 8 : index
    %c0_76 = arith.constant 0 : index
    %c0_77 = arith.constant 0 : index
    %75 = vector.load %arg4[%c8_75, %c0_76, %c0_77] : memref<9x128x128xbf16, #tpu.memory_space<vmem>>, vector<1x128x128xbf16>
    %76 = vector.shape_cast %75 : vector<1x128x128xbf16> to vector<128x128xbf16>
    %cst_78 = arith.constant dense<0.000000e+00> : vector<256x128xf32>
    %77 = tpu.matmul %74, %76, %cst_78 {dimension_numbers = #tpu.dot_dimension_numbers<[1], [0], [0], [1], [0, 0, 1, 1], [], []>} : vector<256x128xbf16>, vector<128x128xbf16>, vector<256x128xf32> -> vector<256x128xf32>
    %78 = arith.addf %72, %77 : vector<256x128xf32>
    %c0_79 = arith.constant 0 : index
    %c0_80 = arith.constant 0 : index
    %79 = vector.load %arg5[%c0_79, %c0_80] : memref<1x128xf32, #tpu.memory_space<vmem>>, vector<1x128xf32>
    %80 = vector.broadcast %79 : vector<1x128xf32> to vector<256x128xf32>
    %81 = arith.addf %78, %80 : vector<256x128xf32>
    %cst_81 = arith.constant 0.000000e+00 : f32
    %82 = vector.broadcast %cst_81 : f32 to vector<256x128xf32>
    %83 = arith.maximumf %81, %82 : vector<256x128xf32>
    %84 = arith.truncf %83 : vector<256x128xf32> to vector<256x128xbf16>
    %c0_82 = arith.constant 0 : index
    %c0_83 = arith.constant 0 : index
    %c0_84 = arith.constant 0 : index
    %85 = vector.load %arg6[%c0_82, %c0_83, %c0_84] : memref<1x256x128xbf16, #tpu.memory_space<vmem>>, vector<1x256x128xbf16>
    %86 = vector.shape_cast %85 : vector<1x256x128xbf16> to vector<256x128xbf16>
    %87 = vector.shape_cast %84 : vector<256x128xbf16> to vector<1x256x128xbf16>
    tpu.vector_store %arg6[%c0_82, %c0_83, %c0_84], %87 {strides = array<i32>} : memref<1x256x128xbf16, #tpu.memory_space<vmem>>, vector<1x256x128xbf16>,
    return
  }
  func.func @transform_0(%arg0: i32) -> (i32, i32, i32, i32) {
    %c0_i32 = arith.constant 0 : i32
    %c0_i32_0 = arith.constant 0 : i32
    %c0_i32_1 = arith.constant 0 : i32
    %c0_i32_2 = arith.constant 0 : i32
    return %arg0, %c0_i32, %c0_i32_0, %c0_i32_1 : i32, i32, i32, i32
  }
  func.func @transform_1(%arg0: i32) -> (i32, i32) {
    %c0_i32 = arith.constant 0 : i32
    %c0_i32_0 = arith.constant 0 : i32
    %c0_i32_1 = arith.constant 0 : i32
    return %c0_i32, %c0_i32_0 : i32, i32
  }
  func.func @transform_2(%arg0: i32) -> (i32, i32) {
    %c0_i32 = arith.constant 0 : i32
    %c0_i32_0 = arith.constant 0 : i32
    %c0_i32_1 = arith.constant 0 : i32
    return %c0_i32, %c0_i32_0 : i32, i32
  }
  func.func @transform_3(%arg0: i32) -> (i32, i32, i32) {
    %c0_i32 = arith.constant 0 : i32
    %c0_i32_0 = arith.constant 0 : i32
    %c0_i32_1 = arith.constant 0 : i32
    %c0_i32_2 = arith.constant 0 : i32
    return %c0_i32, %c0_i32_0, %c0_i32_1 : i32, i32, i32
  }
  func.func @transform_4(%arg0: i32) -> (i32, i32) {
    %c0_i32 = arith.constant 0 : i32
    %c0_i32_0 = arith.constant 0 : i32
    %c0_i32_1 = arith.constant 0 : i32
    return %c0_i32, %c0_i32_0 : i32, i32
  }
  func.func @transform_5(%arg0: i32) -> (i32, i32, i32) {
    %c0_i32 = arith.constant 0 : i32
    %c0_i32_0 = arith.constant 0 : i32
    %c0_i32_1 = arith.constant 0 : i32
    return %arg0, %c0_i32, %c0_i32_0 : i32, i32, i32
  }
}

</mosaic_0001>

<bundles_post_ra>
// kernel: tpu_custom_call.1
= control target key start
LH: loop header
LB: loop body
LE: loop exit
PB: predicated region body
PF: predicated region fallthrough
CT: control target
= control target key end

     0   :  { %10 = vsyncpa [#allocation4], 0  ;;  %s8333_s0 = inlined_call_operand.hbm [shape: bf16[2,16,16,128], index: 0, kind: input, shape index: {}]   ;;  %s8334_s1 = inlined_call_operand.hbm [shape: bf16[128,128], index: 1, kind: input, shape index: {}]   ;;  %s8335_s2 = inlined_call_operand.vmem [shape: f32[1,128], index: 2, kind: input, shape index: {}]   ;;  %s8336_s3 = inlined_call_operand.hbm [shape: bf16[9,128,128], index: 3, kind: input, shape index: {}]   ;;  %s8337_s4 = inlined_call_operand.vmem [shape: f32[1,128], index: 4, kind: input, shape index: {}]   ;;  %s8338_s5 = inlined_call_operand.hbm [shape: bf16[2,256,128], index: 5, kind: output, shape index: {}]  }
   0x1   :  { %12 = vsyncpa [#allocation4 + $0x1], 0 }
   0x2   :  { %13 = vsyncpa [#allocation7], 0 }
   0x3   :  { %14 = vsyncpa [#allocation5], 0 }
   0x4   :  { %16 = vsyncpa [#allocation5 + $0x1], 0  ;;  %s6898_s18 = smov 0   ;;  %s6900_s19 = smov 0  }
   0x5   :  { %s6902_s20 = smov 0   ;;  %s6904_s21 = smov 0  }
   0x6 LB: > { %s6919_s22 = sadd.s32 4294967295, %s6859_s21   ;;  %s5726_s23 = sadd.s32 4294967294, %s6859_s21   ;;  %s6859_s21 = sphi %s6904_s21, %s8517_s21   ;;  %s6855_s20 = sphi %s6902_s20, %s8516_s20   ;;  %s6851_s19 = sphi %s6900_s19, %s8515_s19   ;;  %s6847_s18 = sphi %s6898_s18, %s8514_s18  }
   0x7   : > { %p42_p0 = scmp.ne.s32.totalorder %s6851_s19, %s6847_s18  ;;  %p43_p1 = scmp.eq.s32.totalorder %s6919_s22, 0 }
   0x8   : > { %p150_p2 = scmp.eq.s32.totalorder %s6919_s22, 1  ;;  %p156_p3 = scmp.eq.s32.totalorder %s5726_s23, 1 }
   0x9   : > { %p6928_p4 = por %p43_p1, %p42_p0  ;;  %p5727_p5 = scmp.ge.s32.totalorder %s6859_s21, 1 }
   0xa   : > { %p6933_p6 = por %p156_p3, %p42_p0  ;;  %p163_p7 = scmp.lt.s32.totalorder %s6859_s21, 3 }
   0xb   : > { %s174_s28 = sshll.u32 %s8334_s1, 4  ;;  %s6861_s30 = smov [#allocation6]   ;;  %s175_s28 = int_to_ptr.hbm [resolvable:$true] %s174_s28 }
   0xc   : > { %p6941_p8 = pnand %p5727_p5, %p163_p7  ;;  %s176_s6 = sshll.u32 %s6861_s30, 4  ;;  %s177_s6 = int_to_ptr.vmem [resolvable:$true] %s176_s6 }
   0xd   : > { %s191_s9 = sshll.u32 %s8336_s3, 4  ;;  %s8339_s10 = smov 64   ;;  %s192_s9 = int_to_ptr.hbm [resolvable:$true] %s191_s9 }
   0xe   : > { %p6637_p9 = pneg %p6941_p8  ;;  %s6863_s11 = smov 4  }
   0xf   : > { %s6864_s12 = smov [#allocation8]   ;;  %s6960_s14 = sadd.s32 1, %s6859_s21  }
  0x10   : > { %p6638_p10 = pnand %p6637_p9, %p43_p1  ;;  %s193_s13 = sshll.u32 %s6864_s12, 4  ;;  %s194_s13 = int_to_ptr.vmem [resolvable:$true] %s193_s13 }
  0x11   : > { %s29_s15 = sadd.s32 1, %s6855_s20  ;;  %s26_s16 = ssub.s32 %s6859_s21, %s6960_s14 }
  0x12   : > { %6640 = dma.hbm_to_vmem [thread:$0]  (!%p6638_p10), %s175_s28, 1024, %s177_s6, [#allocation7], %s8339_s10, %s8339_s10, %s6863_s11  }
  0x13   : > { %6643 = dma.hbm_to_vmem [thread:$0]  (!%p6638_p10), %s192_s9, 9216, %s194_s13, [#allocation7], %s8339_s10, %s8339_s10, %s6863_s11  }
  0x14   : > { %p36_p12 = scmp.ne.s32.totalorder %s6855_s20, %s6851_s19  ;;  %p27_p13 = scmp.eq.s32.totalorder %s26_s16, 0 }
  0x15   : > { %p37_p0 = scmp.eq.s32.totalorder %s6859_s21, 0  ;;  %p6654_p5 = scmp.lt.s32.totalorder %s6859_s21, 2 }
  0x16   : > { %p6970_p3 = por %p150_p2, %p36_p12  ;;  %s210_s26 = sand.u32 1, %s6855_s20  }
  0x17   : > { %s6976_s23 = scalar_select %p27_p13, %s6855_s20, %s29_s15  }
  0x18   : > { %p38_p7 = por %p37_p0, %p36_p12  ;;  %s5731_s27 = sshll.u32 %s210_s26, 7 }
  0x19   : > { %s6368_s28 = sshll.u32 %s6859_s21, 7  ;;  %s214_s8 = scalar_lea.vmem [#allocation3], %s5731_s27 }
  0x1a   : > { %s219_s7 = scalar_lea.hbm %s8333_s0, %s6368_s28  ;;  %s222_s9 = sshll.u32 %s214_s8, 4  ;;  %s223_s9 = int_to_ptr.vmem [resolvable:$true] %s222_s9 }
  0x1b   : > { %s220_s12 = sshll.u32 %s219_s7, 4  ;;  %p6983_p2 = pnand %p6654_p5, %p38_p7  ;;  %s221_s12 = int_to_ptr.hbm [resolvable:$true] %s220_s12 }
  0x1c   : > { %s211_s15 = scalar_lea.sflag [#allocation4], %s210_s26  ;;  %s6759_s16 = sshra.s32 %s221_s12, 4  ;;  %s6760_s16 = int_to_ptr.hbm [resolvable:$true] %s6759_s16 }
  0x1d   : > { %s6761_s10 = scalar_lea.hbm %s6760_s16, 128  ;;  %p6763_p10 = pneg %p6983_p2 }
  0x1e   : > { %p6762_p9 = scmp.ne.s32.totalorder %s6760_s16, %s6761_s10  ;;  %s6766_s30 = scalar_lea.hbm %s8333_s0, 256 }
  0x1f   : > { %p6767_p0 = scmp.lt.s32.totalorder %s6760_s16, %s8333_s0  ;;  %p6768_p5 = scmp.lt.s32.totalorder %s6766_s30, %s6761_s10 }
  0x20   : > { %p6764_p12 = pnand %p6763_p10, %p6762_p9 }
  0x21   : > { %p6769_p7 = por %p6768_p5, %p6767_p0 }
  0x22   : > { %p6765_p13 = pneg %p6764_p12 }
  0x24   : > { %p6770_p11 = pnand %p6769_p7, %p6765_p13 }
  0x26   : > { %6773 = shalt.err (!%p6770_p11)
}
  0x27   : > { %s8347_s26 = smov 64   ;;  %234 = sbr.rel (%p6941_p8) target bundleno = 1122 (0x462), region = 40 }
  0x28   : > { %6647 = dma.hbm_to_vmem [thread:$0]  (!%p6983_p2), %s221_s12, 2048, %s223_s9, %s211_s15, %s8347_s26, %s8347_s26, %s6863_s11  }
  0x2c   : > { %s7003_s8 = sand.u32 1, %s6851_s19  }
  0x2d   : > { %s5735_s10 = sshll.u32 %s7003_s8, 7  ;;  %s237_s16 = scalar_lea.sflag [#allocation4], %s7003_s8 }
  0x2e   : > { %s7009_s28 = scalar_lea.vmem [#allocation3], %s5735_s10 }
  0x2f   : > { %6834 = dma.done.wait (%p6928_p4), %s237_s16, 2048  }
  0x30   : > { %6836 = vsyncadd (%p6928_p4), %s237_s16, 4294965248 }
  0x31   : > { %6838 = dma.done.wait (%p43_p1), [#allocation7], 10240  }
  0x32   : > { %6840 = vsyncadd (%p43_p1), [#allocation7], 4294957056  ;;  %v6392_v0 = vld [vmem:[#allocation6 + $0x38] sm:$0xff]  ;;  %v6391_v1 = vld [vmem:[#allocation6 + $0x30] sm:$0xff]  ;;  %v6865_v33 = vmov 0   ;;  %v8348_v61 = vmov 0 }
  0x33   : > { %475 = vmatpush.bf16.msra.mxu0 %v6392_v0  ;;  %6609 = vmatpush.bf16.msra.mxu2 %v6392_v0  ;;  %v6390_v2 = vld [vmem:[#allocation6 + $0x28] sm:$0xff]  ;;  %v6389_v3 = vld [vmem:[#allocation6 + $0x20] sm:$0xff]  ;;  %v6388_v4 = vld [vmem:[#allocation6 + $0x18] sm:$0xff]  ;;  %597 = vst [vmem:[#allocation2 + $0x4] sm:$0xf] %v6865_v33  ;;  %s8065_s12 = scalar_lea.vmem [#allocation9], %s5735_s10 }
  0x34   : > { %v6387_v5 = vld [vmem:[#allocation6 + $0x10] sm:$0xff]  ;;  %v6386_v6 = vld [vmem:[#allocation6 + $0x8] sm:$0xff]  ;;  %v6385_v7 = vld [vmem:[#allocation6] sm:$0xff]  ;;  %598 = vst [vmem:[#allocation2 + $0x8] sm:$0xf] %v6865_v33  ;;  %s6513_s13 = sshll.u32 %s6919_s22, 7 }
  0x35   : > { %v6369_v8 = vld [vmem:[%s7009_s28] sm:$0xff]  ;;  %v6370_v10 = vld [vmem:[%s7009_s28 + $0x8] sm:$0xff]  ;;  %v6371_v12 = vld [vmem:[%s7009_s28 + $0x10] sm:$0xff]  ;;  %596 = vst [vmem:[#allocation2] sm:$0xf] %v6865_v33  ;;  %s5630_s30 = scalar_lea.hbm %s8338_s5, %s6513_s13  ;;  %s5631_s6 = sshll.u32 %s8065_s12, 4  ;;  %s5632_s6 = int_to_ptr.vmem [resolvable:$true] %s5631_s6 }
  0x36   : > { %v6377_v9 = vld [vmem:[%s7009_s28 + $0x40] sm:$0xff]  ;;  %v6378_v11 = vld [vmem:[%s7009_s28 + $0x48] sm:$0xff]  ;;  %v6379_v13 = vld [vmem:[%s7009_s28 + $0x50] sm:$0xff]  ;;  %599 = vst [vmem:[#allocation2 + $0xc] sm:$0xf] %v6865_v33  ;;  %s5633_s7 = sshll.u32 %s5630_s30, 4  ;;  %s5634_s7 = int_to_ptr.hbm [resolvable:$true] %s5633_s7 }
  0x37   : > { %476 = vmatpush.bf16.msra.mxu0 %v6391_v1  ;;  %6610 = vmatpush.bf16.msra.mxu2 %v6391_v1  ;;  %v6372_v14 = vld [vmem:[%s7009_s28 + $0x18] sm:$0xff]  ;;  %v6373_v16 = vld [vmem:[%s7009_s28 + $0x20] sm:$0xff]  ;;  %v6423_v19 = vld [vmem:[#allocation8 + $0x70] sm:$0xff]  ;;  %601 = vst [vmem:[#allocation2 + $0x110] sm:$0xf] %v6865_v33  ;;  %s5619_s22 = scalar_lea.sflag [#allocation5], %s7003_s8 }
  0x38   : > { %v6380_v15 = vld [vmem:[%s7009_s28 + $0x58] sm:$0xff]  ;;  %v6381_v17 = vld [vmem:[%s7009_s28 + $0x60] sm:$0xff]  ;;  %v6422_v20 = vld [vmem:[#allocation8 + $0x68] sm:$0xff]  ;;  %602 = vst [vmem:[#allocation2 + $0x114] sm:$0xf] %v6865_v33  ;;  %s6803_s26 = sshra.s32 %s5634_s7, 4  ;;  %s6804_s26 = int_to_ptr.hbm [resolvable:$true] %s6803_s26 }
  0x39   : > { %v6424_v18 = vld [vmem:[#allocation8 + $0x78] sm:$0xff]  ;;  %v6374_v21 = vld [vmem:[%s7009_s28 + $0x28] sm:$0xff]  ;;  %v6421_v24 = vld [vmem:[#allocation8 + $0x60] sm:$0xff]  ;;  %603 = vst [vmem:[#allocation2 + $0x118] sm:$0xf] %v6865_v33  ;;  %s6805_s10 = scalar_lea.hbm %s6804_s26, 128  ;;  %p6810_p11 = scmp.lt.s32.totalorder %s6804_s26, %s8338_s5 }
  0x3a   : > { %1282 = vmatpush.bf16.msra.mxu1 %v6424_v18  ;;  %6617 = vmatpush.bf16.msra.mxu3 %v6424_v18  ;;  %v6382_v22 = vld [vmem:[%s7009_s28 + $0x68] sm:$0xff]  ;;  %v6416_v23 = vld [vmem:[#allocation8 + $0x38] sm:$0xff]  ;;  %v6415_v25 = vld [vmem:[#allocation8 + $0x30] sm:$0xff]  ;;  %604 = vst [vmem:[#allocation2 + $0x11c] sm:$0xf] %v6865_v33  ;;  %p6806_p1 = scmp.ne.s32.totalorder %s6804_s26, %s6805_s10  ;;  %s6809_s24 = scalar_lea.hbm %s8338_s5, 256 }
  0x3b   : > { %477 = vmatpush.bf16.msra.mxu0 %v6390_v2  ;;  %6611 = vmatpush.bf16.msra.mxu2 %v6390_v2  ;;  %v6420_v26 = vld [vmem:[#allocation8 + $0x58] sm:$0xff]  ;;  %v6414_v27 = vld [vmem:[#allocation8 + $0x28] sm:$0xff]  ;;  %v6419_v28 = vld [vmem:[#allocation8 + $0x50] sm:$0xff]  ;;  %606 = vst [vmem:[#allocation2 + $0x10] sm:$0xf] %v6865_v33  ;;  %p6811_p2 = scmp.lt.s32.totalorder %s6809_s24, %s6805_s10 }
  0x3c   : > { %v6413_v29 = vld [vmem:[#allocation8 + $0x20] sm:$0xff]  ;;  %v6375_v30 = vld [vmem:[%s7009_s28 + $0x30] sm:$0xff]  ;;  %v6418_v32 = vld [vmem:[#allocation8 + $0x48] sm:$0xff]  ;;  %607 = vst [vmem:[#allocation2 + $0x20] sm:$0xf] %v6865_v33  ;;  %p6807_p4 = pnand %p6806_p1, %p6970_p3 }
  0x3d   : > { %v6383_v31 = vld [vmem:[%s7009_s28 + $0x70] sm:$0xff]  ;;  %v6412_v34 = vld [vmem:[#allocation8 + $0x18] sm:$0xff]  ;;  %v6417_v36 = vld [vmem:[#allocation8 + $0x40] sm:$0xff]  ;;  %608 = vst [vmem:[#allocation2 + $0x30] sm:$0xf] %v6865_v33  ;;  %p6812_p9 = por %p6811_p2, %p6810_p11 }
  0x3e   : > { %1283 = vmatpush.bf16.msra.mxu1 %v6423_v19  ;;  %6618 = vmatpush.bf16.msra.mxu3 %v6423_v19  ;;  %v6456_v35 = vld [vmem:[#allocation8 + $0xf8] sm:$0xff]  ;;  %v6411_v37 = vld [vmem:[#allocation8 + $0x10] sm:$0xff]  ;;  %v6393_v39 = vld [vmem:[#allocation2 + $0x4] sm:$0xff]  ;;  %609 = vst [vmem:[#allocation2 + $0x40] sm:$0xf] %v6865_v33  ;;  %p6808_p8 = pneg %p6807_p4 }
  0x3f   : > { %478 = vmatpush.bf16.msra.mxu0 %v6389_v3  ;;  %6612 = vmatpush.bf16.msra.mxu2 %v6389_v3  ;;  %v6455_v38 = vld [vmem:[#allocation8 + $0xf0] sm:$0xff]  ;;  %v703_v40 = vld [vmem:[#allocation2 + $0x4] sm:$0xf]  ;;  %v6410_v41 = vld [vmem:[#allocation8 + $0x8] sm:$0xff]  ;;  %610 = vst [vmem:[#allocation2 + $0x50] sm:$0xf] %v6865_v33 }
  0x40   : > { %v6454_v42 = vld [vmem:[#allocation8 + $0xe8] sm:$0xff]  ;;  %611 = vst [vmem:[#allocation2 + $0x60] sm:$0xf] %v6865_v33  ;;  %v702_v44 = vld [vmem:[#allocation2] sm:$0x8]  ;;  %v759_v45 = vshrl.u32 %v703_v40, 16  ;;  %p6813_p10 = pnand %p6812_p9, %p6808_p8 }
  0x41   : > { %v704_v43 = vld [vmem:[#allocation2 + $0x8] sm:$0xf]  ;;  %612 = vst [vmem:[#allocation2 + $0x70] sm:$0xf] %v6865_v33  ;;  %v6409_v47 = vld [vmem:[#allocation8] sm:$0xff]  ;;  %v6376_v49 = vld [vmem:[%s7009_s28 + $0x38] sm:$0xff] }
  0x42   : > { %1284 = vmatpush.bf16.msra.mxu1 %v6422_v20  ;;  %6619 = vmatpush.bf16.msra.mxu3 %v6422_v20  ;;  %v768_v46 = vshrl.u32 %v704_v43, 16  ;;  %v6453_v48 = vld [vmem:[#allocation8 + $0xe0] sm:$0xff]  ;;  %613 = vst [vmem:[#allocation2 + $0x80] sm:$0xf] %v6865_v33  ;;  %v6384_v50 = vld [vmem:[%s7009_s28 + $0x78] sm:$0xff]  ;;  %v754_v51 = vshrl.u32 %v702_v44, 16 }
  0x43   : > { %479 = vmatpush.bf16.msra.mxu0 %v6388_v4  ;;  %6613 = vmatpush.bf16.msra.mxu2 %v6388_v4  ;;  %614 = vst [vmem:[#allocation2 + $0x90] sm:$0xf] %v6865_v33  ;;  %v761_v52 = vrot.slane %v759_v45, 7  ;;  %v762_v53 = vshll.u32 %v703_v40, 16  ;;  %v771_v55 = vshll.u32 %v704_v43, 16  ;;  %v6452_v56 = vld [vmem:[#allocation8 + $0xd8] sm:$0xff] }
  0x44   : > { %615 = vst [vmem:[#allocation2 + $0xa0] sm:$0xf] %v6865_v33  ;;  %v770_v54 = vrot.slane %v768_v46, 7  ;;  %vm750_vm0 = vsmask.f32 256  ;;  %v5835_v57 = vrot.slane %v754_v51, 11 }
  0x45   : > { %616 = vst [vmem:[#allocation2 + $0xb0] sm:$0xf] %v6865_v33  ;;  %vm751_vm1 = vsmask.f32 4368  ;;  %v764_v58 = vor.u32 %v762_v53, %v761_v52  ;;  %v766_v59 = vrot.slane %v761_v52, 4  ;;  %v6451_v62 = vld [vmem:[#allocation8 + $0xd0] sm:$0xff] }
  0x46   : > { %1285 = vmatpush.bf16.msra.mxu1 %v6421_v24  ;;  %6620 = vmatpush.bf16.msra.mxu3 %v6421_v24  ;;  %617 = vst [vmem:[#allocation2 + $0xc0] sm:$0xf] %v6865_v33  ;;  %v773_v60 = vor.u32 %v771_v55, %v770_v54  ;;  %vm7058_vm2 = vmor %vm750_vm0, %vm751_vm1  ;;  %v6450_v1 = vld [vmem:[#allocation8 + $0xc8] sm:$0xff]  ;;  %v7076_v4 = vld [vmem:[%s8335_s2] ss:$0 sm:$0xff] }
  0x47   : > { %480 = vmatpush.bf16.msra.mxu0 %v6387_v5  ;;  %6614 = vmatpush.bf16.msra.mxu2 %v6387_v5  ;;  %618 = vst [vmem:[#allocation2 + $0xd0] sm:$0xf] %v6865_v33  ;;  %v8349_v61 = vsel %vm7058_vm2, 4294967295, %v8348_v61  ;;  %v765_v63 = vsel %vm7058_vm2, %v5835_v57, %v764_v58  ;;  %v6449_v5 = vld [vmem:[#allocation8 + $0xc0] sm:$0xff]  ;;  %vm1620_vm3 = vsmask.f32 3328 }
  0x48   : > { %619 = vst [vmem:[#allocation2 + $0xe0] sm:$0xf] %v6865_v33  ;;  %v774_v0 = vsel %vm7058_vm2, %v766_v59, %v773_v60  ;;  %v1371_v2 = vunpack.c.l.b16 %v765_v63  ;;  %vm1621_vm4 = vsmask.f32 7440 }
  0x49   : > { %620 = vst [vmem:[#allocation2 + $0xf0] sm:$0xf] %v6865_v33  ;;  %v1372_v3 = vunpack.c.l.b16 %v774_v0  ;;  %vm7319_vm5 = vmor %vm1620_vm3, %vm1621_vm4 }
  0x4a   : > { %1286 = vmatpush.bf16.msra.mxu1 %v6420_v26  ;;  %6621 = vmatpush.bf16.msra.mxu3 %v6420_v26  ;;  %8350 = vst [vmem:[#allocation13_spill] sm:$0xff] %v8349_v61 }
  0x4b   : > { %481 = vmatpush.bf16.msra.mxu0 %v6386_v6  ;;  %6615 = vmatpush.bf16.msra.mxu2 %v6386_v6  ;;  %621 = vst [vmem:[#allocation2 + $0x100] sm:$0xf] %v6865_v33  ;;  %v1403_v6 = vpack.c.b16 %v1372_v3, %v1371_v2 }
  0x4c   : > { %622 = vst [vmem:[#allocation2 + $0x1c] sm:$0xf] %v6865_v33 }
  0x4d   : > { %623 = vst [vmem:[#allocation2 + $0x2c] sm:$0xf] %v6865_v33 }
  0x4e   : > { %1287 = vmatpush.bf16.msra.mxu1 %v6419_v28  ;;  %6622 = vmatpush.bf16.msra.mxu3 %v6419_v28  ;;  %624 = vst [vmem:[#allocation2 + $0x3c] sm:$0xf] %v6865_v33 }
  0x4f   : > { %482 = vmatpush.bf16.msra.mxu0 %v6385_v7  ;;  %6616 = vmatpush.bf16.msra.mxu2 %v6385_v7  ;;  %625 = vst [vmem:[#allocation2 + $0x4c] sm:$0xf] %v6865_v33 }
  0x50   : > { %626 = vst [vmem:[#allocation2 + $0x5c] sm:$0xf] %v6865_v33 }
  0x51   : > { %627 = vst [vmem:[#allocation2 + $0x6c] sm:$0xf] %v6865_v33 }
  0x52   : > { %483 = vmatmul.bf16.vlgmr.msra.gmra.mxu0 %v6369_v8  ;;  %523 = vmatmul.bf16.vlgmr.msra.gmra.mxu2 %v6377_v9  ;;  %628 = vst [vmem:[#allocation2 + $0x7c] sm:$0xf] %v6865_v33 }
  0x53   : > { %1483 = vmatpush.bf16.msrb.mxu2 %v6416_v23  ;;  %1288 = vmatpush.bf16.msra.mxu1 %v6418_v32  ;;  %629 = vst [vmem:[#allocation2 + $0x8c] sm:$0xf] %v6865_v33  ;;  %v705_v23 = vld [vmem:[#allocation2 + $0x10] sm:$0x8] }
  0x54   : > { %6623 = vmatpush.bf16.msra.mxu3 %v6418_v32  ;;  %2786 = vmatpush.bf16.msrb.mxu0 %v6456_v35  ;;  %630 = vst [vmem:[#allocation2 + $0x9c] sm:$0xf] %v6865_v33 }
  0x55   : > { %631 = vst [vmem:[#allocation2 + $0xac] sm:$0xf] %v6865_v33 }
  0x56   : > { %632 = vst [vmem:[#allocation2 + $0xbc] sm:$0xf] %v6865_v33 }
  0x57   : > { %1484 = vmatpush.bf16.msrb.mxu2 %v6415_v25  ;;  %1289 = vmatpush.bf16.msra.mxu1 %v6417_v36  ;;  %633 = vst [vmem:[#allocation2 + $0xcc] sm:$0xf] %v6865_v33 }
  0x58   : > { %6624 = vmatpush.bf16.msra.mxu3 %v6417_v36  ;;  %2787 = vmatpush.bf16.msrb.mxu0 %v6455_v38  ;;  %634 = vst [vmem:[#allocation2 + $0xdc] sm:$0xf] %v6865_v33 }
  0x59   : > { %635 = vst [vmem:[#allocation2 + $0xec] sm:$0xf] %v6865_v33 }
  0x5a   : > { %1290 = vmatmul.bf16.vlgmr.msra.gmra.mxu1 %v6393_v39  ;;  %636 = vst [vmem:[#allocation2 + $0xfc] sm:$0xf] %v6865_v33 }
  0x5b   : > { %1485 = vmatpush.bf16.msrb.mxu2 %v6414_v27  ;;  %637 = vst [vmem:[#allocation2 + $0x10c] sm:$0xf] %v6865_v33  ;;  %v2257_v27 = vld [vmem:[#allocation2 + $0x10] sm:$0x8] }
  0x5c   : > { %2788 = vmatpush.bf16.msrb.mxu0 %v6454_v42 }
  0x5f   : > { %1486 = vmatpush.bf16.msrb.mxu2 %v6413_v29 }
  0x60   : > { %2789 = vmatpush.bf16.msrb.mxu0 %v6453_v48 }
  0x62   : > { %488 = vmatmul.bf16.gmra.mxu0 %v6370_v10  ;;  %528 = vmatmul.bf16.gmra.mxu2 %v6378_v11 }
  0x63   : > { %1487 = vmatpush.bf16.msrb.mxu2 %v6412_v34  ;;  %v2306_v34 = vshrl.u32 %v2257_v27, 16 }
  0x64   : > { %2790 = vmatpush.bf16.msrb.mxu0 %v6452_v56 }
  0x65   : > { %v6011_v46 = vrot.slane %v2306_v34, 11 }
  0x67   : > { %1488 = vmatpush.bf16.msrb.mxu2 %v6411_v37 }
  0x68   : > { %2791 = vmatpush.bf16.msrb.mxu0 %v6451_v62 }
  0x6b   : > { %1489 = vmatpush.bf16.msrb.mxu2 %v6410_v41 }
  0x6c   : > { %2792 = vmatpush.bf16.msrb.mxu0 %v6450_v1 }
  0x6f   : > { %1490 = vmatpush.bf16.msrb.mxu2 %v6409_v47 }
  0x70   : > { %2793 = vmatpush.bf16.msrb.mxu0 %v6449_v5 }
  0x72   : > { %493 = vmatmul.bf16.gmra.mxu0 %v6371_v12  ;;  %533 = vmatmul.bf16.gmra.mxu2 %v6379_v13 }
  0x82   : > { %498 = vmatmul.bf16.gmra.mxu0 %v6372_v14  ;;  %538 = vmatmul.bf16.gmra.mxu2 %v6380_v15 }
  0x92   : > { %503 = vmatmul.bf16.gmra.mxu0 %v6373_v16  ;;  %543 = vmatmul.bf16.gmra.mxu2 %v6381_v17 }
  0xa2   : > { %508 = vmatmul.bf16.gmra.mxu0 %v6374_v21  ;;  %548 = vmatmul.bf16.gmra.mxu2 %v6382_v22 }
  0xb2   : > { %513 = vmatmul.bf16.gmra.mxu0 %v6375_v30  ;;  %553 = vmatmul.bf16.gmra.mxu2 %v6383_v31  ;;  %v776_v30 = vshrl.u32 %v705_v23, 16 }
  0xb4   : > { %v5836_v41 = vrot.slane %v776_v30, 11 }
  0xc2   : > { %518 = vmatmul.bf16.gmra.mxu0 %v6376_v49  ;;  %558 = vmatmul.bf16.gmra.mxu2 %v6384_v50 }
  0xcf   : > { %v484_v7 = vpop.f32.mrf.mxu0 }
  0xd0   : > { %v485_v8 = vadd.f32 %v7076_v4, %v484_v7 }
  0xd2   : > { %v564_v9 = vmax.f32 %v485_v8, 0.0  ;;  %1491 = vmatmul.bf16.vlgmr.msrb.gmra.mxu2 %v1403_v6 }
  0xd4   : > { %v638_v10 = vpack.c.bf16 %v564_v9, %v564_v9 }
  0xd5   : > { %v524_v11 = vpop.f32.mrf.mxu2 }
  0xd6   : > { %670 = vst [vmem:[#allocation2 + $0x14] sm:$0xf] %v638_v10  ;;  %v525_v12 = vadd.f32 %v7076_v4, %v524_v11 }
  0xd7   : > { %v486_v13 = vpop.f32.mrf.mxu0 }
  0xd8   : > { %v487_v14 = vadd.f32 %v7076_v4, %v486_v13  ;;  %v580_v15 = vmax.f32 %v525_v12, 0.0 }
  0xda   : > { %v565_v16 = vmax.f32 %v487_v14, 0.0  ;;  %v654_v17 = vpack.c.bf16 %v580_v15, %v580_v15  ;;  %v708_v14 = vld [vmem:[#allocation2 + $0x20] sm:$0x8] }
  0xdb   : > { %v798_v23 = vshrl.u32 %v708_v14, 16 }
  0xdc   : > { %v639_v18 = vpack.c.bf16 %v565_v16, %v565_v16  ;;  %686 = vst [vmem:[#allocation2 + $0x94] sm:$0xf] %v654_v17 }
  0xdd   : > { %v526_v19 = vpop.f32.mrf.mxu2  ;;  %v706_v20 = vld [vmem:[#allocation2 + $0x14] sm:$0xf]  ;;  %v5837_v34 = vrot.slane %v798_v23, 11 }
  0xde   : > { %v2258_v21 = vld [vmem:[#allocation2 + $0x14] sm:$0xf]  ;;  %671 = vst [vmem:[#allocation2 + $0x18] sm:$0xf] %v639_v18  ;;  %v527_v22 = vadd.f32 %v7076_v4, %v526_v19  ;;  %v781_v24 = vshrl.u32 %v706_v20, 16  ;;  %v784_v36 = vshll.u32 %v706_v20, 16 }
  0xdf   : > { %v2311_v25 = vshrl.u32 %v2258_v21, 16  ;;  %v489_v26 = vpop.f32.mrf.mxu0  ;;  %v2314_v38 = vshll.u32 %v2258_v21, 16  ;;  %v2260_v20 = vld [vmem:[#allocation2 + $0x20] sm:$0x8] }
  0xe0   : > { %v490_v28 = vadd.f32 %v7076_v4, %v489_v26  ;;  %v581_v29 = vmax.f32 %v527_v22, 0.0  ;;  %v783_v31 = vrot.slane %v781_v24, 7  ;;  %v2328_v27 = vshrl.u32 %v2260_v20, 16 }
  0xe1   : > { %v2313_v35 = vrot.slane %v2311_v25, 7 }
  0xe2   : > { %v566_v32 = vmax.f32 %v490_v28, 0.0  ;;  %v655_v33 = vpack.c.bf16 %v581_v29, %v581_v29  ;;  %v786_v42 = vor.u32 %v784_v36, %v783_v31  ;;  %v788_v57 = vrot.slane %v783_v31, 4 }
  0xe3   : > { %v2316_v47 = vor.u32 %v2314_v38, %v2313_v35  ;;  %v2318_v58 = vrot.slane %v2313_v35, 4 }
  0xe4   : > { %v640_v37 = vpack.c.bf16 %v566_v32, %v566_v32  ;;  %687 = vst [vmem:[#allocation2 + $0x98] sm:$0xf] %v655_v33  ;;  %v787_v56 = vsel %vm7058_vm2, %v5836_v41, %v786_v42 }
  0xe5   : > { %v6394_v39 = vld [vmem:[#allocation2 + $0x14] sm:$0xff]  ;;  %v529_v44 = vpop.f32.mrf.mxu2  ;;  %v2317_v63 = vsel %vm7058_vm2, %v6011_v46, %v2316_v47  ;;  %v1373_v6 = vunpack.c.l.b16 %v787_v56 }
  0xe6   : > { %v707_v40 = vld [vmem:[#allocation2 + $0x18] sm:$0xf]  ;;  %672 = vst [vmem:[#allocation2 + $0x24] sm:$0xf] %v640_v37  ;;  %1295 = vmatmul.bf16.gmra.mxu1 %v6394_v39  ;;  %v530_v51 = vadd.f32 %v7076_v4, %v529_v44  ;;  %v2674_v8 = vunpack.c.l.b16 %v2317_v63  ;;  %v6012_v39 = vrot.slane %v2328_v27, 11 }
  0xe7   : > { %v2259_v43 = vld [vmem:[#allocation2 + $0x18] sm:$0xf]  ;;  %v790_v45 = vshrl.u32 %v707_v40, 16  ;;  %v491_v49 = vpop.f32.mrf.mxu0  ;;  %v793_v50 = vshll.u32 %v707_v40, 16 }
  0xe8   : > { %v2320_v48 = vshrl.u32 %v2259_v43, 16  ;;  %v492_v52 = vadd.f32 %v7076_v4, %v491_v49  ;;  %v2323_v55 = vshll.u32 %v2259_v43, 16  ;;  %v582_v59 = vmax.f32 %v530_v51, 0.0 }
  0xe9   : > { %v792_v53 = vrot.slane %v790_v45, 7 }
  0xea   : > { %v2322_v54 = vrot.slane %v2320_v48, 7  ;;  %v567_v60 = vmax.f32 %v492_v52, 0.0  ;;  %v656_v1 = vpack.c.bf16 %v582_v59, %v582_v59 }
  0xeb   : > { %v795_v62 = vor.u32 %v793_v50, %v792_v53 }
  0xec   : > { %v2325_v0 = vor.u32 %v2323_v55, %v2322_v54  ;;  %v641_v2 = vpack.c.bf16 %v567_v60, %v567_v60  ;;  %688 = vst [vmem:[#allocation2 + $0xa4] sm:$0xf] %v656_v1 }
  0xed   : > { %v796_v3 = vsel %vm7058_vm2, %v788_v57, %v795_v62  ;;  %v531_v10 = vpop.f32.mrf.mxu2  ;;  %v709_v11 = vld [vmem:[#allocation2 + $0x24] sm:$0xf] }
  0xee   : > { %v2326_v5 = vsel %vm7058_vm2, %v2318_v58, %v2325_v0  ;;  %v1374_v7 = vunpack.c.l.b16 %v796_v3  ;;  %v2261_v12 = vld [vmem:[#allocation2 + $0x24] sm:$0xf]  ;;  %673 = vst [vmem:[#allocation2 + $0x28] sm:$0xf] %v641_v2  ;;  %v532_v13 = vadd.f32 %v7076_v4, %v531_v10  ;;  %v803_v15 = vshrl.u32 %v709_v11, 16 }
  0xef   : > { %v2675_v9 = vunpack.c.l.b16 %v2326_v5  ;;  %v2333_v16 = vshrl.u32 %v2261_v12, 16  ;;  %v494_v17 = vpop.f32.mrf.mxu0  ;;  %v806_v29 = vshll.u32 %v709_v11, 16  ;;  %v2336_v31 = vshll.u32 %v2261_v12, 16 }
  0xf0   : > { %v1404_v18 = vpack.c.b16 %v1374_v7, %v1373_v6  ;;  %v495_v21 = vadd.f32 %v7076_v4, %v494_v17  ;;  %v583_v22 = vmax.f32 %v532_v13, 0.0  ;;  %v805_v24 = vrot.slane %v803_v15, 7  ;;  %v711_v7 = vld [vmem:[#allocation2 + $0x30] sm:$0x8] }
  0xf1   : > { %v2706_v19 = vpack.c.b16 %v2675_v9, %v2674_v8  ;;  %v2335_v28 = vrot.slane %v2333_v16, 7  ;;  %v2263_v13 = vld [vmem:[#allocation2 + $0x30] sm:$0x8]  ;;  %v820_v16 = vshrl.u32 %v711_v7, 16 }
  0xf2   : > { %1496 = vmatmul.bf16.gmra.mxu2 %v1404_v18  ;;  %v568_v25 = vmax.f32 %v495_v21, 0.0  ;;  %v657_v26 = vpack.c.bf16 %v583_v22, %v583_v22  ;;  %v808_v35 = vor.u32 %v806_v29, %v805_v24  ;;  %v810_v50 = vrot.slane %v805_v24, 4 }
  0xf3   : > { %2794 = vmatmul.bf16.vlgmr.msrb.gmra.mxu0 %v2706_v19  ;;  %v2338_v40 = vor.u32 %v2336_v31, %v2335_v28  ;;  %v2340_v51 = vrot.slane %v2335_v28, 4  ;;  %v2350_v20 = vshrl.u32 %v2263_v13, 16  ;;  %v5838_v27 = vrot.slane %v820_v16, 11 }
  0xf4   : > { %v642_v30 = vpack.c.bf16 %v568_v25, %v568_v25  ;;  %689 = vst [vmem:[#allocation2 + $0xa8] sm:$0xf] %v657_v26  ;;  %v809_v49 = vsel %vm7058_vm2, %v5837_v34, %v808_v35 }
  0xf5   : > { %v6395_v32 = vld [vmem:[#allocation2 + $0x24] sm:$0xff]  ;;  %v534_v37 = vpop.f32.mrf.mxu2  ;;  %v2339_v55 = vsel %vm7058_vm2, %v6012_v39, %v2338_v40  ;;  %v1375_v62 = vunpack.c.l.b16 %v809_v49 }
  0xf6   : > { %v710_v33 = vld [vmem:[#allocation2 + $0x28] sm:$0xf]  ;;  %674 = vst [vmem:[#allocation2 + $0x34] sm:$0xf] %v642_v30  ;;  %1300 = vmatmul.bf16.gmra.mxu1 %v6395_v32  ;;  %v535_v44 = vadd.f32 %v7076_v4, %v534_v37  ;;  %v2676_v0 = vunpack.c.l.b16 %v2339_v55  ;;  %v6013_v32 = vrot.slane %v2350_v20, 11 }
  0xf7   : > { %v2262_v36 = vld [vmem:[#allocation2 + $0x28] sm:$0xf]  ;;  %v812_v38 = vshrl.u32 %v710_v33, 16  ;;  %v496_v42 = vpop.f32.mrf.mxu0  ;;  %v815_v43 = vshll.u32 %v710_v33, 16 }
  0xf8   : > { %v2342_v41 = vshrl.u32 %v2262_v36, 16  ;;  %v497_v45 = vadd.f32 %v7076_v4, %v496_v42  ;;  %v2345_v48 = vshll.u32 %v2262_v36, 16  ;;  %v584_v52 = vmax.f32 %v535_v44, 0.0 }
  0xf9   : > { %v814_v46 = vrot.slane %v812_v38, 7 }
  0xfa   : > { %v2344_v47 = vrot.slane %v2342_v41, 7  ;;  %v569_v53 = vmax.f32 %v497_v45, 0.0  ;;  %v658_v57 = vpack.c.bf16 %v584_v52, %v584_v52 }
  0xfb   : > { %v817_v54 = vor.u32 %v815_v43, %v814_v46 }
  0xfc   : > { %v2347_v56 = vor.u32 %v2345_v48, %v2344_v47  ;;  %v643_v58 = vpack.c.bf16 %v569_v53, %v569_v53  ;;  %690 = vst [vmem:[#allocation2 + $0xb4] sm:$0xf] %v658_v57 }
  0xfd   : > { %v818_v59 = vsel %vm7058_vm2, %v810_v50, %v817_v54  ;;  %v536_v2 = vpop.f32.mrf.mxu2  ;;  %v712_v3 = vld [vmem:[#allocation2 + $0x34] sm:$0xf] }
  0xfe   : > { %v2348_v60 = vsel %vm7058_vm2, %v2340_v51, %v2347_v56  ;;  %v1376_v63 = vunpack.c.l.b16 %v818_v59  ;;  %v2264_v5 = vld [vmem:[#allocation2 + $0x34] sm:$0xf]  ;;  %675 = vst [vmem:[#allocation2 + $0x38] sm:$0xf] %v643_v58  ;;  %v537_v6 = vadd.f32 %v7076_v4, %v536_v2  ;;  %v825_v8 = vshrl.u32 %v712_v3, 16 }
  0xff   : > { %v2677_v1 = vunpack.c.l.b16 %v2348_v60  ;;  %v2355_v9 = vshrl.u32 %v2264_v5, 16  ;;  %v499_v10 = vpop.f32.mrf.mxu0  ;;  %v828_v22 = vshll.u32 %v712_v3, 16  ;;  %v2358_v24 = vshll.u32 %v2264_v5, 16 }
 0x100   : > { %v1405_v11 = vpack.c.b16 %v1376_v63, %v1375_v62  ;;  %v500_v14 = vadd.f32 %v7076_v4, %v499_v10  ;;  %v585_v15 = vmax.f32 %v537_v6, 0.0  ;;  %v827_v17 = vrot.slane %v825_v8, 7  ;;  %v714_v63 = vld [vmem:[#allocation2 + $0x40] sm:$0x8] }
 0x101   : > { %v2707_v12 = vpack.c.b16 %v2677_v1, %v2676_v0  ;;  %v2357_v21 = vrot.slane %v2355_v9, 7  ;;  %v2266_v6 = vld [vmem:[#allocation2 + $0x40] sm:$0x8]  ;;  %v842_v9 = vshrl.u32 %v714_v63, 16 }
 0x102   : > { %1501 = vmatmul.bf16.gmra.mxu2 %v1405_v11  ;;  %v570_v18 = vmax.f32 %v500_v14, 0.0  ;;  %v659_v19 = vpack.c.bf16 %v585_v15, %v585_v15  ;;  %v830_v28 = vor.u32 %v828_v22, %v827_v17  ;;  %v832_v43 = vrot.slane %v827_v17, 4 }
 0x103   : > { %2799 = vmatmul.bf16.gmra.mxu0 %v2707_v12  ;;  %v2360_v33 = vor.u32 %v2358_v24, %v2357_v21  ;;  %v2362_v44 = vrot.slane %v2357_v21, 4  ;;  %v2372_v13 = vshrl.u32 %v2266_v6, 16  ;;  %v5839_v20 = vrot.slane %v842_v9, 11 }
 0x104   : > { %v644_v23 = vpack.c.bf16 %v570_v18, %v570_v18  ;;  %691 = vst [vmem:[#allocation2 + $0xb8] sm:$0xf] %v659_v19  ;;  %v831_v42 = vsel %vm7058_vm2, %v5838_v27, %v830_v28 }
 0x105   : > { %v6396_v25 = vld [vmem:[#allocation2 + $0x34] sm:$0xff]  ;;  %v539_v30 = vpop.f32.mrf.mxu2  ;;  %v2361_v48 = vsel %vm7058_vm2, %v6013_v32, %v2360_v33  ;;  %v1377_v54 = vunpack.c.l.b16 %v831_v42 }
 0x106   : > { %v713_v26 = vld [vmem:[#allocation2 + $0x38] sm:$0xf]  ;;  %676 = vst [vmem:[#allocation2 + $0x44] sm:$0xf] %v644_v23  ;;  %1305 = vmatmul.bf16.gmra.mxu1 %v6396_v25  ;;  %v540_v37 = vadd.f32 %v7076_v4, %v539_v30  ;;  %v2678_v56 = vunpack.c.l.b16 %v2361_v48  ;;  %v6014_v25 = vrot.slane %v2372_v13, 11  ;;  %v6463_v48 = vld [vmem:[#allocation8 + $0x130] sm:$0xff] }
 0x107   : > { %v2265_v29 = vld [vmem:[#allocation2 + $0x38] sm:$0xf]  ;;  %v834_v31 = vshrl.u32 %v713_v26, 16  ;;  %v501_v35 = vpop.f32.mrf.mxu0  ;;  %v837_v36 = vshll.u32 %v713_v26, 16 }
 0x108   : > { %v2364_v34 = vshrl.u32 %v2265_v29, 16  ;;  %v502_v38 = vadd.f32 %v7076_v4, %v501_v35  ;;  %v2367_v41 = vshll.u32 %v2265_v29, 16  ;;  %v586_v45 = vmax.f32 %v540_v37, 0.0  ;;  %v6464_v35 = vld [vmem:[#allocation8 + $0x138] sm:$0xff] }
 0x109   : > { %v836_v39 = vrot.slane %v834_v31, 7  ;;  %3068 = vmatpush.bf16.msrb.mxu1 %v6464_v35 }
 0x10a   : > { %v2366_v40 = vrot.slane %v2364_v34, 7  ;;  %v571_v46 = vmax.f32 %v502_v38, 0.0  ;;  %v660_v50 = vpack.c.bf16 %v586_v45, %v586_v45 }
 0x10b   : > { %v839_v47 = vor.u32 %v837_v36, %v836_v39 }
 0x10c   : > { %v2369_v49 = vor.u32 %v2367_v41, %v2366_v40  ;;  %v645_v51 = vpack.c.bf16 %v571_v46, %v571_v46  ;;  %692 = vst [vmem:[#allocation2 + $0xc4] sm:$0xf] %v660_v50 }
 0x10d   : > { %v840_v52 = vsel %vm7058_vm2, %v832_v43, %v839_v47  ;;  %v541_v58 = vpop.f32.mrf.mxu2  ;;  %v715_v59 = vld [vmem:[#allocation2 + $0x44] sm:$0xf]  ;;  %3069 = vmatpush.bf16.msrb.mxu1 %v6463_v48 }
 0x10e   : > { %v2370_v53 = vsel %vm7058_vm2, %v2362_v44, %v2369_v49  ;;  %v1378_v55 = vunpack.c.l.b16 %v840_v52  ;;  %v2267_v60 = vld [vmem:[#allocation2 + $0x44] sm:$0xf]  ;;  %677 = vst [vmem:[#allocation2 + $0x48] sm:$0xf] %v645_v51  ;;  %v542_v62 = vadd.f32 %v7076_v4, %v541_v58  ;;  %v847_v0 = vshrl.u32 %v715_v59, 16 }
 0x10f   : > { %v2679_v57 = vunpack.c.l.b16 %v2370_v53  ;;  %v2377_v1 = vshrl.u32 %v2267_v60, 16  ;;  %v504_v2 = vpop.f32.mrf.mxu0  ;;  %v850_v15 = vshll.u32 %v715_v59, 16  ;;  %v2380_v17 = vshll.u32 %v2267_v60, 16 }
 0x110   : > { %v1406_v3 = vpack.c.b16 %v1378_v55, %v1377_v54  ;;  %v505_v7 = vadd.f32 %v7076_v4, %v504_v2  ;;  %v587_v8 = vmax.f32 %v542_v62, 0.0  ;;  %v849_v10 = vrot.slane %v847_v0, 7  ;;  %v2269_v0 = vld [vmem:[#allocation2 + $0x50] sm:$0x8] }
 0x111   : > { %v2708_v5 = vpack.c.b16 %v2679_v57, %v2678_v56  ;;  %v2379_v14 = vrot.slane %v2377_v1, 7  ;;  %v717_v57 = vld [vmem:[#allocation2 + $0x50] sm:$0x8]  ;;  %v2394_v9 = vshrl.u32 %v2269_v0, 16  ;;  %v6458_v0 = vld [vmem:[#allocation8 + $0x108] sm:$0xff] }
 0x112   : > { %1506 = vmatmul.bf16.gmra.mxu2 %v1406_v3  ;;  %v572_v11 = vmax.f32 %v505_v7, 0.0  ;;  %v661_v12 = vpack.c.bf16 %v587_v8, %v587_v8  ;;  %v852_v21 = vor.u32 %v850_v15, %v849_v10  ;;  %v854_v37 = vrot.slane %v849_v10, 4  ;;  %v6462_v3 = vld [vmem:[#allocation8 + $0x128] sm:$0xff] }
 0x113   : > { %2804 = vmatmul.bf16.gmra.mxu0 %v2708_v5  ;;  %v2382_v26 = vor.u32 %v2380_v17, %v2379_v14  ;;  %v2384_v38 = vrot.slane %v2379_v14, 4  ;;  %v864_v5 = vshrl.u32 %v717_v57, 16  ;;  %3070 = vmatpush.bf16.msrb.mxu1 %v6462_v3  ;;  %v6461_v14 = vld [vmem:[#allocation8 + $0x120] sm:$0xff] }
 0x114   : > { %v646_v16 = vpack.c.bf16 %v572_v11, %v572_v11  ;;  %693 = vst [vmem:[#allocation2 + $0xc8] sm:$0xf] %v661_v12  ;;  %v853_v36 = vsel %vm7058_vm2, %v5839_v20, %v852_v21 }
 0x115   : > { %v6397_v18 = vld [vmem:[#allocation2 + $0x44] sm:$0xff]  ;;  %v544_v23 = vpop.f32.mrf.mxu2  ;;  %v2383_v42 = vsel %vm7058_vm2, %v6014_v25, %v2382_v26  ;;  %v1379_v49 = vunpack.c.l.b16 %v853_v36  ;;  %v5840_v17 = vrot.slane %v864_v5, 11 }
 0x116   : > { %v716_v19 = vld [vmem:[#allocation2 + $0x48] sm:$0xf]  ;;  %678 = vst [vmem:[#allocation2 + $0x54] sm:$0xf] %v646_v16  ;;  %1310 = vmatmul.bf16.gmra.mxu1 %v6397_v18  ;;  %v545_v30 = vadd.f32 %v7076_v4, %v544_v23  ;;  %v2680_v51 = vunpack.c.l.b16 %v2383_v42 }
 0x117   : > { %v2268_v22 = vld [vmem:[#allocation2 + $0x48] sm:$0xf]  ;;  %v856_v24 = vshrl.u32 %v716_v19, 16  ;;  %v506_v28 = vpop.f32.mrf.mxu0  ;;  %v859_v29 = vshll.u32 %v716_v19, 16  ;;  %3071 = vmatpush.bf16.msrb.mxu1 %v6461_v14 }
 0x118   : > { %v2386_v27 = vshrl.u32 %v2268_v22, 16  ;;  %v507_v31 = vadd.f32 %v7076_v4, %v506_v28  ;;  %v2389_v34 = vshll.u32 %v2268_v22, 16  ;;  %v588_v39 = vmax.f32 %v545_v30, 0.0 }
 0x119   : > { %v858_v32 = vrot.slane %v856_v24, 7  ;;  %v6015_v22 = vrot.slane %v2394_v9, 11 }
 0x11a   : > { %v2388_v33 = vrot.slane %v2386_v27, 7  ;;  %v573_v40 = vmax.f32 %v507_v31, 0.0  ;;  %v662_v44 = vpack.c.bf16 %v588_v39, %v588_v39 }
 0x11b   : > { %v861_v41 = vor.u32 %v859_v29, %v858_v32  ;;  %v6460_v32 = vld [vmem:[#allocation8 + $0x118] sm:$0xff] }
 0x11c   : > { %v2391_v43 = vor.u32 %v2389_v34, %v2388_v33  ;;  %v647_v45 = vpack.c.bf16 %v573_v40, %v573_v40  ;;  %694 = vst [vmem:[#allocation2 + $0xd4] sm:$0xf] %v662_v44  ;;  %3072 = vmatpush.bf16.msrb.mxu1 %v6460_v32 }
 0x11d   : > { %v862_v46 = vsel %vm7058_vm2, %v854_v37, %v861_v41  ;;  %v546_v53 = vpop.f32.mrf.mxu2  ;;  %v718_v54 = vld [vmem:[#allocation2 + $0x54] sm:$0xf] }
 0x11e   : > { %v2392_v47 = vsel %vm7058_vm2, %v2384_v38, %v2391_v43  ;;  %v1380_v50 = vunpack.c.l.b16 %v862_v46  ;;  %v2270_v55 = vld [vmem:[#allocation2 + $0x54] sm:$0xf]  ;;  %679 = vst [vmem:[#allocation2 + $0x58] sm:$0xf] %v647_v45  ;;  %v547_v56 = vadd.f32 %v7076_v4, %v546_v53  ;;  %v869_v58 = vshrl.u32 %v718_v54, 16 }
 0x11f   : > { %v2681_v52 = vunpack.c.l.b16 %v2392_v47  ;;  %v2399_v59 = vshrl.u32 %v2270_v55, 16  ;;  %v509_v60 = vpop.f32.mrf.mxu0  ;;  %v872_v11 = vshll.u32 %v718_v54, 16  ;;  %v2402_v13 = vshll.u32 %v2270_v55, 16  ;;  %v6459_v45 = vld [vmem:[#allocation8 + $0x110] sm:$0xff]  ;;  %v720_v54 = vld [vmem:[#allocation2 + $0x60] sm:$0x8] }
 0x120   : > { %v1407_v62 = vpack.c.b16 %v1380_v50, %v1379_v49  ;;  %v510_v1 = vadd.f32 %v7076_v4, %v509_v60  ;;  %v589_v2 = vmax.f32 %v547_v56, 0.0  ;;  %v871_v6 = vrot.slane %v869_v58, 7  ;;  %3073 = vmatpush.bf16.msrb.mxu1 %v6459_v45  ;;  %v2272_v60 = vld [vmem:[#allocation2 + $0x60] sm:$0x8] }
 0x121   : > { %v2709_v63 = vpack.c.b16 %v2681_v52, %v2680_v51  ;;  %v2401_v10 = vrot.slane %v2399_v59, 7 }
 0x122   : > { %1511 = vmatmul.bf16.gmra.mxu2 %v1407_v62  ;;  %v574_v7 = vmax.f32 %v510_v1, 0.0  ;;  %v663_v8 = vpack.c.bf16 %v589_v2, %v589_v2  ;;  %v874_v18 = vor.u32 %v872_v11, %v871_v6  ;;  %v876_v34 = vrot.slane %v871_v6, 4 }
 0x123   : > { %2809 = vmatmul.bf16.gmra.mxu0 %v2709_v63  ;;  %v2404_v23 = vor.u32 %v2402_v13, %v2401_v10  ;;  %v2406_v35 = vrot.slane %v2401_v10, 4  ;;  %v886_v1 = vshrl.u32 %v720_v54, 16  ;;  %v2416_v6 = vshrl.u32 %v2272_v60, 16 }
 0x124   : > { %v648_v12 = vpack.c.bf16 %v574_v7, %v574_v7  ;;  %695 = vst [vmem:[#allocation2 + $0xd8] sm:$0xf] %v663_v8  ;;  %v875_v33 = vsel %vm7058_vm2, %v5840_v17, %v874_v18  ;;  %3074 = vmatpush.bf16.msrb.mxu1 %v6458_v0  ;;  %v6457_v8 = vld [vmem:[#allocation8 + $0x100] sm:$0xff] }
 0x125   : > { %v6398_v15 = vld [vmem:[#allocation2 + $0x54] sm:$0xff]  ;;  %v549_v20 = vpop.f32.mrf.mxu2  ;;  %v2405_v39 = vsel %vm7058_vm2, %v6015_v22, %v2404_v23  ;;  %v1381_v46 = vunpack.c.l.b16 %v875_v33  ;;  %v5841_v14 = vrot.slane %v886_v1, 11 }
 0x126   : > { %v719_v16 = vld [vmem:[#allocation2 + $0x58] sm:$0xf]  ;;  %680 = vst [vmem:[#allocation2 + $0x64] sm:$0xf] %v648_v12  ;;  %1315 = vmatmul.bf16.gmra.mxu1 %v6398_v15  ;;  %v550_v27 = vadd.f32 %v7076_v4, %v549_v20  ;;  %v2682_v48 = vunpack.c.l.b16 %v2405_v39 }
 0x127   : > { %v2271_v19 = vld [vmem:[#allocation2 + $0x58] sm:$0xf]  ;;  %v878_v21 = vshrl.u32 %v719_v16, 16  ;;  %v511_v25 = vpop.f32.mrf.mxu0  ;;  %v881_v26 = vshll.u32 %v719_v16, 16 }
 0x128   : > { %v2408_v24 = vshrl.u32 %v2271_v19, 16  ;;  %v512_v28 = vadd.f32 %v7076_v4, %v511_v25  ;;  %v2411_v31 = vshll.u32 %v2271_v19, 16  ;;  %v590_v36 = vmax.f32 %v550_v27, 0.0  ;;  %3075 = vmatpush.bf16.msrb.mxu1 %v6457_v8  ;;  %v6432_v25 = vld [vmem:[#allocation8 + $0xb8] sm:$0xff] }
 0x129   : > { %v880_v29 = vrot.slane %v878_v21, 7  ;;  %v6016_v19 = vrot.slane %v2416_v6, 11  ;;  %2136 = vmatpush.bf16.msrb.mxu3 %v6432_v25 }
 0x12a   : > { %v2410_v30 = vrot.slane %v2408_v24, 7  ;;  %v575_v37 = vmax.f32 %v512_v28, 0.0  ;;  %v664_v41 = vpack.c.bf16 %v590_v36, %v590_v36 }
 0x12b   : > { %v883_v38 = vor.u32 %v881_v26, %v880_v29 }
 0x12c   : > { %v2413_v40 = vor.u32 %v2411_v31, %v2410_v30  ;;  %v649_v42 = vpack.c.bf16 %v575_v37, %v575_v37  ;;  %696 = vst [vmem:[#allocation2 + $0xe4] sm:$0xf] %v664_v41 }
 0x12d   : > { %v884_v43 = vsel %vm7058_vm2, %v876_v34, %v883_v38  ;;  %v551_v50 = vpop.f32.mrf.mxu2  ;;  %v721_v51 = vld [vmem:[#allocation2 + $0x64] sm:$0xf] }
 0x12e   : > { %v2414_v44 = vsel %vm7058_vm2, %v2406_v35, %v2413_v40  ;;  %v1382_v47 = vunpack.c.l.b16 %v884_v43  ;;  %v2273_v52 = vld [vmem:[#allocation2 + $0x64] sm:$0xf]  ;;  %681 = vst [vmem:[#allocation2 + $0x68] sm:$0xf] %v649_v42  ;;  %v552_v53 = vadd.f32 %v7076_v4, %v551_v50  ;;  %v891_v55 = vshrl.u32 %v721_v51, 16 }
 0x12f   : > { %v2683_v49 = vunpack.c.l.b16 %v2414_v44  ;;  %v2421_v56 = vshrl.u32 %v2273_v52, 16  ;;  %v514_v57 = vpop.f32.mrf.mxu0  ;;  %v894_v9 = vshll.u32 %v721_v51, 16  ;;  %v2424_v11 = vshll.u32 %v2273_v52, 16  ;;  %v723_v50 = vld [vmem:[#allocation2 + $0x70] sm:$0x8] }
 0x130   : > { %v1408_v58 = vpack.c.b16 %v1382_v47, %v1381_v46  ;;  %v515_v62 = vadd.f32 %v7076_v4, %v514_v57  ;;  %v591_v63 = vmax.f32 %v552_v53, 0.0  ;;  %v893_v2 = vrot.slane %v891_v55, 7 }
 0x131   : > { %v2710_v59 = vpack.c.b16 %v2683_v49, %v2682_v48  ;;  %v2423_v7 = vrot.slane %v2421_v56, 7  ;;  %v2275_v56 = vld [vmem:[#allocation2 + $0x70] sm:$0x8] }
 0x132   : > { %1516 = vmatmul.bf16.gmra.mxu2 %v1408_v58  ;;  %v576_v3 = vmax.f32 %v515_v62, 0.0  ;;  %v665_v5 = vpack.c.bf16 %v591_v63, %v591_v63  ;;  %v896_v15 = vor.u32 %v894_v9, %v893_v2  ;;  %v898_v31 = vrot.slane %v893_v2, 4 }
 0x133   : > { %2814 = vmatmul.bf16.gmra.mxu0 %v2710_v59  ;;  %v2426_v20 = vor.u32 %v2424_v11, %v2423_v7  ;;  %v2428_v32 = vrot.slane %v2423_v7, 4  ;;  %v908_v59 = vshrl.u32 %v723_v50, 16  ;;  %v2438_v0 = vshrl.u32 %v2275_v56, 16 }
 0x134   : > { %v650_v10 = vpack.c.bf16 %v576_v3, %v576_v3  ;;  %697 = vst [vmem:[#allocation2 + $0xe8] sm:$0xf] %v665_v5  ;;  %v897_v30 = vsel %vm7058_vm2, %v5841_v14, %v896_v15 }
 0x135   : > { %v6399_v12 = vld [vmem:[#allocation2 + $0x64] sm:$0xff]  ;;  %v554_v17 = vpop.f32.mrf.mxu2  ;;  %v2427_v36 = vsel %vm7058_vm2, %v6016_v19, %v2426_v20  ;;  %v1383_v42 = vunpack.c.l.b16 %v897_v30  ;;  %v5842_v8 = vrot.slane %v908_v59, 11  ;;  %v6431_v19 = vld [vmem:[#allocation8 + $0xb0] sm:$0xff] }
 0x136   : > { %v722_v13 = vld [vmem:[#allocation2 + $0x68] sm:$0xf]  ;;  %682 = vst [vmem:[#allocation2 + $0x74] sm:$0xf] %v650_v10  ;;  %1320 = vmatmul.bf16.gmra.mxu1 %v6399_v12  ;;  %v555_v24 = vadd.f32 %v7076_v4, %v554_v17  ;;  %v2684_v44 = vunpack.c.l.b16 %v2427_v36  ;;  %2137 = vmatpush.bf16.msrb.mxu3 %v6431_v19  ;;  %v726_v36 = vld [vmem:[#allocation2 + $0x80] sm:$0x8] }
 0x137   : > { %v2274_v16 = vld [vmem:[#allocation2 + $0x68] sm:$0xf]  ;;  %v900_v18 = vshrl.u32 %v722_v13, 16  ;;  %v516_v22 = vpop.f32.mrf.mxu0  ;;  %v903_v23 = vshll.u32 %v722_v13, 16  ;;  %v6017_v13 = vrot.slane %v2438_v0, 11  ;;  %v930_v50 = vshrl.u32 %v726_v36, 16 }
 0x138   : > { %v2430_v21 = vshrl.u32 %v2274_v16, 16  ;;  %v517_v26 = vadd.f32 %v7076_v4, %v516_v22  ;;  %v2433_v29 = vshll.u32 %v2274_v16, 16  ;;  %v592_v33 = vmax.f32 %v555_v24, 0.0  ;;  %v730_v59 = vld [vmem:[#allocation2 + $0x94] sm:$0xf] }
 0x139   : > { %v902_v27 = vrot.slane %v900_v18, 7  ;;  %v2282_v19 = vld [vmem:[#allocation2 + $0x94] sm:$0xf] }
 0x13a   : > { %v2432_v28 = vrot.slane %v2430_v21, 7  ;;  %v577_v34 = vmax.f32 %v517_v26, 0.0  ;;  %v666_v38 = vpack.c.bf16 %v592_v33, %v592_v33 }
 0x13b   : > { %v905_v35 = vor.u32 %v903_v23, %v902_v27 }
 0x13c   : > { %v2435_v37 = vor.u32 %v2433_v29, %v2432_v28  ;;  %v651_v39 = vpack.c.bf16 %v577_v34, %v577_v34  ;;  %698 = vst [vmem:[#allocation2 + $0xf4] sm:$0xf] %v666_v38 }
 0x13d   : > { %v906_v40 = vsel %vm7058_vm2, %v898_v31, %v905_v35  ;;  %v556_v46 = vpop.f32.mrf.mxu2  ;;  %v724_v47 = vld [vmem:[#allocation2 + $0x74] sm:$0xf] }
 0x13e   : > { %v2436_v41 = vsel %vm7058_vm2, %v2428_v32, %v2435_v37  ;;  %v1384_v43 = vunpack.c.l.b16 %v906_v40  ;;  %v2276_v48 = vld [vmem:[#allocation2 + $0x74] sm:$0xf]  ;;  %683 = vst [vmem:[#allocation2 + $0x78] sm:$0xf] %v651_v39  ;;  %v557_v49 = vadd.f32 %v7076_v4, %v556_v46  ;;  %v913_v51 = vshrl.u32 %v724_v47, 16 }
 0x13f   : > { %v2685_v45 = vunpack.c.l.b16 %v2436_v41  ;;  %v2443_v52 = vshrl.u32 %v2276_v48, 16  ;;  %v519_v53 = vpop.f32.mrf.mxu0  ;;  %v916_v2 = vshll.u32 %v724_v47, 16  ;;  %v2446_v5 = vshll.u32 %v2276_v48, 16  ;;  %v2278_v46 = vld [vmem:[#allocation2 + $0x80] sm:$0x8] }
 0x140   : > { %v1409_v54 = vpack.c.b16 %v1384_v43, %v1383_v42  ;;  %v520_v57 = vadd.f32 %v7076_v4, %v519_v53  ;;  %v593_v58 = vmax.f32 %v557_v49, 0.0  ;;  %v915_v60 = vrot.slane %v913_v51, 7  ;;  %v1291_v51 = vpop.f32.mrf.mxu1 }
 0x141   : > { %v2711_v55 = vpack.c.b16 %v2685_v45, %v2684_v44  ;;  %v2445_v1 = vrot.slane %v2443_v52, 7  ;;  %v2460_v53 = vshrl.u32 %v2278_v46, 16 }
 0x142   : > { %1521 = vmatmul.bf16.gmra.mxu2 %v1409_v54  ;;  %v578_v62 = vmax.f32 %v520_v57, 0.0  ;;  %v667_v63 = vpack.c.bf16 %v593_v58, %v593_v58  ;;  %v918_v9 = vor.u32 %v916_v2, %v915_v60  ;;  %v920_v25 = vrot.slane %v915_v60, 4  ;;  %v6433_v57 = vld [vmem:[#allocation2 + $0x14] sm:$0xff] }
 0x143   : > { %2819 = vmatmul.bf16.gmra.mxu0 %v2711_v55  ;;  %v2448_v14 = vor.u32 %v2446_v5, %v2445_v1  ;;  %v2450_v26 = vrot.slane %v2445_v1, 4  ;;  %v5843_v58 = vrot.slane %v930_v50, 11  ;;  %v6018_v2 = vrot.slane %v2460_v53, 11 }
 0x144   : > { %v652_v3 = vpack.c.bf16 %v578_v62, %v578_v62  ;;  %699 = vst [vmem:[#allocation2 + $0xf8] sm:$0xf] %v667_v63  ;;  %v919_v24 = vsel %vm7058_vm2, %v5842_v8, %v918_v9  ;;  %v731_v62 = vld [vmem:[#allocation2 + $0x98] sm:$0xf] }
 0x145   : > { %v6400_v6 = vld [vmem:[#allocation2 + $0x74] sm:$0xff]  ;;  %v559_v11 = vpop.f32.mrf.mxu2  ;;  %v2449_v30 = vsel %vm7058_vm2, %v6017_v13, %v2448_v14  ;;  %v1385_v37 = vunpack.c.l.b16 %v919_v24 }
 0x146   : > { %v725_v7 = vld [vmem:[#allocation2 + $0x78] sm:$0xf]  ;;  %684 = vst [vmem:[#allocation2 + $0x84] sm:$0xf] %v652_v3  ;;  %1325 = vmatmul.bf16.gmra.mxu1 %v6400_v6  ;;  %v560_v18 = vadd.f32 %v7076_v4, %v559_v11  ;;  %v2686_v39 = vunpack.c.l.b16 %v2449_v30  ;;  %v966_v11 = vshrl.u32 %v731_v62, 16  ;;  %v2487_v30 = vshrl.u32 %v2282_v19, 16 }
 0x147   : > { %v2277_v10 = vld [vmem:[#allocation2 + $0x78] sm:$0xf]  ;;  %v922_v12 = vshrl.u32 %v725_v7, 16  ;;  %v521_v16 = vpop.f32.mrf.mxu0  ;;  %v925_v17 = vshll.u32 %v725_v7, 16 }
 0x148   : > { %v2452_v15 = vshrl.u32 %v2277_v10, 16  ;;  %v522_v20 = vadd.f32 %v7076_v4, %v521_v16  ;;  %v2455_v23 = vshll.u32 %v2277_v10, 16  ;;  %v594_v27 = vmax.f32 %v560_v18, 0.0 }
 0x149   : > { %v924_v21 = vrot.slane %v922_v12, 7  ;;  %v957_v10 = vshrl.u32 %v730_v59, 16  ;;  %v6430_v12 = vld [vmem:[#allocation8 + $0xa8] sm:$0xff] }
 0x14a   : > { %v2454_v22 = vrot.slane %v2452_v15, 7  ;;  %v579_v28 = vmax.f32 %v522_v20, 0.0  ;;  %v668_v32 = vpack.c.bf16 %v594_v27, %v594_v27  ;;  %v2283_v20 = vld [vmem:[#allocation2 + $0x98] sm:$0xf]  ;;  %2138 = vmatpush.bf16.msrb.mxu3 %v6430_v12  ;;  %v732_v12 = vld [vmem:[#allocation2 + $0xa0] sm:$0x8] }
 0x14b   : > { %v927_v29 = vor.u32 %v925_v17, %v924_v21  ;;  %v7178_v21 = vpop.f32.mrf.mxu1 }
 0x14c   : > { %v2457_v31 = vor.u32 %v2455_v23, %v2454_v22  ;;  %v653_v33 = vpack.c.bf16 %v579_v28, %v579_v28  ;;  %700 = vst [vmem:[#allocation2 + $0x104] sm:$0xf] %v668_v32 }
 0x14d   : > { %v928_v34 = vsel %vm7058_vm2, %v920_v25, %v927_v29  ;;  %v561_v41 = vpop.f32.mrf.mxu2  ;;  %v727_v42 = vld [vmem:[#allocation2 + $0x84] sm:$0xf]  ;;  %v2281_v29 = vld [vmem:[#allocation2 + $0x90] sm:$0x8] }
 0x14e   : > { %v2458_v35 = vsel %vm7058_vm2, %v2450_v26, %v2457_v31  ;;  %v1386_v38 = vunpack.c.l.b16 %v928_v34  ;;  %v2279_v43 = vld [vmem:[#allocation2 + $0x84] sm:$0xf]  ;;  %685 = vst [vmem:[#allocation2 + $0x88] sm:$0xf] %v653_v33  ;;  %v562_v44 = vadd.f32 %v7076_v4, %v561_v41  ;;  %v935_v45 = vshrl.u32 %v727_v42, 16 }
 0x14f   : > { %v2687_v40 = vunpack.c.l.b16 %v2458_v35  ;;  %v2465_v47 = vshrl.u32 %v2279_v43, 16  ;;  %v938_v60 = vshll.u32 %v727_v42, 16  ;;  %v2468_v4 = vshll.u32 %v2279_v43, 16  ;;  %v729_v26 = vld [vmem:[#allocation2 + $0x90] sm:$0x8] }
 0x150   : > { %v1410_v48 = vpack.c.b16 %v1386_v38, %v1385_v37  ;;  %v595_v52 = vmax.f32 %v562_v44, 0.0  ;;  %v937_v55 = vrot.slane %v935_v45, 7  ;;  %v2496_v31 = vshrl.u32 %v2283_v20, 16 }
 0x151   : > { %v2712_v49 = vpack.c.b16 %v2687_v40, %v2686_v39  ;;  %v2467_v56 = vrot.slane %v2465_v47, 7  ;;  %v952_v36 = vshrl.u32 %v729_v26, 16  ;;  %v959_v37 = vrot.slane %v957_v10, 7 }
 0x152   : > { %1526 = vmatmul.bf16.gmra.mxu2 %v1410_v48  ;;  %v669_v54 = vpack.c.bf16 %v595_v52, %v595_v52  ;;  %v940_v3 = vor.u32 %v938_v60, %v937_v55  ;;  %v942_v17 = vrot.slane %v937_v55, 4  ;;  %v960_v38 = vshll.u32 %v730_v59, 16 }
 0x153   : > { %2824 = vmatmul.bf16.gmra.mxu0 %v2712_v49  ;;  %v2470_v6 = vor.u32 %v2468_v4, %v2467_v56  ;;  %v2472_v18 = vrot.slane %v2467_v56, 4  ;;  %v968_v39 = vrot.slane %v966_v11, 7  ;;  %v969_v42 = vshll.u32 %v731_v62, 16  ;;  %v733_v4 = vld [vmem:[#allocation2 + $0xa4] sm:$0xf] }
 0x154   : > { %701 = vst [vmem:[#allocation2 + $0x108] sm:$0xf] %v669_v54  ;;  %v941_v22 = vsel %vm7058_vm2, %v5843_v58, %v940_v3  ;;  %v2482_v43 = vshrl.u32 %v2281_v29, 16  ;;  %v2489_v44 = vrot.slane %v2487_v30, 7  ;;  %v2490_v45 = vshll.u32 %v2282_v19, 16  ;;  %v6434_v58 = vld [vmem:[#allocation2 + $0x24] sm:$0xff] }
 0x155   : > { %v6401_v63 = vld [vmem:[#allocation2 + $0x84] sm:$0xff]  ;;  %v1492_v8 = vpop.f32.mrf.mxu2  ;;  %v2471_v24 = vsel %vm7058_vm2, %v6018_v2, %v2470_v6  ;;  %v1387_v32 = vunpack.c.l.b16 %v941_v22  ;;  %v2498_v46 = vrot.slane %v2496_v31, 7  ;;  %v2499_v47 = vshll.u32 %v2283_v20, 16 }
 0x156   : > { %v728_v0 = vld [vmem:[#allocation2 + $0x88] sm:$0xf]  ;;  %1330 = vmatmul.bf16.vlgmr.msra.gmra.mxu3 %v6401_v63  ;;  %3076 = vmatmul.bf16.vlgmr.msrb.gmra.mxu1 %v6433_v57  ;;  %v7176_v9 = vadd.f32 %v1492_v8, %v1291_v51  ;;  %v2688_v34 = vunpack.c.l.b16 %v2471_v24  ;;  %v5844_v48 = vrot.slane %v952_v36, 11  ;;  %v962_v49 = vor.u32 %v960_v38, %v959_v37  ;;  %v6402_v57 = vld [vmem:[#allocation2 + $0x94] sm:$0xff]  ;;  %v6429_v62 = vld [vmem:[#allocation8 + $0xa0] sm:$0xff] }
 0x157   : > { %v2280_v1 = vld [vmem:[#allocation2 + $0x88] sm:$0xf]  ;;  %v944_v5 = vshrl.u32 %v728_v0, 16  ;;  %v947_v14 = vshll.u32 %v728_v0, 16  ;;  %v964_v50 = vrot.slane %v959_v37, 4  ;;  %v971_v51 = vor.u32 %v969_v42, %v968_v39  ;;  %2139 = vmatpush.bf16.msrb.mxu3 %v6429_v62 }
 0x158   : > { %v2474_v7 = vshrl.u32 %v2280_v1, 16  ;;  %v2477_v16 = vshll.u32 %v2280_v1, 16  ;;  %v6019_v53 = vrot.slane %v2482_v43, 11  ;;  %v2492_v54 = vor.u32 %v2490_v45, %v2489_v44  ;;  %v734_v1 = vld [vmem:[#allocation2 + $0xa8] sm:$0xf] }
 0x159   : > { %v946_v13 = vrot.slane %v944_v5, 7  ;;  %v2494_v55 = vrot.slane %v2489_v44, 4  ;;  %v2501_v56 = vor.u32 %v2499_v47, %v2498_v46  ;;  %v963_v59 = vsel %vm7058_vm2, %v5844_v48, %v962_v49  ;;  %v2285_v2 = vld [vmem:[#allocation2 + $0xa4] sm:$0xf]  ;;  %v2286_v3 = vld [vmem:[#allocation2 + $0xa8] sm:$0xf] }
 0x15a   : > { %v2476_v15 = vrot.slane %v2474_v7, 7  ;;  %v972_v60 = vsel %vm7058_vm2, %v964_v50, %v971_v51  ;;  %v2493_v63 = vsel %vm7058_vm2, %v6019_v53, %v2492_v54  ;;  %v1389_v6 = vunpack.c.l.b16 %v963_v59  ;;  %v6403_v43 = vld [vmem:[#allocation2 + $0xa4] sm:$0xff]  ;;  %v6435_v44 = vld [vmem:[#allocation2 + $0x34] sm:$0xff] }
 0x15b   : > { %v949_v23 = vor.u32 %v947_v14, %v946_v13  ;;  %v2502_v0 = vsel %vm7058_vm2, %v2494_v55, %v2501_v56  ;;  %v1390_v7 = vunpack.c.l.b16 %v972_v60  ;;  %v979_v8 = vshrl.u32 %v733_v4, 16  ;;  %v736_v45 = vld [vmem:[#allocation2 + $0xb4] sm:$0xf]  ;;  %v737_v47 = vld [vmem:[#allocation2 + $0xb8] sm:$0xf] }
 0x15c   : > { %v2479_v25 = vor.u32 %v2477_v16, %v2476_v15  ;;  %v2690_v10 = vunpack.c.l.b16 %v2493_v63  ;;  %v2691_v11 = vunpack.c.l.b16 %v2502_v0  ;;  %v988_v13 = vshrl.u32 %v734_v1, 16  ;;  %v2284_v15 = vld [vmem:[#allocation2 + $0xa0] sm:$0x8]  ;;  %v2288_v49 = vld [vmem:[#allocation2 + $0xb4] sm:$0xf]  ;;  %v6428_v51 = vld [vmem:[#allocation8 + $0x98] sm:$0xff] }
 0x15d   : > { %v950_v27 = vsel %vm7058_vm2, %v942_v17, %v949_v23  ;;  %v7196_v5 = vpop.f32.mrf.mxu2  ;;  %v2509_v16 = vshrl.u32 %v2285_v2, 16  ;;  %v2518_v17 = vshrl.u32 %v2286_v3, 16  ;;  %v1412_v19 = vpack.c.b16 %v1390_v7, %v1389_v6  ;;  %v2289_v50 = vld [vmem:[#allocation2 + $0xb8] sm:$0xf]  ;;  %v735_v56 = vld [vmem:[#allocation2 + $0xb0] sm:$0x8]  ;;  %2140 = vmatpush.bf16.msrb.mxu3 %v6428_v51 }
 0x15e   : > { %v2480_v28 = vsel %vm7058_vm2, %v2472_v18, %v2479_v25  ;;  %v1388_v33 = vunpack.c.l.b16 %v950_v27  ;;  %v974_v20 = vshrl.u32 %v732_v12, 16  ;;  %v981_v22 = vrot.slane %v979_v8, 7 }
 0x15f   : > { %v2689_v35 = vunpack.c.l.b16 %v2480_v28  ;;  %v982_v23 = vshll.u32 %v733_v4, 16  ;;  %v2714_v24 = vpack.c.b16 %v2691_v11, %v2690_v10  ;;  %v990_v25 = vrot.slane %v988_v13, 7 }
 0x160   : > { %v1411_v40 = vpack.c.b16 %v1388_v33, %v1387_v32  ;;  %v991_v26 = vshll.u32 %v734_v1, 16  ;;  %v2504_v27 = vshrl.u32 %v2284_v15, 16  ;;  %v2511_v28 = vrot.slane %v2509_v16, 7 }
 0x161   : > { %v2713_v41 = vpack.c.b16 %v2689_v35, %v2688_v34  ;;  %v2512_v29 = vshll.u32 %v2285_v2, 16  ;;  %v2520_v30 = vrot.slane %v2518_v17, 7  ;;  %v2521_v31 = vshll.u32 %v2286_v3, 16 }
 0x162   : > { %1531 = vmatmul.bf16.gmra.mxu2 %v1411_v40  ;;  %v5845_v32 = vrot.slane %v974_v20, 11  ;;  %v984_v33 = vor.u32 %v982_v23, %v981_v22  ;;  %v986_v34 = vrot.slane %v981_v22, 4  ;;  %v993_v35 = vor.u32 %v991_v26, %v990_v25 }
 0x163   : > { %2829 = vmatmul.bf16.gmra.mxu0 %v2713_v41  ;;  %v1296_v52 = vpop.f32.mrf.mxu1  ;;  %v6020_v38 = vrot.slane %v2504_v27, 11  ;;  %v2514_v39 = vor.u32 %v2512_v29, %v2511_v28  ;;  %v2516_v40 = vrot.slane %v2511_v28, 4  ;;  %v2523_v41 = vor.u32 %v2521_v31, %v2520_v30 }
 0x164   : > { %v985_v48 = vsel %vm7058_vm2, %v5845_v32, %v984_v33  ;;  %v994_v53 = vsel %vm7058_vm2, %v986_v34, %v993_v35  ;;  %v1001_v55 = vshrl.u32 %v736_v45, 16  ;;  %v2531_v59 = vshrl.u32 %v2288_v49, 16  ;;  %v6404_v33 = vld [vmem:[#allocation2 + $0xb4] sm:$0xff]  ;;  %v6436_v34 = vld [vmem:[#allocation2 + $0x44] sm:$0xff] }
 0x165   : > { %v2524_v54 = vsel %vm7058_vm2, %v2516_v40, %v2523_v41  ;;  %v2540_v60 = vshrl.u32 %v2289_v50, 16  ;;  %v1391_v4 = vunpack.c.l.b16 %v985_v48  ;;  %v1392_v62 = vunpack.c.l.b16 %v994_v53  ;;  %v739_v41 = vld [vmem:[#allocation2 + $0xc4] sm:$0xf]  ;;  %v2292_v48 = vld [vmem:[#allocation2 + $0xc8] sm:$0xf] }
 0x166   : > { %1335 = vmatmul.bf16.gmra.mxu3 %v6402_v57  ;;  %3081 = vmatmul.bf16.gmra.mxu1 %v6434_v58  ;;  %v1010_v57 = vshrl.u32 %v737_v47, 16  ;;  %v2287_v58 = vld [vmem:[#allocation2 + $0xb0] sm:$0x8]  ;;  %v2693_v0 = vunpack.c.l.b16 %v2524_v54  ;;  %v996_v3 = vshrl.u32 %v735_v56, 16  ;;  %v1003_v6 = vrot.slane %v1001_v55, 7 }
 0x167   : > { %v1004_v7 = vshll.u32 %v736_v45, 16  ;;  %v1013_v11 = vshll.u32 %v737_v47, 16  ;;  %v2526_v12 = vshrl.u32 %v2287_v58, 16  ;;  %v2533_v15 = vrot.slane %v2531_v59, 7  ;;  %v2291_v47 = vld [vmem:[#allocation2 + $0xc4] sm:$0xf] }
 0x168   : > { %v1012_v10 = vrot.slane %v1010_v57, 7  ;;  %v2534_v16 = vshll.u32 %v2288_v49, 16  ;;  %v2542_v17 = vrot.slane %v2540_v60, 7  ;;  %v1413_v20 = vpack.c.b16 %v1392_v62, %v1391_v4  ;;  %v738_v53 = vld [vmem:[#allocation2 + $0xc0] sm:$0x8] }
 0x169   : > { %v5846_v23 = vrot.slane %v996_v3, 11  ;;  %v1008_v25 = vrot.slane %v1003_v6, 4  ;;  %v6021_v27 = vrot.slane %v2526_v12, 11  ;;  %v2538_v28 = vrot.slane %v2533_v15, 4  ;;  %v2290_v54 = vld [vmem:[#allocation2 + $0xc0] sm:$0x8] }
 0x16a   : > { %v1015_v26 = vor.u32 %v1013_v11, %v1012_v10  ;;  %v1023_v51 = vshrl.u32 %v739_v41, 16  ;;  %v2553_v55 = vshrl.u32 %v2291_v47, 16  ;;  %v2562_v56 = vshrl.u32 %v2292_v48, 16 }
 0x16b   : > { %v1298_v14 = vpop.f32.mrf.mxu1  ;;  %v1018_v62 = vshrl.u32 %v738_v53, 16  ;;  %v2556_v11 = vshll.u32 %v2291_v47, 16  ;;  %v2293_v53 = vld [vmem:[#allocation2 + $0xd0] sm:$0x8] }
 0x16c   : > { %v2555_v10 = vrot.slane %v2553_v55, 7  ;;  %v2564_v12 = vrot.slane %v2562_v56, 7 }
 0x170   : > { %v7198_v18 = vpop.f32.mrf.mxu0 }
 0x172   : > { %1536 = vmatmul.bf16.gmra.mxu2 %v1412_v19  ;;  %v2543_v19 = vshll.u32 %v2289_v50, 16 }
 0x173   : > { %2834 = vmatmul.bf16.gmra.mxu0 %v2714_v24  ;;  %v1301_v37 = vpop.f32.mrf.mxu1  ;;  %v1006_v24 = vor.u32 %v1004_v7, %v1003_v6  ;;  %v2548_v7 = vshrl.u32 %v2290_v54, 16 }
 0x174   : > { %v2545_v29 = vor.u32 %v2543_v19, %v2542_v17 }
 0x175   : > { %v1497_v36 = vpop.f32.mrf.mxu2  ;;  %v1007_v35 = vsel %vm7058_vm2, %v5846_v23, %v1006_v24  ;;  %v2560_v23 = vrot.slane %v2555_v10, 4 }
 0x176   : > { %v7200_v42 = vadd.f32 %v1497_v36, %v1296_v52  ;;  %1340 = vmatmul.bf16.gmra.mxu3 %v6403_v43  ;;  %3086 = vmatmul.bf16.gmra.mxu1 %v6435_v44  ;;  %v2515_v52 = vsel %vm7058_vm2, %v6020_v38, %v2514_v39  ;;  %v1016_v36 = vsel %vm7058_vm2, %v1008_v25, %v1015_v26  ;;  %v6427_v43 = vld [vmem:[#allocation8 + $0x90] sm:$0xff]  ;;  %v1393_v44 = vunpack.c.l.b16 %v1007_v35 }
 0x177   : > { %v2692_v63 = vunpack.c.l.b16 %v2515_v52  ;;  %v2546_v40 = vsel %vm7058_vm2, %v2538_v28, %v2545_v29  ;;  %v1394_v45 = vunpack.c.l.b16 %v1016_v36  ;;  %2141 = vmatpush.bf16.msrb.mxu3 %v6427_v43  ;;  %v6437_v28 = vld [vmem:[#allocation2 + $0x54] sm:$0xff]  ;;  %v6426_v36 = vld [vmem:[#allocation8 + $0x88] sm:$0xff] }
 0x178   : > { %v7202_v46 = vpop.f32.mrf.mxu0  ;;  %v2695_v50 = vunpack.c.l.b16 %v2546_v40 }
 0x179   : > { %v2715_v22 = vpack.c.b16 %v2693_v0, %v2692_v63  ;;  %v1414_v59 = vpack.c.b16 %v1394_v45, %v1393_v44  ;;  %v1025_v63 = vrot.slane %v1023_v51, 7 }
 0x17b   : > { %v1303_v2 = vpop.f32.mrf.mxu1  ;;  %v1030_v19 = vrot.slane %v1025_v63, 4  ;;  %2142 = vmatpush.bf16.msrb.mxu3 %v6426_v36 }
 0x17d   : > { %v1499_v1 = vpop.f32.mrf.mxu2 }
 0x17e   : > { %v7212_v8 = vadd.f32 %v1499_v1, %v1298_v14  ;;  %v2536_v14 = vor.u32 %v2534_v16, %v2533_v15  ;;  %v1026_v1 = vshll.u32 %v739_v41, 16  ;;  %v2565_v15 = vshll.u32 %v2292_v48, 16  ;;  %v2294_v41 = vld [vmem:[#allocation2 + $0xd4] sm:$0xf]  ;;  %v741_v48 = vld [vmem:[#allocation2 + $0xd0] sm:$0x8] }
 0x17f   : > { %v5847_v16 = vrot.slane %v1018_v62, 11 }
 0x180   : > { %v7214_v13 = vpop.f32.mrf.mxu0  ;;  %v2537_v39 = vsel %vm7058_vm2, %v6021_v27, %v2536_v14  ;;  %v1028_v17 = vor.u32 %v1026_v1, %v1025_v63  ;;  %v2567_v24 = vor.u32 %v2565_v15, %v2564_v12  ;;  %v6405_v14 = vld [vmem:[#allocation2 + $0xc4] sm:$0xff]  ;;  %v6472_v15 = vld [vmem:[#allocation8 + $0x178] sm:$0xff] }
 0x181   : > { %v2694_v49 = vunpack.c.l.b16 %v2537_v39  ;;  %v743_v39 = vld [vmem:[#allocation2 + $0xd8] sm:$0xf]  ;;  %3750 = vmatpush.bf16.msra.mxu2 %v6472_v15 }
 0x182   : > { %1541 = vmatmul.bf16.gmra.mxu2 %v1413_v20  ;;  %v6022_v20 = vrot.slane %v2548_v7, 11  ;;  %v2568_v35 = vsel %vm7058_vm2, %v2560_v23, %v2567_v24 }
 0x183   : > { %2839 = vmatmul.bf16.gmra.mxu0 %v2715_v22  ;;  %v1306_v31 = vpop.f32.mrf.mxu1  ;;  %v2716_v4 = vpack.c.b16 %v2695_v50, %v2694_v49  ;;  %v2558_v22 = vor.u32 %v2556_v11, %v2555_v10  ;;  %v2697_v45 = vunpack.c.l.b16 %v2568_v35  ;;  %v1054_v49 = vshrl.u32 %v743_v39, 16 }
 0x184   : > { %v2578_v10 = vshll.u32 %v2294_v41, 16 }
 0x185   : > { %v1502_v30 = vpop.f32.mrf.mxu2  ;;  %v1056_v1 = vrot.slane %v1054_v49, 7 }
 0x186   : > { %v7216_v32 = vadd.f32 %v1502_v30, %v1301_v37  ;;  %1345 = vmatmul.bf16.gmra.mxu3 %v6404_v33  ;;  %3091 = vmatmul.bf16.gmra.mxu1 %v6436_v34  ;;  %v740_v37 = vld [vmem:[#allocation2 + $0xc8] sm:$0xf]  ;;  %v1029_v30 = vsel %vm7058_vm2, %v5847_v16, %v1028_v17  ;;  %v2559_v34 = vsel %vm7058_vm2, %v6022_v20, %v2558_v22 }
 0x187   : > { %v1032_v52 = vshrl.u32 %v740_v37, 16  ;;  %v1035_v6 = vshll.u32 %v740_v37, 16  ;;  %v1395_v40 = vunpack.c.l.b16 %v1029_v30  ;;  %v2295_v37 = vld [vmem:[#allocation2 + $0xd8] sm:$0xf]  ;;  %v2696_v44 = vunpack.c.l.b16 %v2559_v34  ;;  %v6438_v22 = vld [vmem:[#allocation2 + $0x64] sm:$0xff] }
 0x188   : > { %v7222_v38 = vpop.f32.mrf.mxu0  ;;  %v2584_v54 = vshrl.u32 %v2295_v37, 16  ;;  %v2587_v12 = vshll.u32 %v2295_v37, 16  ;;  %v6406_v30 = vld [vmem:[#allocation2 + $0xd4] sm:$0xff]  ;;  %v746_v34 = vld [vmem:[#allocation2 + $0xe8] sm:$0xf]  ;;  %v6425_v37 = vld [vmem:[#allocation8 + $0x80] sm:$0xff] }
 0x189   : > { %v1034_v3 = vrot.slane %v1032_v52, 7  ;;  %v2575_v52 = vshrl.u32 %v2294_v41, 16  ;;  %v2298_v41 = vld [vmem:[#allocation2 + $0xe8] sm:$0xf]  ;;  %2143 = vmatpush.bf16.msrb.mxu3 %v6425_v37 }
 0x18a   : > { %v2586_v11 = vrot.slane %v2584_v54, 7 }
 0x18b   : > { %v1308_v58 = vpop.f32.mrf.mxu1  ;;  %v2577_v7 = vrot.slane %v2575_v52, 7  ;;  %v2606_v52 = vshrl.u32 %v2298_v41, 16 }
 0x18d   : > { %v1504_v57 = vpop.f32.mrf.mxu2  ;;  %v2580_v24 = vor.u32 %v2578_v10, %v2577_v7 }
 0x18e   : > { %v7228_v60 = vadd.f32 %v1504_v57, %v1303_v2  ;;  %v1037_v2 = vor.u32 %v1035_v6, %v1034_v3  ;;  %v1057_v3 = vshll.u32 %v743_v39, 16  ;;  %v2570_v6 = vshrl.u32 %v2293_v53, 16 }
 0x190   : > { %v7230_v0 = vpop.f32.mrf.mxu0  ;;  %v1038_v33 = vsel %vm7058_vm2, %v1030_v19, %v1037_v2  ;;  %v1059_v19 = vor.u32 %v1057_v3, %v1056_v1  ;;  %v6023_v23 = vrot.slane %v2570_v6, 11 }
 0x191   : > { %v1396_v43 = vunpack.c.l.b16 %v1038_v33  ;;  %v745_v33 = vld [vmem:[#allocation2 + $0xe4] sm:$0xf] }
 0x192   : > { %1546 = vmatmul.bf16.gmra.mxu2 %v1414_v59  ;;  %v2717_v59 = vpack.c.b16 %v2697_v45, %v2696_v44  ;;  %v744_v44 = vld [vmem:[#allocation2 + $0xe0] sm:$0x8]  ;;  %v1067_v45 = vshrl.u32 %v745_v33, 16  ;;  %v1070_v3 = vshll.u32 %v745_v33, 16 }
 0x193   : > { %2844 = vmatmul.bf16.gmra.mxu0 %v2716_v4  ;;  %v1311_v26 = vpop.f32.mrf.mxu1  ;;  %v1415_v57 = vpack.c.b16 %v1396_v43, %v1395_v40  ;;  %v1040_v4 = vshrl.u32 %v741_v48, 16  ;;  %v2297_v40 = vld [vmem:[#allocation2 + $0xe4] sm:$0xf]  ;;  %v6470_v48 = vld [vmem:[#allocation8 + $0x168] sm:$0xff] }
 0x194   : > { %v2597_v53 = vshrl.u32 %v2297_v40, 16  ;;  %v1069_v1 = vrot.slane %v1067_v45, 7  ;;  %v2600_v15 = vshll.u32 %v2297_v40, 16 }
 0x195   : > { %v1507_v25 = vpop.f32.mrf.mxu2  ;;  %v5848_v16 = vrot.slane %v1040_v4, 11  ;;  %v1062_v4 = vshrl.u32 %v744_v44, 16  ;;  %v6439_v44 = vld [vmem:[#allocation2 + $0x74] sm:$0xff] }
 0x196   : > { %v7232_v27 = vadd.f32 %v1507_v25, %v1306_v31  ;;  %1350 = vmatmul.bf16.gmra.mxu3 %v6405_v14  ;;  %3096 = vmatmul.bf16.gmra.mxu1 %v6437_v28  ;;  %v742_v31 = vld [vmem:[#allocation2 + $0xd4] sm:$0xf]  ;;  %v2582_v25 = vrot.slane %v2577_v7, 4  ;;  %v2589_v14 = vor.u32 %v2587_v12, %v2586_v11  ;;  %v1079_v7 = vshll.u32 %v746_v34, 16 }
 0x197   : > { %v1045_v47 = vshrl.u32 %v742_v31, 16  ;;  %v1048_v63 = vshll.u32 %v742_v31, 16  ;;  %v6471_v31 = vld [vmem:[#allocation8 + $0x170] sm:$0xff]  ;;  %v2599_v12 = vrot.slane %v2597_v53, 7 }
 0x198   : > { %v7234_v29 = vpop.f32.mrf.mxu0  ;;  %v2590_v43 = vsel %vm7058_vm2, %v2582_v25, %v2589_v14  ;;  %3751 = vmatpush.bf16.msra.mxu2 %v6471_v31  ;;  %v1074_v25 = vrot.slane %v1069_v1, 4 }
 0x199   : > { %v1047_v62 = vrot.slane %v1045_v47, 7  ;;  %v1076_v47 = vshrl.u32 %v746_v34, 16  ;;  %v2602_v34 = vor.u32 %v2600_v15, %v2599_v12  ;;  %v2604_v31 = vrot.slane %v2599_v12, 4  ;;  %v1573_v12 = vld [vmem:[#allocation2 + $0x8] sm:$0xf] }
 0x19a   : > { %v747_v15 = vld [vmem:[#allocation2 + $0xf0] sm:$0x8] }
 0x19b   : > { %v7244_v51 = vpop.f32.mrf.mxu1  ;;  %v1052_v17 = vrot.slane %v1047_v62, 4  ;;  %v1078_v6 = vrot.slane %v1076_v47, 7 }
 0x19c   : > { %3752 = vmatpush.bf16.msra.mxu2 %v6470_v48  ;;  %v7284_v48 = vld [vmem:[#allocation2 + $0xf4] sm:$0xf] }
 0x19d   : > { %v1509_v50 = vpop.f32.mrf.mxu2  ;;  %v1060_v39 = vsel %vm7058_vm2, %v1052_v17, %v1059_v19  ;;  %v6469_v17 = vld [vmem:[#allocation8 + $0x160] sm:$0xff]  ;;  %v1081_v14 = vor.u32 %v1079_v7, %v1078_v6  ;;  %v1089_v7 = vshrl.u32 %v7284_v48, 16 }
 0x19e   : > { %v7246_v55 = vadd.f32 %v1509_v50, %v1308_v58  ;;  %v1050_v58 = vor.u32 %v1048_v63, %v1047_v62  ;;  %v2296_v50 = vld [vmem:[#allocation2 + $0xe0] sm:$0x8]  ;;  %v1398_v54 = vunpack.c.l.b16 %v1060_v39 }
 0x19f   : > { %v2592_v11 = vshrl.u32 %v2296_v50, 16  ;;  %v1082_v37 = vsel %vm7058_vm2, %v1074_v25, %v1081_v14  ;;  %v6503_v50 = vld [vmem:[#allocation8 + $0x1f0] sm:$0xff] }
 0x1a0   : > { %v7248_v56 = vpop.f32.mrf.mxu0  ;;  %v1051_v36 = vsel %vm7058_vm2, %v5848_v16, %v1050_v58  ;;  %v2608_v16 = vrot.slane %v2606_v52, 7  ;;  %v2609_v58 = vshll.u32 %v2298_v41, 16  ;;  %3753 = vmatpush.bf16.msra.mxu2 %v6469_v17  ;;  %v1400_v52 = vunpack.c.l.b16 %v1082_v37  ;;  %v2299_v17 = vld [vmem:[#allocation2 + $0xf0] sm:$0x8] }
 0x1a1   : > { %v1397_v49 = vunpack.c.l.b16 %v1051_v36  ;;  %v6024_v33 = vrot.slane %v2592_v11, 11  ;;  %v1572_v11 = vld [vmem:[#allocation2 + $0x4] sm:$0xf] }
 0x1a2   : > { %1551 = vmatmul.bf16.gmra.mxu2 %v1415_v57  ;;  %v2611_v36 = vor.u32 %v2609_v58, %v2608_v16  ;;  %v1624_v25 = vshrl.u32 %v1572_v11, 16  ;;  %v1627_v14 = vshll.u32 %v1572_v11, 16 }
 0x1a3   : > { %2849 = vmatmul.bf16.gmra.mxu0 %v2717_v59  ;;  %v7250_v20 = vpop.f32.mrf.mxu1  ;;  %v2699_v59 = vunpack.c.l.b16 %v2590_v43  ;;  %v6407_v43 = vld [vmem:[#allocation2 + $0xe4] sm:$0xff]  ;;  %v2603_v45 = vsel %vm7058_vm2, %v6024_v33, %v2602_v34 }
 0x1a4   : > { %v2612_v47 = vsel %vm7058_vm2, %v2604_v31, %v2611_v36  ;;  %v1084_v31 = vshrl.u32 %v747_v15, 16  ;;  %v1091_v36 = vrot.slane %v1089_v7, 7 }
 0x1a5   : > { %v1512_v2 = vpop.f32.mrf.mxu2  ;;  %v2701_v6 = vunpack.c.l.b16 %v2612_v47 }
 0x1a6   : > { %v7252_v28 = vadd.f32 %v1512_v2, %v1311_v26  ;;  %1355 = vmatmul.bf16.gmra.mxu3 %v6406_v30  ;;  %3101 = vmatmul.bf16.gmra.mxu1 %v6438_v22  ;;  %v2581_v26 = vsel %vm7058_vm2, %v6023_v23, %v2580_v24  ;;  %v1416_v2 = vpack.c.b16 %v1398_v54, %v1397_v49  ;;  %v5849_v23 = vrot.slane %v1062_v4, 11  ;;  %v6468_v30 = vld [vmem:[#allocation8 + $0x158] sm:$0xff]  ;;  %v6467_v49 = vld [vmem:[#allocation8 + $0x150] sm:$0xff]  ;;  %v6466_v4 = vld [vmem:[#allocation8 + $0x148] sm:$0xff] }
 0x1a7   : > { %v2698_v57 = vunpack.c.l.b16 %v2581_v26  ;;  %v1072_v24 = vor.u32 %v1070_v3, %v1069_v1  ;;  %3754 = vmatpush.bf16.msra.mxu2 %v6468_v30  ;;  %v749_v54 = vld [vmem:[#allocation2 + $0xf8] sm:$0xf]  ;;  %v2700_v3 = vunpack.c.l.b16 %v2603_v45  ;;  %v1633_v30 = vshll.u32 %v1573_v12, 16  ;;  %v6501_v45 = vld [vmem:[#allocation8 + $0x1e0] sm:$0xff] }
 0x1a8   : > { %8351 = vst [vmem:[#allocation14_spill] sm:$0xff] %v7252_v28  ;;  %v7254_v35 = vpop.f32.mrf.mxu0  ;;  %v1098_v16 = vshrl.u32 %v749_v54, 16  ;;  %v1101_v37 = vshll.u32 %v749_v54, 16  ;;  %v6512_v54 = vld [vmem:[#allocation8 + $0x238] sm:$0xff]  ;;  %v1096_v7 = vrot.slane %v1091_v36, 4 }
 0x1a9   : > { %8352 = vst [vmem:[#allocation15_spill] sm:$0xff] %v7254_v35  ;;  %v2718_v22 = vpack.c.b16 %v2699_v59, %v2698_v57  ;;  %v1073_v41 = vsel %vm7058_vm2, %v5849_v23, %v1072_v24  ;;  %v2300_v57 = vld [vmem:[#allocation2 + $0xf4] sm:$0xf]  ;;  %v7286_v59 = vld [vmem:[#allocation2 + $0xf8] sm:$0xf]  ;;  %v2719_v34 = vpack.c.b16 %v2701_v6, %v2700_v3  ;;  %v5850_v3 = vrot.slane %v1084_v31, 11  ;;  %5365 = vmatpush.bf16.msra.mxu1 %v6512_v54 }
 0x1aa   : > { %v1399_v53 = vunpack.c.l.b16 %v1073_v41  ;;  %v1100_v41 = vrot.slane %v1098_v16, 7  ;;  %v3190_v16 = vld [vmem:[#allocation2 + $0x18] sm:$0xf] }
 0x1ab   : > { %v7264_v63 = vpop.f32.mrf.mxu1  ;;  %3755 = vmatpush.bf16.msra.mxu2 %v6467_v49  ;;  %v2622_v49 = vshll.u32 %v2300_v57, 16  ;;  %v3247_v31 = vshll.u32 %v3190_v16, 16  ;;  %v1576_v54 = vld [vmem:[#allocation2 + $0x18] sm:$0xf] }
 0x1ac   : > { %v1417_v58 = vpack.c.b16 %v1400_v52, %v1399_v53  ;;  %v2631_v53 = vshll.u32 %v7286_v59, 16  ;;  %v1626_v52 = vrot.slane %v1624_v25, 4 }
 0x1ad   : > { %v1514_v62 = vpop.f32.mrf.mxu2 }
 0x1ae   : > { %v7267_v10 = vadd.f32 %v1514_v62, %v7244_v51  ;;  %v6504_v51 = vld [vmem:[#allocation8 + $0x1f8] sm:$0xff]  ;;  %v6502_v62 = vld [vmem:[#allocation8 + $0x1e8] sm:$0xff] }
 0x1af   : > { %4683 = vmatpush.bf16.msra.mxu0 %v6504_v51  ;;  %v1637_v51 = vshrl.u32 %v1573_v12, 16  ;;  %3756 = vmatpush.bf16.msra.mxu2 %v6466_v4  ;;  %v7299_v4 = vrot.slane %v1633_v30, 5  ;;  %v6408_v30 = vld [vmem:[#allocation2 + $0xf4] sm:$0xff] }
 0x1b0   : > { %8353 = vst [vmem:[#allocation16_spill] sm:$0xff] %v7267_v10  ;;  %v7269_v19 = vpop.f32.mrf.mxu0 }
 0x1b1   : > { %8354 = vst [vmem:[#allocation17_spill] sm:$0xff] %v7269_v19 }
 0x1b2   : > { %1556 = vmatmul.bf16.gmra.mxu2 %v1416_v2  ;;  %v2619_v2 = vshrl.u32 %v2300_v57, 16  ;;  %v1103_v57 = vor.u32 %v1101_v37, %v1100_v41 }
 0x1b3   : > { %2854 = vmatmul.bf16.gmra.mxu0 %v2718_v22  ;;  %v7271_v40 = vpop.f32.mrf.mxu1  ;;  %v2628_v22 = vshrl.u32 %v7286_v59, 16 }
 0x1b4   : > { %4684 = vmatpush.bf16.msra.mxu0 %v6503_v50  ;;  %v2621_v47 = vrot.slane %v2619_v2, 7  ;;  %v1104_v41 = vsel %vm7058_vm2, %v1096_v7, %v1103_v57 }
 0x1b5   : > { %v1517_v39 = vpop.f32.mrf.mxu2  ;;  %v2630_v50 = vrot.slane %v2628_v22, 7 }
 0x1b6   : > { %v7278_v26 = vadd.f32 %v1517_v39, %v7250_v20  ;;  %1360 = vmatmul.bf16.gmra.mxu3 %v6407_v43  ;;  %3106 = vmatmul.bf16.gmra.mxu1 %v6439_v44  ;;  %v6496_v20 = vld [vmem:[#allocation8 + $0x1b8] sm:$0xff]  ;;  %v1092_v39 = vshll.u32 %v7284_v48, 16  ;;  %v2614_v43 = vshrl.u32 %v2299_v17, 16  ;;  %v6465_v44 = vld [vmem:[#allocation8 + $0x140] sm:$0xff]  ;;  %v1574_v48 = vld [vmem:[#allocation2 + $0xc] sm:$0x1]  ;;  %v2624_v59 = vor.u32 %v2622_v49, %v2621_v47 }
 0x1b7   : > { %4401 = vmatpush.bf16.msra.mxu3 %v6496_v20  ;;  %v1629_v20 = vrot.slane %v1627_v14, 5  ;;  %3757 = vmatpush.bf16.msra.mxu2 %v6465_v44  ;;  %v2626_v15 = vrot.slane %v2621_v47, 4  ;;  %v2633_v22 = vor.u32 %v2631_v53, %v2630_v50  ;;  %v1643_v25 = vshll.u32 %v1574_v48, 16  ;;  %v6498_v53 = vld [vmem:[#allocation8 + $0x1c8] sm:$0xff] }
 0x1b8   : > { %8355 = vst [vmem:[#allocation18_spill] sm:$0xff] %v7278_v26  ;;  %v7288_v1 = vpop.f32.mrf.mxu0  ;;  %4685 = vmatpush.bf16.msra.mxu0 %v6502_v62  ;;  %v6500_v62 = vld [vmem:[#allocation8 + $0x1d8] sm:$0xff]  ;;  %v1094_v6 = vor.u32 %v1092_v39, %v1091_v36  ;;  %v6025_v12 = vrot.slane %v2614_v43, 11  ;;  %v6499_v36 = vld [vmem:[#allocation8 + $0x1d0] sm:$0xff]  ;;  %v2304_v43 = vld [vmem:[#allocation2 + $0x108] sm:$0xf] }
 0x1b9   : > { %8356 = vst [vmem:[#allocation19_spill] sm:$0xff] %v7288_v1  ;;  %v3251_v44 = vshrl.u32 %v3190_v16, 16  ;;  %v1645_v50 = vrot.slane %v1643_v25, 5  ;;  %v6478_v26 = vld [vmem:[#allocation2 + $0x74] sm:$0xff] }
 0x1ba   : > { %v1095_v39 = vsel %vm7058_vm2, %v5850_v3, %v1094_v6  ;;  %v2625_v37 = vsel %vm7058_vm2, %v6025_v12, %v2624_v59  ;;  %v1402_v6 = vunpack.c.l.b16 %v1104_v41 }
 0x1bb   : > { %v7292_v24 = vpop.f32.mrf.mxu1  ;;  %v1401_v3 = vunpack.c.l.b16 %v1095_v39  ;;  %v2702_v7 = vunpack.c.l.b16 %v2625_v37  ;;  %v1661_v39 = vshrl.u32 %v1576_v54, 16 }
 0x1bc   : > { %4686 = vmatpush.bf16.msra.mxu0 %v6501_v45  ;;  %v2634_v45 = vsel %vm7058_vm2, %v2626_v15, %v2633_v22  ;;  %v3191_v22 = vld [vmem:[#allocation2 + $0x1c] sm:$0x1] }
 0x1bd   : > { %v1519_v23 = vpop.f32.mrf.mxu2  ;;  %v2703_v57 = vunpack.c.l.b16 %v2634_v45  ;;  %v2653_v45 = vshll.u32 %v2304_v43, 16  ;;  %v3257_v1 = vshll.u32 %v3191_v22, 16  ;;  %v6441_v22 = vld [vmem:[#allocation2 + $0x94] sm:$0xff] }
 0x1be   : > { %v7295_v33 = vadd.f32 %v1519_v23, %v7264_v63  ;;  %v1639_v63 = vrot.slane %v1637_v51, 4  ;;  %v6440_v51 = vld [vmem:[#allocation2 + $0x84] sm:$0xff] }
 0x1c0   : > { %8357 = vst [vmem:[#allocation20_spill] sm:$0xff] %v7295_v33  ;;  %v7301_v11 = vpop.f32.mrf.mxu0  ;;  %v1640_v23 = vor.u32 %v1639_v63, %v7299_v4  ;;  %4687 = vmatpush.bf16.msra.mxu0 %v6500_v62  ;;  %v2302_v63 = vld [vmem:[#allocation2 + $0x100] sm:$0x8]  ;;  %v2650_v62 = vshrl.u32 %v2304_v43, 16 }
 0x1c1   : > { %8358 = vst [vmem:[#allocation21_spill] sm:$0xff] %v7301_v11 }
 0x1c2   : > { %1561 = vmatmul.bf16.gmra.mxu2 %v1417_v58  ;;  %v1630_v58 = vor.u32 %v1629_v20, %v1626_v52  ;;  %v1641_v49 = vrot.slane %v1640_v23, 4  ;;  %v3253_v23 = vrot.slane %v3251_v44, 4 }
 0x1c3   : > { %2859 = vmatmul.bf16.gmra.mxu0 %v2719_v34  ;;  %v7303_v2 = vpop.f32.mrf.mxu1  ;;  %v3189_v34 = vld [vmem:[#allocation2 + $0x14] sm:$0xf] }
 0x1c4   : > { %v1631_v47 = vrot.slane %v1630_v58, 4  ;;  %4688 = vmatpush.bf16.msra.mxu0 %v6499_v36  ;;  %v3238_v52 = vshrl.u32 %v3189_v34, 16  ;;  %v3241_v20 = vshll.u32 %v3189_v34, 16  ;;  %v7330_v58 = vrot.slane %v3247_v31, 5  ;;  %v1575_v34 = vld [vmem:[#allocation2 + $0x14] sm:$0xf] }
 0x1c5   : > { %v1522_v17 = vpop.f32.mrf.mxu2  ;;  %v1657_v36 = vshll.u32 %v1576_v54, 16 }
 0x1c6   : > { %v7307_v14 = vadd.f32 %v1522_v17, %v7271_v40  ;;  %1365 = vmatmul.bf16.gmra.mxu3 %v6408_v30  ;;  %3111 = vmatmul.bf16.gmra.mxu1 %v6440_v51  ;;  %v2303_v40 = vld [vmem:[#allocation2 + $0x104] sm:$0xf]  ;;  %v1636_v16 = vsel %vm7319_vm5, %v1631_v47, %v7299_v4  ;;  %v1646_v17 = vsel %vm7319_vm5, %v1641_v49, %v1645_v50  ;;  %v2636_v51 = vshrl.u32 %v2302_v63, 16 }
 0x1c7   : > { %v2641_v48 = vshrl.u32 %v2303_v40, 16  ;;  %v2644_v37 = vshll.u32 %v2303_v40, 16  ;;  %v2652_v4 = vrot.slane %v2650_v62, 7  ;;  %v6497_v47 = vld [vmem:[#allocation8 + $0x1c0] sm:$0xff]  ;;  %v1418_v49 = vpack.c.b16 %v1402_v6, %v1401_v3 }
 0x1c8   : > { %8359 = vst [vmem:[#allocation22_spill] sm:$0xff] %v7307_v14  ;;  %4689 = vmatpush.bf16.msra.mxu0 %v6498_v53  ;;  %v7332_v25 = vpop.f32.mrf.mxu0  ;;  %v2720_v50 = vpack.c.b16 %v2703_v57, %v2702_v7  ;;  %v2024_v31 = vunpack.c.l.b16 %v1636_v16  ;;  %v2025_v11 = vunpack.c.l.b16 %v1646_v17  ;;  %v3240_v44 = vrot.slane %v3238_v52, 4  ;;  %v1577_v7 = vld [vmem:[#allocation2 + $0x1c] sm:$0x1]  ;;  %v1598_v14 = vld [vmem:[#allocation2 + $0x8c] sm:$0x1] }
 0x1c9   : > { %8362 = vst [vmem:[#allocation23_spill] sm:$0xff] %v7332_v25  ;;  %v2643_v41 = vrot.slane %v2641_v48, 7  ;;  %v3243_v53 = vrot.slane %v3241_v20, 5  ;;  %v3254_v25 = vor.u32 %v3253_v23, %v7330_v58  ;;  %v1651_v63 = vshll.u32 %v1575_v34, 16 }
 0x1ca   : > { %v7338_v54 = vrot.slane %v1657_v36, 5  ;;  %v1663_v40 = vrot.slane %v1661_v39, 4  ;;  %v6026_v48 = vrot.slane %v2636_v51, 11  ;;  %v2655_v3 = vor.u32 %v2653_v45, %v2652_v4  ;;  %v3193_v36 = vld [vmem:[#allocation2 + $0x28] sm:$0xf] }
 0x1cb   : > { %v7323_v15 = vpop.f32.mrf.mxu1  ;;  %v2646_v43 = vor.u32 %v2644_v37, %v2643_v41  ;;  %v2648_v62 = vrot.slane %v2643_v41, 4  ;;  %v2056_v6 = vpack.c.b16 %v2025_v11, %v2024_v31  ;;  %v3244_v20 = vor.u32 %v3243_v53, %v3240_v44  ;;  %v3192_v31 = vld [vmem:[#allocation2 + $0x24] sm:$0xf] }
 0x1cc   : > { %4690 = vmatpush.bf16.msra.mxu0 %v6497_v47  ;;  %v3259_v16 = vrot.slane %v3257_v1, 5  ;;  %v1664_v39 = vor.u32 %v1663_v40, %v7338_v54  ;;  %v1667_v41 = vshll.u32 %v1577_v7, 16  ;;  %v6495_v1 = vld [vmem:[#allocation8 + $0x1b0] sm:$0xff]  ;;  %v3271_v4 = vshll.u32 %v3193_v36, 16 }
 0x1cd   : > { %v1524_v59 = vpop.f32.mrf.mxu2  ;;  %v2647_v51 = vsel %vm7058_vm2, %v6026_v48, %v2646_v43  ;;  %v2656_v11 = vsel %vm7058_vm2, %v2648_v62, %v2655_v3  ;;  %v3275_v45 = vshrl.u32 %v3193_v36, 16  ;;  %4402 = vmatpush.bf16.msra.mxu3 %v6495_v1  ;;  %v1579_v48 = vld [vmem:[#allocation2 + $0x28] sm:$0xf]  ;;  %v3262_v3 = vshrl.u32 %v3192_v31, 16 }
 0x1ce   : > { %v7335_v30 = vadd.f32 %v1524_v59, %v7292_v24  ;;  %v1648_v24 = vshrl.u32 %v1575_v34, 16  ;;  %v3255_v59 = vrot.slane %v3254_v25, 4  ;;  %v1653_v34 = vrot.slane %v1651_v63, 5 }
 0x1cf   : > { %v2704_v47 = vunpack.c.l.b16 %v2647_v51  ;;  %v1669_v63 = vrot.slane %v1667_v41, 5  ;;  %v7359_v7 = vrot.slane %v3271_v4, 5  ;;  %v1681_v36 = vshll.u32 %v1579_v48, 16 }
 0x1d0   : > { %8363 = vst [vmem:[#allocation24_spill] sm:$0xff] %v7335_v30  ;;  %v1650_v23 = vrot.slane %v1648_v24, 4  ;;  %v7350_v37 = vpop.f32.mrf.mxu0  ;;  %v3260_v25 = vsel %vm7319_vm5, %v3255_v59, %v3259_v16  ;;  %v1665_v24 = vrot.slane %v1664_v39, 4  ;;  %v1685_v51 = vshrl.u32 %v1579_v48, 16 }
 0x1d1   : > { %8365 = vst [vmem:[#allocation26_spill] sm:$0xff] %v7350_v37  ;;  %v3639_v40 = vunpack.c.l.b16 %v3260_v25  ;;  %v3264_v41 = vrot.slane %v3262_v3, 4 }
 0x1d2   : > { %1566 = vmatmul.bf16.gmra.mxu2 %v1418_v49  ;;  %v2705_v49 = vunpack.c.l.b16 %v2656_v11 }
 0x1d3   : > { %2864 = vmatmul.bf16.gmra.mxu0 %v2720_v50  ;;  %v7340_v52 = vpop.f32.mrf.mxu1  ;;  %v1654_v50 = vor.u32 %v1653_v34, %v1650_v23  ;;  %v3194_v23 = vld [vmem:[#allocation2 + $0x2c] sm:$0x1]  ;;  %v1578_v34 = vld [vmem:[#allocation2 + $0x24] sm:$0xf] }
 0x1d4   : > { %v2721_v59 = vpack.c.b16 %v2705_v49, %v2704_v47  ;;  %v1675_v47 = vshll.u32 %v1578_v34, 16  ;;  %v6511_v49 = vld [vmem:[#allocation8 + $0x230] sm:$0xff] }
 0x1d5   : > { %v1527_v57 = vpop.f32.mrf.mxu2  ;;  %5366 = vmatpush.bf16.msra.mxu1 %v6511_v49  ;;  %v1582_v49 = vld [vmem:[#allocation2 + $0x38] sm:$0xf] }
 0x1d6   : > { %v7343_v17 = vadd.f32 %v1527_v57, %v7303_v2  ;;  %2144 = vmatmul.bf16.vlgmr.msrb.gmra.mxu3 %v2056_v6  ;;  %3116 = vmatmul.bf16.gmra.mxu1 %v6441_v22  ;;  %v3245_v2 = vrot.slane %v3244_v20, 4  ;;  %v3265_v6 = vshll.u32 %v3192_v31, 16  ;;  %v3277_v57 = vrot.slane %v3275_v45, 4 }
 0x1d7   : > { %v1655_v22 = vrot.slane %v1654_v50, 4  ;;  %v1672_v45 = vshrl.u32 %v1578_v34, 16  ;;  %v1683_v31 = vrot.slane %v1681_v36, 5 }
 0x1d8   : > { %8364 = vst [vmem:[#allocation25_spill] sm:$0xff] %v7343_v17  ;;  %v3250_v53 = vsel %vm7319_vm5, %v3245_v2, %v7330_v58  ;;  %v1670_v58 = vsel %vm7319_vm5, %v1665_v24, %v1669_v63  ;;  %v3267_v1 = vrot.slane %v3265_v6, 5  ;;  %v3281_v2 = vshll.u32 %v3194_v23, 16  ;;  %v7370_v25 = vpop.f32.mrf.mxu0  ;;  %v1580_v63 = vld [vmem:[#allocation2 + $0x2c] sm:$0x1]  ;;  %v6447_v17 = vld [vmem:[#allocation2 + $0xf4] sm:$0xff] }
 0x1d9   : > { %v1331_v44 = vpop.f32.mrf.mxu3  ;;  %v3638_v16 = vunpack.c.l.b16 %v3250_v53  ;;  %v1660_v39 = vsel %vm7319_vm5, %v1655_v22, %v7338_v54  ;;  %8367 = vst [vmem:[#allocation28_spill] sm:$0xff] %v7370_v25  ;;  %v2027_v4 = vunpack.c.l.b16 %v1670_v58  ;;  %v1687_v53 = vrot.slane %v1685_v51, 4  ;;  %v3196_v23 = vld [vmem:[#allocation2 + $0x38] sm:$0xf] }
 0x1da   : > { %v2026_v24 = vunpack.c.l.b16 %v1660_v39  ;;  %v3268_v48 = vor.u32 %v3267_v1, %v3264_v41  ;;  %v3283_v3 = vrot.slane %v3281_v2, 5  ;;  %v1677_v22 = vrot.slane %v1675_v47, 5  ;;  %v3195_v1 = vld [vmem:[#allocation2 + $0x34] sm:$0xf] }
 0x1db   : > { %v7357_v62 = vpop.f32.mrf.mxu1  ;;  %v3670_v11 = vpack.c.b16 %v3639_v40, %v3638_v16  ;;  %v1674_v16 = vrot.slane %v1672_v45, 4  ;;  %v1688_v58 = vor.u32 %v1687_v53, %v1683_v31  ;;  %v1691_v34 = vshll.u32 %v1580_v63, 16 }
 0x1dc   : > { %v3269_v36 = vrot.slane %v3268_v48, 4  ;;  %v3299_v39 = vshrl.u32 %v3196_v23, 16  ;;  %v3286_v63 = vshrl.u32 %v3195_v1, 16 }
 0x1dd   : > { %v1529_v43 = vpop.f32.mrf.mxu2  ;;  %v1678_v41 = vor.u32 %v1677_v22, %v1674_v16  ;;  %v1689_v2 = vrot.slane %v1688_v58, 4  ;;  %v3197_v16 = vld [vmem:[#allocation2 + $0x3c] sm:$0x1]  ;;  %v1581_v22 = vld [vmem:[#allocation2 + $0x34] sm:$0xf]  ;;  %v1709_v58 = vshrl.u32 %v1582_v49, 16 }
 0x1de   : > { %v7362_v20 = vadd.f32 %v1529_v43, %v7323_v15  ;;  %v3278_v15 = vor.u32 %v3277_v57, %v7359_v7  ;;  %v2057_v57 = vpack.c.b16 %v2027_v4, %v2026_v24  ;;  %v1693_v4 = vrot.slane %v1691_v34, 5 }
 0x1e0   : > { %8366 = vst [vmem:[#allocation27_spill] sm:$0xff] %v7362_v20  ;;  %v3279_v43 = vrot.slane %v3278_v15, 4  ;;  %v7381_v45 = vpop.f32.mrf.mxu0 }
 0x1e1   : > { %v1333_v50 = vpop.f32.mrf.mxu3  ;;  %8369 = vst [vmem:[#allocation30_spill] sm:$0xff] %v7381_v45 }
 0x1e2   : > { %3758 = vmatmul.bf16.vlgmr.msra.gmra.mxu2 %v3670_v11  ;;  %v3284_v51 = vsel %vm7319_vm5, %v3279_v43, %v3283_v3  ;;  %v3295_v11 = vshll.u32 %v3196_v23, 16  ;;  %v3301_v43 = vrot.slane %v3299_v39, 4  ;;  %v1705_v23 = vshll.u32 %v1582_v49, 16 }
 0x1e3   : > { %2869 = vmatmul.bf16.gmra.mxu0 %v2721_v59  ;;  %v7372_v40 = vpop.f32.mrf.mxu1  ;;  %v6442_v59 = vld [vmem:[#allocation2 + $0xa4] sm:$0xff]  ;;  %v3641_v47 = vunpack.c.l.b16 %v3284_v51 }
 0x1e4   : > { %v7385_v48 = vrot.slane %v3295_v11, 5 }
 0x1e5   : > { %v1532_v54 = vpop.f32.mrf.mxu2 }
 0x1e6   : > { %v7374_v6 = vadd.f32 %v1532_v54, %v1331_v44  ;;  %2149 = vmatmul.bf16.gmra.mxu3 %v2057_v57  ;;  %3121 = vmatmul.bf16.gmra.mxu1 %v6442_v59  ;;  %v3274_v44 = vsel %vm7319_vm5, %v3269_v36, %v7359_v7  ;;  %v3289_v54 = vshll.u32 %v3195_v1, 16  ;;  %v1679_v59 = vrot.slane %v1678_v41, 4  ;;  %v6473_v36 = vld [vmem:[#allocation2 + $0x24] sm:$0xff] }
 0x1e7   : > { %v3640_v57 = vunpack.c.l.b16 %v3274_v44  ;;  %v1694_v7 = vsel %vm7319_vm5, %v1689_v2, %v1693_v4  ;;  %v3288_v1 = vrot.slane %v3286_v63, 4  ;;  %v3302_v39 = vor.u32 %v3301_v43, %v7385_v48 }
 0x1e8   : > { %8368 = vst [vmem:[#allocation29_spill] sm:$0xff] %v7374_v6  ;;  %v1684_v51 = vsel %vm7319_vm5, %v1679_v59, %v1683_v31  ;;  %v3291_v11 = vrot.slane %v3289_v54, 5  ;;  %v2029_v41 = vunpack.c.l.b16 %v1694_v7  ;;  %v1696_v44 = vshrl.u32 %v1581_v22, 16  ;;  %v7398_v59 = vpop.f32.mrf.mxu0  ;;  %v6443_v7 = vld [vmem:[#allocation2 + $0xb4] sm:$0xff] }
 0x1e9   : > { %v1336_v15 = vpop.f32.mrf.mxu3  ;;  %v3671_v34 = vpack.c.b16 %v3641_v47, %v3640_v57  ;;  %v7394_v2 = vrot.slane %v1705_v23, 5  ;;  %v1711_v4 = vrot.slane %v1709_v58, 4  ;;  %v2028_v49 = vunpack.c.l.b16 %v1684_v51  ;;  %v1583_v47 = vld [vmem:[#allocation2 + $0x3c] sm:$0x1]  ;;  %8371 = vst [vmem:[#allocation32_spill] sm:$0xff] %v7398_v59  ;;  %v6494_v51 = vld [vmem:[#allocation8 + $0x1a8] sm:$0xff] }
 0x1ea   : > { %v3292_v31 = vor.u32 %v3291_v11, %v3288_v1  ;;  %v3303_v63 = vrot.slane %v3302_v39, 4  ;;  %v1715_v58 = vshll.u32 %v1583_v47, 16  ;;  %4403 = vmatpush.bf16.msra.mxu3 %v6494_v51  ;;  %v1585_v47 = vld [vmem:[#allocation2 + $0x48] sm:$0xf]  ;;  %v3200_v51 = vld [vmem:[#allocation2 + $0x4c] sm:$0x1] }
 0x1eb   : > { %v7383_v24 = vpop.f32.mrf.mxu1  ;;  %v1712_v23 = vor.u32 %v1711_v4, %v7394_v2  ;;  %v6474_v59 = vld [vmem:[#allocation2 + $0x34] sm:$0xff] }
 0x1ec   : > { %v3293_v37 = vrot.slane %v3292_v31, 4  ;;  %v1717_v4 = vrot.slane %v1715_v58, 5 }
 0x1ed   : > { %v1534_v53 = vpop.f32.mrf.mxu2 }
 0x1ee   : > { %v7387_v3 = vadd.f32 %v1534_v53, %v1333_v50  ;;  %v3305_v50 = vshll.u32 %v3197_v16, 16  ;;  %v1699_v53 = vshll.u32 %v1581_v22, 16  ;;  %v2058_v16 = vpack.c.b16 %v2029_v41, %v2028_v49 }
 0x1f0   : > { %8370 = vst [vmem:[#allocation31_spill] sm:$0xff] %v7387_v3  ;;  %v3307_v54 = vrot.slane %v3305_v50, 5  ;;  %v1701_v22 = vrot.slane %v1699_v53, 5  ;;  %v1713_v53 = vrot.slane %v1712_v23, 4  ;;  %v1733_v23 = vshrl.u32 %v1585_v47, 16  ;;  %v7416_v58 = vpop.f32.mrf.mxu0 }
 0x1f1   : > { %v1338_v45 = vpop.f32.mrf.mxu3  ;;  %8374 = vst [vmem:[#allocation35_spill] sm:$0xff] %v7416_v58 }
 0x1f2   : > { %3763 = vmatmul.bf16.gmra.mxu2 %v3671_v34  ;;  %v1698_v34 = vrot.slane %v1696_v44, 4  ;;  %v3308_v1 = vsel %vm7319_vm5, %v3303_v63, %v3307_v54  ;;  %v3298_v44 = vsel %vm7319_vm5, %v3293_v37, %v7385_v48  ;;  %v1718_v37 = vsel %vm7319_vm5, %v1713_v53, %v1717_v4  ;;  %v6510_v53 = vld [vmem:[#allocation8 + $0x228] sm:$0xff] }
 0x1f3   : > { %4691 = vmatmul.bf16.vlgmr.msra.gmra.mxu0 %v6473_v36  ;;  %v7396_v25 = vpop.f32.mrf.mxu1  ;;  %v3199_v36 = vld [vmem:[#allocation2 + $0x48] sm:$0xf]  ;;  %v3643_v49 = vunpack.c.l.b16 %v3308_v1  ;;  %v1729_v48 = vshll.u32 %v1585_v47, 16  ;;  %5367 = vmatpush.bf16.msra.mxu1 %v6510_v53  ;;  %v3201_v53 = vld [vmem:[#allocation2 + $0x54] sm:$0xf] }
 0x1f4   : > { %v3319_v11 = vshll.u32 %v3199_v36, 16  ;;  %v3323_v39 = vshrl.u32 %v3199_v36, 16  ;;  %v1702_v50 = vor.u32 %v1701_v22, %v1698_v34  ;;  %v3642_v22 = vunpack.c.l.b16 %v3298_v44 }
 0x1f5   : > { %v1537_v57 = vpop.f32.mrf.mxu2  ;;  %v7422_v58 = vrot.slane %v1729_v48, 5 }
 0x1f6   : > { %v7400_v43 = vadd.f32 %v1537_v57, %v1336_v15  ;;  %2154 = vmatmul.bf16.gmra.mxu3 %v2058_v16  ;;  %3126 = vmatmul.bf16.gmra.mxu1 %v6443_v7  ;;  %v3198_v15 = vld [vmem:[#allocation2 + $0x44] sm:$0xf]  ;;  %v7410_v63 = vrot.slane %v3319_v11, 5  ;;  %v3325_v54 = vrot.slane %v3323_v39, 4  ;;  %v1703_v36 = vrot.slane %v1702_v50, 4 }
 0x1f7   : > { %v3310_v31 = vshrl.u32 %v3198_v15, 16  ;;  %v3313_v7 = vshll.u32 %v3198_v15, 16  ;;  %v3672_v1 = vpack.c.b16 %v3643_v49, %v3642_v22  ;;  %v1584_v15 = vld [vmem:[#allocation2 + $0x44] sm:$0xf]  ;;  %v3329_v50 = vshll.u32 %v3200_v51, 16 }
 0x1f8   : > { %8372 = vst [vmem:[#allocation33_spill] sm:$0xff] %v7400_v43  ;;  %v1708_v11 = vsel %vm7319_vm5, %v1703_v36, %v7394_v2  ;;  %v3326_v44 = vor.u32 %v3325_v54, %v7410_v63  ;;  %v1720_v47 = vshrl.u32 %v1584_v15, 16  ;;  %v1723_v19 = vshll.u32 %v1584_v15, 16 }
 0x1f9   : > { %v1341_v41 = vpop.f32.mrf.mxu3  ;;  %v3312_v39 = vrot.slane %v3310_v31, 4  ;;  %v1735_v49 = vrot.slane %v1733_v23, 4  ;;  %v2030_v22 = vunpack.c.l.b16 %v1708_v11  ;;  %v3331_v54 = vrot.slane %v3329_v50, 5 }
 0x1fa   : > { %v1722_v43 = vrot.slane %v1720_v47, 4  ;;  %v1725_v3 = vrot.slane %v1723_v19, 5 }
 0x1fb   : > { %v7408_v16 = vpop.f32.mrf.mxu1  ;;  %v1736_v48 = vor.u32 %v1735_v49, %v7422_v58  ;;  %v3334_v49 = vshrl.u32 %v3201_v53, 16 }
 0x1fc   : > { %v1726_v19 = vor.u32 %v1725_v3, %v1722_v43  ;;  %v1587_v3 = vld [vmem:[#allocation2 + $0x54] sm:$0xf] }
 0x1fd   : > { %v1539_v57 = vpop.f32.mrf.mxu2 }
 0x1fe   : > { %v7412_v34 = vadd.f32 %v1539_v57, %v1338_v45  ;;  %v3315_v45 = vrot.slane %v3313_v7, 5  ;;  %v2031_v57 = vunpack.c.l.b16 %v1718_v37  ;;  %v3327_v7 = vrot.slane %v3326_v44, 4  ;;  %v6444_v37 = vld [vmem:[#allocation2 + $0xc4] sm:$0xff]  ;;  %v7431_v44 = vpop.f32.mrf.mxu0 }
 0x1ff   : > { %8376 = vst [vmem:[#allocation37_spill] sm:$0xff] %v7431_v44  ;;  %v3203_v44 = vld [vmem:[#allocation2 + $0x5c] sm:$0x1] }
 0x200   : > { %8373 = vst [vmem:[#allocation34_spill] sm:$0xff] %v7412_v34  ;;  %v1586_v34 = vld [vmem:[#allocation2 + $0x4c] sm:$0x1]  ;;  %v3316_v31 = vor.u32 %v3315_v45, %v3312_v39  ;;  %v3332_v11 = vsel %vm7319_vm5, %v3327_v7, %v3331_v54 }
 0x201   : > { %v1343_v4 = vpop.f32.mrf.mxu3  ;;  %v1739_v15 = vshll.u32 %v1586_v34, 16  ;;  %v3645_v34 = vunpack.c.l.b16 %v3332_v11  ;;  %v3336_v11 = vrot.slane %v3334_v49, 4 }
 0x202   : > { %3768 = vmatmul.bf16.gmra.mxu2 %v3672_v1  ;;  %v3202_v1 = vld [vmem:[#allocation2 + $0x58] sm:$0xf]  ;;  %v3317_v23 = vrot.slane %v3316_v31, 4 }
 0x203   : > { %4696 = vmatmul.bf16.gmra.mxu0 %v6474_v59  ;;  %v7424_v36 = vpop.f32.mrf.mxu1  ;;  %v2059_v59 = vpack.c.b16 %v2031_v57, %v2030_v22  ;;  %v3343_v39 = vshll.u32 %v3202_v1, 16  ;;  %v3347_v45 = vshrl.u32 %v3202_v1, 16  ;;  %v1737_v57 = vrot.slane %v1736_v48, 4 }
 0x204   : > { %v3322_v50 = vsel %vm7319_vm5, %v3317_v23, %v7410_v63  ;;  %v1741_v47 = vrot.slane %v1739_v15, 5  ;;  %v3337_v22 = vshll.u32 %v3201_v53, 16  ;;  %v6475_v23 = vld [vmem:[#allocation2 + $0x44] sm:$0xff] }
 0x205   : > { %v1542_v2 = vpop.f32.mrf.mxu2  ;;  %v3345_v7 = vrot.slane %v3343_v39, 5  ;;  %v3349_v54 = vrot.slane %v3347_v45, 4  ;;  %v3644_v1 = vunpack.c.l.b16 %v3322_v50 }
 0x206   : > { %v7426_v51 = vadd.f32 %v1542_v2, %v1341_v41  ;;  %2159 = vmatmul.bf16.gmra.mxu3 %v2059_v59  ;;  %3131 = vmatmul.bf16.gmra.mxu1 %v6444_v37  ;;  %v1588_v2 = vld [vmem:[#allocation2 + $0x58] sm:$0xf]  ;;  %v1742_v63 = vsel %vm7319_vm5, %v1737_v57, %v1741_v47  ;;  %v3339_v53 = vrot.slane %v3337_v22, 5  ;;  %v1589_v22 = vld [vmem:[#allocation2 + $0x5c] sm:$0x1] }
 0x207   : > { %v1753_v43 = vshll.u32 %v1588_v2, 16  ;;  %v1757_v48 = vshrl.u32 %v1588_v2, 16  ;;  %v3673_v15 = vpack.c.b16 %v3645_v34, %v3644_v1  ;;  %v3350_v45 = vor.u32 %v3349_v54, %v3345_v7  ;;  %v7447_v2 = vpop.f32.mrf.mxu0  ;;  %v6445_v54 = vld [vmem:[#allocation2 + $0xd4] sm:$0xff] }
 0x208   : > { %8375 = vst [vmem:[#allocation36_spill] sm:$0xff] %v7426_v51  ;;  %v1727_v51 = vrot.slane %v1726_v19, 4  ;;  %v2033_v50 = vunpack.c.l.b16 %v1742_v63  ;;  %v1744_v19 = vshrl.u32 %v1587_v3, 16  ;;  %v3340_v49 = vor.u32 %v3339_v53, %v3336_v11  ;;  %v6493_v11 = vld [vmem:[#allocation8 + $0x1a0] sm:$0xff] }
 0x209   : > { %v1346_v41 = vpop.f32.mrf.mxu3  ;;  %v7445_v57 = vrot.slane %v1753_v43, 5  ;;  %v1759_v47 = vrot.slane %v1757_v48, 4  ;;  %8379 = vst [vmem:[#allocation40_spill] sm:$0xff] %v7447_v2  ;;  %v3351_v6 = vrot.slane %v3350_v45, 4  ;;  %v1763_v48 = vshll.u32 %v1589_v22, 16  ;;  %4404 = vmatpush.bf16.msra.mxu3 %v6493_v11 }
 0x20a   : > { %v1732_v39 = vsel %vm7319_vm5, %v1727_v51, %v7422_v58  ;;  %v1746_v63 = vrot.slane %v1744_v19, 4 }
 0x20b   : > { %v7436_v59 = vpop.f32.mrf.mxu1  ;;  %v2032_v34 = vunpack.c.l.b16 %v1732_v39  ;;  %v1760_v43 = vor.u32 %v1759_v47, %v7445_v57  ;;  %v3204_v39 = vld [vmem:[#allocation2 + $0x64] sm:$0xf]  ;;  %v1591_v47 = vld [vmem:[#allocation2 + $0x68] sm:$0xf] }
 0x20c   : > { %8377 = vst [vmem:[#allocation38_spill] sm:$0xff] %v7436_v59 }
 0x20d   : > { %v1544_v31 = vpop.f32.mrf.mxu2 }
 0x20e   : > { %v7438_v37 = vadd.f32 %v1544_v31, %v1343_v4  ;;  %v3353_v4 = vshll.u32 %v3203_v44, 16  ;;  %v1747_v31 = vshll.u32 %v1587_v3, 16  ;;  %v2060_v44 = vpack.c.b16 %v2033_v50, %v2032_v34 }
 0x20f   : > { %v1765_v34 = vrot.slane %v1763_v48, 5 }
 0x210   : > { %8378 = vst [vmem:[#allocation39_spill] sm:$0xff] %v7438_v37  ;;  %v3355_v20 = vrot.slane %v3353_v4, 5  ;;  %v1749_v3 = vrot.slane %v1747_v31, 5  ;;  %v1761_v31 = vrot.slane %v1760_v43, 4 }
 0x211   : > { %v1348_v37 = vpop.f32.mrf.mxu3 }
 0x212   : > { %3773 = vmatmul.bf16.gmra.mxu2 %v3673_v15  ;;  %v3205_v15 = vld [vmem:[#allocation2 + $0x68] sm:$0xf]  ;;  %v3356_v53 = vsel %vm7319_vm5, %v3351_v6, %v3355_v20  ;;  %v1750_v50 = vor.u32 %v1749_v3, %v1746_v63  ;;  %v1590_v6 = vld [vmem:[#allocation2 + $0x64] sm:$0xf]  ;;  %v3206_v63 = vld [vmem:[#allocation2 + $0x6c] sm:$0x1]  ;;  %v1766_v43 = vsel %vm7319_vm5, %v1761_v31, %v1765_v34 }
 0x213   : > { %4701 = vmatmul.bf16.gmra.mxu0 %v6475_v23  ;;  %v7451_v51 = vpop.f32.mrf.mxu1  ;;  %v3341_v23 = vrot.slane %v3340_v49, 4  ;;  %v3371_v45 = vshrl.u32 %v3205_v15, 16  ;;  %v3647_v22 = vunpack.c.l.b16 %v3356_v53  ;;  %v1777_v3 = vshll.u32 %v1591_v47, 16  ;;  %v6476_v53 = vld [vmem:[#allocation2 + $0x54] sm:$0xff]  ;;  %v6509_v34 = vld [vmem:[#allocation8 + $0x220] sm:$0xff] }
 0x214   : > { %8381 = vst [vmem:[#allocation42_spill] sm:$0xff] %v7451_v51  ;;  %v7460_v51 = vpop.f32.mrf.mxu0  ;;  %5368 = vmatpush.bf16.msra.mxu1 %v6509_v34 }
 0x215   : > { %v1547_v1 = vpop.f32.mrf.mxu2  ;;  %v3346_v4 = vsel %vm7319_vm5, %v3341_v23, %v3345_v7  ;;  %v3373_v20 = vrot.slane %v3371_v45, 4  ;;  %8382 = vst [vmem:[#allocation43_spill] sm:$0xff] %v7460_v51  ;;  %v1751_v7 = vrot.slane %v1750_v50, 4  ;;  %v1781_v23 = vshrl.u32 %v1591_v47, 16 }
 0x216   : > { %v7449_v58 = vadd.f32 %v1547_v1, %v1346_v41  ;;  %2164 = vmatmul.bf16.gmra.mxu3 %v2060_v44  ;;  %3136 = vmatmul.bf16.gmra.mxu1 %v6445_v54  ;;  %v3367_v41 = vshll.u32 %v3205_v15, 16  ;;  %v3358_v1 = vshrl.u32 %v3204_v39, 16  ;;  %v3361_v44 = vshll.u32 %v3204_v39, 16 }
 0x217   : > { %v3646_v54 = vunpack.c.l.b16 %v3346_v4  ;;  %v1756_v39 = vsel %vm7319_vm5, %v1751_v7, %v7445_v57  ;;  %v3377_v4 = vshll.u32 %v3206_v63, 16  ;;  %v1768_v50 = vshrl.u32 %v1590_v6, 16 }
 0x218   : > { %8380 = vst [vmem:[#allocation41_spill] sm:$0xff] %v7449_v58  ;;  %v7458_v2 = vrot.slane %v3367_v41, 5  ;;  %v3360_v41 = vrot.slane %v3358_v1, 4  ;;  %v3363_v45 = vrot.slane %v3361_v44, 5  ;;  %v2035_v47 = vunpack.c.l.b16 %v1766_v43  ;;  %v3208_v58 = vld [vmem:[#allocation2 + $0x78] sm:$0xf] }
 0x219   : > { %v1351_v19 = vpop.f32.mrf.mxu3  ;;  %v3674_v11 = vpack.c.b16 %v3647_v22, %v3646_v54  ;;  %v7472_v51 = vrot.slane %v1777_v3, 5  ;;  %v1783_v31 = vrot.slane %v1781_v23, 4  ;;  %v1592_v54 = vld [vmem:[#allocation2 + $0x6c] sm:$0x1]  ;;  %v3379_v44 = vrot.slane %v3377_v4, 5 }
 0x21a   : > { %v1787_v43 = vshll.u32 %v1592_v54, 16  ;;  %v3391_v23 = vshll.u32 %v3208_v58, 16  ;;  %v1594_v54 = vld [vmem:[#allocation2 + $0x78] sm:$0xf] }
 0x21b   : > { %v7466_v48 = vpop.f32.mrf.mxu1  ;;  %v1784_v3 = vor.u32 %v1783_v31, %v7472_v51 }
 0x21c   : > { %8384 = vst [vmem:[#allocation45_spill] sm:$0xff] %v7466_v48  ;;  %v2034_v48 = vunpack.c.l.b16 %v1756_v39  ;;  %v7477_v61 = vpop.f32.mrf.mxu0  ;;  %v7486_v34 = vrot.slane %v3391_v23, 5 }
 0x21d   : > { %v1549_v49 = vpop.f32.mrf.mxu2  ;;  %8386 = vst [vmem:[#allocation47_spill] sm:$0xff] %v7477_v61 }
 0x21e   : > { %v7462_v15 = vadd.f32 %v1549_v49, %v1348_v37  ;;  %v3374_v37 = vor.u32 %v3373_v20, %v7458_v2  ;;  %v1771_v49 = vshll.u32 %v1590_v6, 16  ;;  %v1770_v20 = vrot.slane %v1768_v50, 4 }
 0x21f   : > { %v2061_v6 = vpack.c.b16 %v2035_v47, %v2034_v48  ;;  %v1785_v50 = vrot.slane %v1784_v3, 4  ;;  %v1801_v3 = vshll.u32 %v1594_v54, 16 }
 0x220   : > { %8383 = vst [vmem:[#allocation44_spill] sm:$0xff] %v7462_v15  ;;  %v3364_v15 = vor.u32 %v3363_v45, %v3360_v41  ;;  %v3375_v1 = vrot.slane %v3374_v37, 4  ;;  %v1773_v7 = vrot.slane %v1771_v49, 5  ;;  %v3207_v41 = vld [vmem:[#allocation2 + $0x74] sm:$0xf]  ;;  %v6508_v45 = vld [vmem:[#allocation8 + $0x218] sm:$0xff] }
 0x221   : > { %v1353_v22 = vpop.f32.mrf.mxu3  ;;  %v1789_v49 = vrot.slane %v1787_v43, 5  ;;  %5369 = vmatpush.bf16.msra.mxu1 %v6508_v45  ;;  %v3382_v47 = vshrl.u32 %v3207_v41, 16  ;;  %v3385_v31 = vshll.u32 %v3207_v41, 16  ;;  %v1805_v43 = vshrl.u32 %v1594_v54, 16  ;;  %v1597_v54 = vld [vmem:[#allocation2 + $0x88] sm:$0xf] }
 0x222   : > { %3778 = vmatmul.bf16.gmra.mxu2 %v3674_v11  ;;  %v6446_v11 = vld [vmem:[#allocation2 + $0xe4] sm:$0xff]  ;;  %v3365_v39 = vrot.slane %v3364_v15, 4  ;;  %v3380_v37 = vsel %vm7319_vm5, %v3375_v1, %v3379_v44  ;;  %v1774_v4 = vor.u32 %v1773_v7, %v1770_v20 }
 0x223   : > { %4706 = vmatmul.bf16.gmra.mxu0 %v6476_v53  ;;  %v3395_v53 = vshrl.u32 %v3208_v58, 16  ;;  %v3384_v45 = vrot.slane %v3382_v47, 4  ;;  %v3387_v41 = vrot.slane %v3385_v31, 5  ;;  %v7498_v47 = vrot.slane %v1801_v3, 5 }
 0x224   : > { %v3370_v48 = vsel %vm7319_vm5, %v3365_v39, %v7458_v2  ;;  %v1775_v20 = vrot.slane %v1774_v4, 4  ;;  %v1790_v2 = vsel %vm7319_vm5, %v1785_v50, %v1789_v49  ;;  %v6507_v39 = vld [vmem:[#allocation8 + $0x210] sm:$0xff]  ;;  %v7496_v50 = vpop.f32.mrf.mxu0  ;;  %v1807_v31 = vrot.slane %v1805_v43, 4 }
 0x225   : > { %v1552_v57 = vpop.f32.mrf.mxu2  ;;  %v3397_v15 = vrot.slane %v3395_v53, 4  ;;  %v3648_v44 = vunpack.c.l.b16 %v3370_v48  ;;  %5370 = vmatpush.bf16.msra.mxu1 %v6507_v39  ;;  %8389 = vst [vmem:[#allocation50_spill] sm:$0xff] %v7496_v50  ;;  %v1825_v3 = vshll.u32 %v1597_v54, 16 }
 0x226   : > { %v7474_v63 = vadd.f32 %v1552_v57, %v1351_v19  ;;  %2169 = vmatmul.bf16.gmra.mxu3 %v2061_v6  ;;  %3141 = vmatmul.bf16.gmra.mxu1 %v6446_v11  ;;  %v7481_v19 = vpop.f32.mrf.mxu1  ;;  %v3649_v57 = vunpack.c.l.b16 %v3380_v37  ;;  %v3209_v6 = vld [vmem:[#allocation2 + $0x7c] sm:$0x1]  ;;  %v1593_v11 = vld [vmem:[#allocation2 + $0x74] sm:$0xf]  ;;  %v6477_v37 = vld [vmem:[#allocation2 + $0x64] sm:$0xff]  ;;  %v1780_v4 = vsel %vm7319_vm5, %v1775_v20, %v7472_v51 }
 0x227   : > { %8387 = vst [vmem:[#allocation48_spill] sm:$0xff] %v7481_v19  ;;  %v3398_v23 = vor.u32 %v3397_v15, %v7486_v34  ;;  %v3401_v53 = vshll.u32 %v3209_v6, 16  ;;  %v1792_v48 = vshrl.u32 %v1593_v11, 16  ;;  %v1795_v49 = vshll.u32 %v1593_v11, 16  ;;  %v6506_v15 = vld [vmem:[#allocation8 + $0x208] sm:$0xff] }
 0x228   : > { %8385 = vst [vmem:[#allocation46_spill] sm:$0xff] %v7474_v63  ;;  %v3675_v61 = vpack.c.b16 %v3649_v57, %v3648_v44  ;;  %v2036_v6 = vunpack.c.l.b16 %v1780_v4  ;;  %v3388_v44 = vor.u32 %v3387_v41, %v3384_v45  ;;  %v1595_v51 = vld [vmem:[#allocation2 + $0x7c] sm:$0x1]  ;;  %v3210_v11 = vld [vmem:[#allocation2 + $0x84] sm:$0xf]  ;;  %v1829_v63 = vshrl.u32 %v1597_v54, 16 }
 0x229   : > { %v1356_v58 = vpop.f32.mrf.mxu3  ;;  %v3399_v19 = vrot.slane %v3398_v23, 4  ;;  %5371 = vmatpush.bf16.msra.mxu1 %v6506_v15  ;;  %v1797_v30 = vrot.slane %v1795_v49, 5  ;;  %v1808_v45 = vor.u32 %v1807_v31, %v7498_v47  ;;  %v1811_v41 = vshll.u32 %v1595_v51, 16  ;;  %v6505_v23 = vld [vmem:[#allocation8 + $0x200] sm:$0xff] }
 0x22a   : > { %v3389_v4 = vrot.slane %v3388_v44, 4  ;;  %v7509_v31 = vrot.slane %v1825_v3, 5  ;;  %v1831_v51 = vrot.slane %v1829_v63, 4  ;;  %v4805_v63 = vld [vmem:[#allocation2 + $0x28] sm:$0xf] }
 0x22b   : > { %v1809_v44 = vrot.slane %v1808_v45, 4 }
 0x22d   : > { %v1554_v1 = vpop.f32.mrf.mxu2  ;;  %5372 = vmatpush.bf16.msra.mxu1 %v6505_v23 }
 0x22e   : > { %v7488_v7 = vadd.f32 %v1554_v1, %v1353_v22  ;;  %v2037_v22 = vunpack.c.l.b16 %v1790_v2  ;;  %v3211_v1 = vld [vmem:[#allocation2 + $0x88] sm:$0xf]  ;;  %v7500_v20 = vpop.f32.mrf.mxu1 }
 0x22f   : > { %8390 = vst [vmem:[#allocation51_spill] sm:$0xff] %v7500_v20  ;;  %v3415_v2 = vshll.u32 %v3211_v1, 16  ;;  %v3419_v39 = vshrl.u32 %v3211_v1, 16 }
 0x230   : > { %8388 = vst [vmem:[#allocation49_spill] sm:$0xff] %v7488_v7  ;;  %v3403_v7 = vrot.slane %v3401_v53, 5  ;;  %v1596_v53 = vld [vmem:[#allocation2 + $0x84] sm:$0xf] }
 0x231   : > { %v1358_v57 = vpop.f32.mrf.mxu3  ;;  %v7507_v15 = vrot.slane %v3415_v2, 5  ;;  %v3421_v54 = vrot.slane %v3419_v39, 4  ;;  %v1816_v49 = vshrl.u32 %v1596_v53, 16  ;;  %v4804_v2 = vld [vmem:[#allocation2 + $0x24] sm:$0xf]  ;;  %v7514_v39 = vpop.f32.mrf.mxu0 }
 0x232   : > { %3783 = vmatmul.bf16.gmra.mxu2 %v3675_v61  ;;  %v2062_v61 = vpack.c.b16 %v2037_v22, %v2036_v6  ;;  %v3404_v1 = vsel %vm7319_vm5, %v3399_v19, %v3403_v7  ;;  %v3406_v22 = vshrl.u32 %v3210_v11, 16  ;;  %v1819_v6 = vshll.u32 %v1596_v53, 16  ;;  %8392 = vst [vmem:[#allocation53_spill] sm:$0xff] %v7514_v39 }
 0x233   : > { %4711 = vmatmul.bf16.gmra.mxu0 %v6477_v37  ;;  %v1794_v37 = vrot.slane %v1792_v48, 4  ;;  %v3409_v48 = vshll.u32 %v3210_v11, 16  ;;  %v3651_v7 = vunpack.c.l.b16 %v3404_v1  ;;  %v3422_v3 = vor.u32 %v3421_v54, %v7507_v15 }
 0x234   : > { %v1821_v45 = vrot.slane %v1819_v6, 5  ;;  %v1835_v53 = vshll.u32 %v1598_v14, 16  ;;  %v4862_v54 = vshll.u32 %v4805_v63, 16 }
 0x235   : > { %v1557_v50 = vpop.f32.mrf.mxu2  ;;  %v1798_v20 = vor.u32 %v1797_v30, %v1794_v37  ;;  %v3411_v11 = vrot.slane %v3409_v48, 5  ;;  %v1818_v37 = vrot.slane %v1816_v49, 4  ;;  %v4856_v48 = vshll.u32 %v4804_v2, 16 }
 0x236   : > { %v7502_v43 = vadd.f32 %v1557_v50, %v1356_v58  ;;  %2174 = vmatmul.bf16.gmra.mxu3 %v2062_v61  ;;  %3146 = vmatmul.bf16.gmra.mxu1 %v6447_v17  ;;  %v6492_v58 = vld [vmem:[#allocation8 + $0x198] sm:$0xff]  ;;  %v3212_v50 = vld [vmem:[#allocation2 + $0x8c] sm:$0x1]  ;;  %v3394_v17 = vsel %vm7319_vm5, %v3389_v4, %v7486_v34  ;;  %v3408_v61 = vrot.slane %v3406_v22, 4  ;;  %v4853_v22 = vshrl.u32 %v4804_v2, 16 }
 0x237   : > { %4405 = vmatpush.bf16.msra.mxu3 %v6492_v58  ;;  %v3425_v23 = vshll.u32 %v3212_v50, 16  ;;  %v7518_v58 = vpop.f32.mrf.mxu1  ;;  %v3650_v34 = vunpack.c.l.b16 %v3394_v17  ;;  %v1799_v4 = vrot.slane %v1798_v20, 4  ;;  %v4866_v50 = vshrl.u32 %v4805_v63, 16 }
 0x238   : > { %8391 = vst [vmem:[#allocation52_spill] sm:$0xff] %v7502_v43  ;;  %v1813_v43 = vrot.slane %v1811_v41, 5  ;;  %v1832_v41 = vor.u32 %v1831_v51, %v7509_v31  ;;  %v3412_v49 = vor.u32 %v3411_v11, %v3408_v61  ;;  %v3423_v6 = vrot.slane %v3422_v3, 4  ;;  %v6448_v11 = vld [vmem:[#allocation2 + $0x104] sm:$0xff] }
 0x239   : > { %v1361_v19 = vpop.f32.mrf.mxu3  ;;  %8393 = vst [vmem:[#allocation54_spill] sm:$0xff] %v7518_v58  ;;  %v3676_v39 = vpack.c.b16 %v3651_v7, %v3650_v34  ;;  %v3427_v10 = vrot.slane %v3425_v23, 5  ;;  %v1804_v14 = vsel %vm7319_vm5, %v1799_v4, %v7498_v47  ;;  %v1837_v17 = vrot.slane %v1835_v53, 5 }
 0x23a   : > { %v1814_v1 = vsel %vm7319_vm5, %v1809_v44, %v1813_v43  ;;  %v1833_v51 = vrot.slane %v1832_v41, 4  ;;  %v4806_v44 = vld [vmem:[#allocation2 + $0x2c] sm:$0x1]  ;;  %v4855_v2 = vrot.slane %v4853_v22, 4  ;;  %v7527_v63 = vrot.slane %v4862_v54, 5  ;;  %v7533_v41 = vpop.f32.mrf.mxu0 }
 0x23b   : > { %v2039_v20 = vunpack.c.l.b16 %v1814_v1  ;;  %v4868_v7 = vrot.slane %v4866_v50, 4  ;;  %v2038_v61 = vunpack.c.l.b16 %v1804_v14  ;;  %v3413_v3 = vrot.slane %v3412_v49, 4  ;;  %8395 = vst [vmem:[#allocation56_spill] sm:$0xff] %v7533_v41  ;;  %v3214_v22 = vld [vmem:[#allocation2 + $0x98] sm:$0xf] }
 0x23c   : > { %v3428_v23 = vsel %vm7319_vm5, %v3423_v6, %v3427_v10  ;;  %v4872_v1 = vshll.u32 %v4806_v44, 16  ;;  %v4808_v49 = vld [vmem:[#allocation2 + $0x38] sm:$0xf] }
 0x23d   : > { %v1559_v30 = vpop.f32.mrf.mxu2  ;;  %v2063_v34 = vpack.c.b16 %v2039_v20, %v2038_v61  ;;  %v3418_v4 = vsel %vm7319_vm5, %v3413_v3, %v7507_v15  ;;  %v4869_v50 = vor.u32 %v4868_v7, %v7527_v63  ;;  %v3443_v20 = vshrl.u32 %v3214_v22, 16 }
 0x23e   : > { %v7520_v33 = vadd.f32 %v1559_v30, %v1358_v57  ;;  %v1822_v57 = vor.u32 %v1821_v45, %v1818_v37  ;;  %v4858_v30 = vrot.slane %v4856_v48, 5  ;;  %v4807_v45 = vld [vmem:[#allocation2 + $0x34] sm:$0xf]  ;;  %v3653_v48 = vunpack.c.l.b16 %v3428_v23 }
 0x23f   : > { %v7544_v6 = vpop.f32.mrf.mxu1  ;;  %v4877_v15 = vshrl.u32 %v4807_v45, 16  ;;  %v4880_v44 = vshll.u32 %v4807_v45, 16  ;;  %v4886_v7 = vshll.u32 %v4808_v49, 16  ;;  %v4870_v23 = vrot.slane %v4869_v50, 4  ;;  %v4811_v50 = vld [vmem:[#allocation2 + $0x48] sm:$0xf] }
 0x240   : > { %8394 = vst [vmem:[#allocation55_spill] sm:$0xff] %v7520_v33  ;;  %v1823_v37 = vrot.slane %v1822_v57, 4  ;;  %v4859_v54 = vor.u32 %v4858_v30, %v4855_v2  ;;  %v4874_v30 = vrot.slane %v4872_v1, 5 }
 0x241   : > { %v1363_v43 = vpop.f32.mrf.mxu3  ;;  %8397 = vst [vmem:[#allocation58_spill] sm:$0xff] %v7544_v6 }
 0x242   : > { %3788 = vmatmul.bf16.gmra.mxu2 %v3676_v39  ;;  %v1838_v39 = vsel %vm7319_vm5, %v1833_v51, %v1837_v17  ;;  %v1828_v10 = vsel %vm7319_vm5, %v1823_v37, %v7509_v31  ;;  %v3652_v51 = vunpack.c.l.b16 %v3418_v4  ;;  %v3439_v17 = vshll.u32 %v3214_v22, 16  ;;  %v1600_v4 = vld [vmem:[#allocation2 + $0x98] sm:$0xf] }
 0x243   : > { %4716 = vmatmul.bf16.gmra.mxu0 %v6478_v26  ;;  %v3213_v26 = vld [vmem:[#allocation2 + $0x94] sm:$0xf]  ;;  %v7550_v31 = vadd.f32 %v7196_v5, %v7178_v21  ;;  %v7552_v2 = vunpack.c.l.b16 %v1828_v10  ;;  %v4860_v3 = vrot.slane %v4859_v54, 4  ;;  %v4890_v37 = vshrl.u32 %v4808_v49, 16  ;;  %v7558_v21 = vld [vmem:[#allocation2 + $0x3c] sm:$0x1] }
 0x244   : > { %v3430_v14 = vshrl.u32 %v3213_v26, 16  ;;  %v3433_v57 = vshll.u32 %v3213_v26, 16  ;;  %v4879_v5 = vrot.slane %v4877_v15, 4  ;;  %v3445_v10 = vrot.slane %v3443_v20, 4 }
 0x245   : > { %v1562_v47 = vpop.f32.mrf.mxu2  ;;  %v4865_v1 = vsel %vm7319_vm5, %v4860_v3, %v7527_v63  ;;  %v4882_v54 = vrot.slane %v4880_v44, 5  ;;  %v4875_v15 = vsel %vm7319_vm5, %v4870_v23, %v4874_v30  ;;  %v1849_v41 = vshll.u32 %v1600_v4, 16  ;;  %v6479_v63 = vld [vmem:[#allocation2 + $0x84] sm:$0xff] }
 0x246   : > { %v7535_v53 = vadd.f32 %v1562_v47, %v1361_v19  ;;  %2179 = vmatmul.bf16.gmra.mxu3 %v2063_v34  ;;  %3151 = vmatmul.bf16.gmra.mxu1 %v6448_v11  ;;  %v7546_v19 = vunpack.c.l.b16 %v1838_v39  ;;  %v3677_v11 = vpack.c.b16 %v3653_v48, %v3652_v51  ;;  %v1599_v47 = vld [vmem:[#allocation2 + $0x94] sm:$0xf]  ;;  %v4810_v39 = vld [vmem:[#allocation2 + $0x44] sm:$0xf]  ;;  %v3432_v45 = vrot.slane %v3430_v14, 4 }
 0x247   : > { %v3435_v34 = vrot.slane %v3433_v57, 5  ;;  %v7563_v48 = vrot.slane %v3439_v17, 5  ;;  %v3215_v51 = vld [vmem:[#allocation2 + $0x9c] sm:$0x1]  ;;  %v1840_v26 = vshrl.u32 %v1599_v47, 16  ;;  %v1843_v14 = vshll.u32 %v1599_v47, 16 }
 0x248   : > { %8396 = vst [vmem:[#allocation57_spill] sm:$0xff] %v7535_v53  ;;  %v7567_v57 = vrot.slane %v4886_v7, 5  ;;  %v1853_v6 = vshrl.u32 %v1600_v4, 16  ;;  %v4892_v58 = vrot.slane %v4890_v37, 4  ;;  %v7571_v53 = vpop.f32.mrf.mxu0  ;;  %v4901_v20 = vshrl.u32 %v4810_v39, 16 }
 0x249   : > { %v7554_v61 = vpop.f32.mrf.mxu3  ;;  %8399 = vst [vmem:[#allocation60_spill] sm:$0xff] %v7571_v53  ;;  %v3436_v17 = vor.u32 %v3435_v34, %v3432_v45  ;;  %v4904_v44 = vshll.u32 %v4810_v39, 16  ;;  %v4910_v3 = vshll.u32 %v4811_v50, 16  ;;  %v4896_v47 = vshll.u32 %v7558_v21, 16  ;;  %v4812_v53 = vld [vmem:[#allocation2 + $0x4c] sm:$0x1] }
 0x24a   : > { %v4914_v7 = vshrl.u32 %v4811_v50, 16  ;;  %v5253_v30 = vunpack.c.l.b16 %v4865_v1  ;;  %v5254_v23 = vunpack.c.l.b16 %v4875_v15  ;;  %v1842_v37 = vrot.slane %v1840_v26, 4  ;;  %v1601_v45 = vld [vmem:[#allocation2 + $0x9c] sm:$0x1]  ;;  %v3216_v21 = vld [vmem:[#allocation2 + $0xa4] sm:$0xf] }
 0x24b   : > { %v1845_v4 = vrot.slane %v1843_v14, 5  ;;  %v7577_v34 = vrot.slane %v1849_v41, 5  ;;  %v1855_v39 = vrot.slane %v1853_v6, 4  ;;  %v4883_v59 = vor.u32 %v4882_v54, %v4879_v5  ;;  %v3217_v26 = vld [vmem:[#allocation2 + $0xa8] sm:$0xf] }
 0x24c   : > { %v4903_v50 = vrot.slane %v4901_v20, 4  ;;  %v4906_v28 = vrot.slane %v4904_v44, 5  ;;  %v4916_v14 = vrot.slane %v4914_v7, 4  ;;  %v5285_v41 = vpack.c.b16 %v5254_v23, %v5253_v30 }
 0x24d   : > { %v1564_v22 = vpop.f32.mrf.mxu2  ;;  %v1846_v6 = vor.u32 %v1845_v4, %v1842_v37  ;;  %v1859_v5 = vshll.u32 %v1601_v45, 16  ;;  %v4884_v54 = vrot.slane %v4883_v59, 4  ;;  %v3457_v20 = vshll.u32 %v3216_v21, 16  ;;  %v7602_v4 = vld [vmem:[#allocation2 + $0x54] sm:$0xf] }
 0x24e   : > { %v7565_v49 = vadd.f32 %v1564_v22, %v1363_v43  ;;  %v3446_v43 = vor.u32 %v3445_v10, %v7563_v48  ;;  %v3449_v22 = vshll.u32 %v3215_v51, 16  ;;  %v4893_v10 = vor.u32 %v4892_v58, %v7567_v57 }
 0x24f   : > { %v3437_v51 = vrot.slane %v3436_v17, 4  ;;  %v1856_v58 = vor.u32 %v1855_v39, %v7577_v34  ;;  %v3454_v17 = vshrl.u32 %v3216_v21, 16  ;;  %v8401_v44 = vpack.c.b16 %v7546_v19, %v7552_v2 }
 0x250   : > { %8398 = vst [vmem:[#allocation59_spill] sm:$0xff] %v7565_v49  ;;  %v7575_v49 = vpop.f32.mrf.mxu1  ;;  %v3447_v1 = vrot.slane %v3446_v43, 4  ;;  %v3451_v15 = vrot.slane %v3449_v22, 5  ;;  %v3467_v43 = vshrl.u32 %v3217_v26, 16  ;;  %v6491_v22 = vld [vmem:[#allocation8 + $0x190] sm:$0xff]  ;;  %v4889_v59 = vsel %vm7319_vm5, %v4884_v54, %v7567_v57  ;;  %v7597_v19 = vpop.f32.mrf.mxu0 }
 0x251   : > { %8400 = vst [vmem:[#allocation61_spill] sm:$0xff] %v7575_v49  ;;  %v1368_v33 = vpop.f32.mrf.mxu3  ;;  %v7580_v49 = vrot.slane %v4910_v3, 5  ;;  %v4898_v3 = vrot.slane %v4896_v47, 5  ;;  %v4894_v30 = vrot.slane %v4893_v10, 4  ;;  %v4907_v23 = vor.u32 %v4906_v28, %v4903_v50  ;;  %4406 = vmatpush.bf16.msra.mxu3 %v6491_v22 }
 0x252   : > { %3793 = vmatmul.bf16.gmra.mxu2 %v3677_v11  ;;  %v3452_v7 = vsel %vm7319_vm5, %v3447_v1, %v3451_v15  ;;  %8402 = vst [vmem:[#allocation62_spill] sm:$0xff] %v7597_v19  ;;  %v1847_v2 = vrot.slane %v1846_v6, 4  ;;  %v1861_v37 = vrot.slane %v1859_v5, 5  ;;  %v3456_v21 = vrot.slane %v3454_v17, 4  ;;  %v1602_v1 = vld [vmem:[#allocation2 + $0xa4] sm:$0xf] }
 0x253   : > { %4721 = vmatmul.bf16.gmra.mxu0 %v6479_v63  ;;  %v4920_v63 = vshll.u32 %v4812_v53, 16  ;;  %v3442_v53 = vsel %vm7319_vm5, %v3437_v51, %v7563_v48  ;;  %v4917_v48 = vor.u32 %v4916_v14, %v7580_v49  ;;  %v1857_v51 = vrot.slane %v1856_v58, 4  ;;  %v3218_v6 = vld [vmem:[#allocation2 + $0xac] sm:$0x1]  ;;  %v8425_v19 = vld [vmem:[#allocation24_spill] sm:$0xff] }
 0x254   : > { %v3654_v39 = vunpack.c.l.b16 %v3442_v53  ;;  %v3655_v10 = vunpack.c.l.b16 %v3452_v7  ;;  %v3469_v15 = vrot.slane %v3467_v43, 4  ;;  %v7611_v5 = vrot.slane %v4907_v23, 4  ;;  %v6480_v7 = vld [vmem:[#allocation2 + $0x94] sm:$0xff] }
 0x255   : > { %v1567_v11 = vpop.f32.mrf.mxu2  ;;  %v7600_v47 = vrot.slane %v4920_v63, 5  ;;  %v4899_v63 = vsel %vm7319_vm5, %v4894_v30, %v4898_v3  ;;  %v4925_v58 = vshrl.u32 %v7602_v4, 16  ;;  %v1864_v17 = vshrl.u32 %v1602_v1, 16 }
 0x256   : > { %v7583_v35 = vadd.f32 %v1567_v11, %v7554_v61  ;;  %2184 = vmatmul.bf16.gmra.mxu3 %v8401_v44  ;;  %5373 = vmatmul.bf16.vlgmr.msra.gmra.mxu1 %v5285_v41  ;;  %v3463_v61 = vshll.u32 %v3217_v26, 16  ;;  %v3459_v11 = vrot.slane %v3457_v20, 5  ;;  %v1603_v26 = vld [vmem:[#allocation2 + $0xa8] sm:$0xf]  ;;  %v5255_v41 = vunpack.c.l.b16 %v4889_v59 }
 0x257   : > { %v1867_v20 = vshll.u32 %v1602_v1, 16  ;;  %v1862_v44 = vsel %vm7319_vm5, %v1857_v51, %v1861_v37  ;;  %v1877_v3 = vshrl.u32 %v1603_v26, 16  ;;  %v3678_v22 = vpack.c.b16 %v3655_v10, %v3654_v39  ;;  %v4814_v39 = vld [vmem:[#allocation2 + $0x58] sm:$0xf]  ;;  %v1604_v1 = vld [vmem:[#allocation2 + $0xac] sm:$0x1] }
 0x258   : > { %v7604_v57 = vpop.f32.mrf.mxu1  ;;  %v7607_v50 = vrot.slane %v3463_v61, 5  ;;  %v3460_v53 = vor.u32 %v3459_v11, %v3456_v21  ;;  %v1873_v61 = vshll.u32 %v1603_v26, 16  ;;  %v5256_v30 = vunpack.c.l.b16 %v4899_v63  ;;  %v7632_v26 = vpop.f32.mrf.mxu0  ;;  %v3219_v63 = vld [vmem:[#allocation2 + $0xb4] sm:$0xf] }
 0x259   : > { %v2145_v45 = vpop.f32.mrf.mxu3  ;;  %v4918_v23 = vrot.slane %v4917_v48, 4  ;;  %v1866_v51 = vrot.slane %v1864_v17, 4  ;;  %v1879_v10 = vrot.slane %v1877_v3, 4  ;;  %8403 = vst [vmem:[#allocation63_spill] sm:$0xff] %v7632_v26  ;;  %v3220_v17 = vld [vmem:[#allocation2 + $0xb8] sm:$0xf] }
 0x25a   : > { %v2225_v28 = vadd.f32 %v2145_v45, %v7176_v9  ;;  %v1852_v9 = vsel %vm7319_vm5, %v1847_v2, %v7577_v34  ;;  %v3470_v59 = vor.u32 %v3469_v15, %v7607_v50  ;;  %v4913_v34 = vsel %vm7319_vm5, %v7611_v5, %v7580_v49 }
 0x25b   : > { %v4928_v2 = vshll.u32 %v7602_v4, 16  ;;  %v2042_v37 = vunpack.c.l.b16 %v1852_v9  ;;  %v2043_v45 = vunpack.c.l.b16 %v1862_v44  ;;  %v3461_v11 = vrot.slane %v3460_v53, 4 }
 0x25c   : > { %v2875_v43 = vadd.f32 %v7198_v18, %v2225_v28  ;;  %v1869_v18 = vrot.slane %v1867_v20, 5  ;;  %v7628_v28 = vrot.slane %v1873_v61, 5  ;;  %v7630_v15 = vrot.slane %v4925_v58, 4 }
 0x25d   : > { %v1569_v14 = vpop.f32.mrf.mxu2  ;;  %v3471_v4 = vrot.slane %v3470_v59, 4  ;;  %v5286_v5 = vpack.c.b16 %v5256_v30, %v5255_v41  ;;  %v4923_v9 = vsel %vm7319_vm5, %v4918_v23, %v7600_v47  ;;  %v4934_v20 = vshll.u32 %v4814_v39, 16 }
 0x25e   : > { %v7614_v54 = vadd.f32 %v1569_v14, %v1368_v33  ;;  %v3473_v33 = vshll.u32 %v3218_v6, 16  ;;  %v3157_v48 = vadd.f32 %v7340_v52, %v2875_v43  ;;  %v4938_v44 = vshrl.u32 %v4814_v39, 16 }
 0x25f   : > { %v2065_v61 = vpack.c.b16 %v2043_v45, %v2042_v37  ;;  %v1883_v3 = vshll.u32 %v1604_v1, 16  ;;  %v3466_v52 = vsel %vm7319_vm5, %v3461_v11, %v7607_v50  ;;  %v1880_v41 = vor.u32 %v1879_v10, %v7628_v28 }
 0x260   : > { %v3475_v14 = vrot.slane %v3473_v33, 5  ;;  %v7639_v58 = vpop.f32.mrf.mxu1  ;;  %v3478_v43 = vshrl.u32 %v3219_v63, 16  ;;  %v3487_v59 = vshll.u32 %v3220_v17, 16  ;;  %v3491_v33 = vshrl.u32 %v3220_v17, 16 }
 0x261   : > { %v2147_v21 = vpop.f32.mrf.mxu3  ;;  %v7650_v30 = vunpack.c.l.b16 %v4923_v9  ;;  %v4930_v23 = vrot.slane %v4928_v2, 5  ;;  %v7652_v37 = vrot.slane %v4934_v20, 5  ;;  %v4940_v45 = vrot.slane %v4938_v44, 4  ;;  %v7664_v20 = vpop.f32.mrf.mxu0 }
 0x262   : > { %3798 = vmatmul.bf16.gmra.mxu2 %v3678_v22  ;;  %v2226_v49 = vadd.f32 %v2147_v21, %v7550_v31  ;;  %v1870_v31 = vor.u32 %v1869_v18, %v1866_v51  ;;  %v3481_v22 = vshll.u32 %v3219_v63, 16  ;;  %v3656_v50 = vunpack.c.l.b16 %v3466_v52  ;;  %v1606_v63 = vld [vmem:[#allocation2 + $0xb8] sm:$0xf]  ;;  %8404 = vst [vmem:[#allocation64_spill] sm:$0xff] %v7664_v20 }
 0x263   : > { %4726 = vmatmul.bf16.gmra.mxu0 %v6480_v7  ;;  %v3476_v7 = vsel %vm7319_vm5, %v3471_v4, %v3475_v14  ;;  %v1885_v18 = vrot.slane %v1883_v3, 5  ;;  %v7654_v39 = vunpack.c.l.b16 %v4913_v34  ;;  %v1881_v11 = vrot.slane %v1880_v41, 4  ;;  %v3221_v34 = vld [vmem:[#allocation2 + $0xbc] sm:$0x1]  ;;  %v4816_v3 = vld [vmem:[#allocation2 + $0x64] sm:$0xf] }
 0x264   : > { %v2876_v47 = vadd.f32 %v7202_v46, %v2226_v49  ;;  %v1871_v51 = vrot.slane %v1870_v31, 4  ;;  %v3657_v46 = vunpack.c.l.b16 %v3476_v7  ;;  %v3480_v1 = vrot.slane %v3478_v43, 4  ;;  %v1605_v49 = vld [vmem:[#allocation2 + $0xb4] sm:$0xf]  ;;  %v4815_v31 = vld [vmem:[#allocation2 + $0x5c] sm:$0x1] }
 0x265   : > { %v3759_v6 = vpop.f32.mrf.mxu2  ;;  %v3483_v10 = vrot.slane %v3481_v22, 5  ;;  %v7658_v14 = vrot.slane %v3487_v59, 5  ;;  %v3493_v2 = vrot.slane %v3491_v33, 4  ;;  %v4931_v9 = vor.u32 %v4930_v23, %v7630_v15  ;;  %v6481_v59 = vld [vmem:[#allocation2 + $0xa4] sm:$0xff] }
 0x266   : > { %v7641_v53 = vadd.f32 %v3759_v6, %v3157_v48  ;;  %2189 = vmatmul.bf16.gmra.mxu3 %v2065_v61  ;;  %5378 = vmatmul.bf16.gmra.mxu1 %v5286_v5  ;;  %v3158_v4 = vadd.f32 %v7357_v62, %v2876_v47  ;;  %v5287_v5 = vpack.c.b16 %v7650_v30, %v7654_v39  ;;  %v1888_v62 = vshrl.u32 %v1605_v49, 16 }
 0x267   : > { %v4941_v17 = vor.u32 %v4940_v45, %v7652_v37  ;;  %v1891_v61 = vshll.u32 %v1605_v49, 16  ;;  %v1886_v52 = vsel %vm7319_vm5, %v1881_v11, %v1885_v18  ;;  %v3484_v41 = vor.u32 %v3483_v10, %v3480_v1  ;;  %v4817_v1 = vld [vmem:[#allocation2 + $0x68] sm:$0xf] }
 0x268   : > { %v1897_v43 = vshll.u32 %v1606_v63, 16  ;;  %v1901_v15 = vshrl.u32 %v1606_v63, 16  ;;  %v7673_v22 = vpop.f32.mrf.mxu1  ;;  %v3679_v7 = vpack.c.b16 %v3657_v46, %v3656_v50  ;;  %v3494_v33 = vor.u32 %v3493_v2, %v7658_v14 }
 0x269   : > { %v2150_v21 = vpop.f32.mrf.mxu3  ;;  %8405 = vst [vmem:[#allocation65_spill] sm:$0xff] %v7673_v22  ;;  %v3497_v30 = vshll.u32 %v3221_v34, 16  ;;  %v4944_v23 = vshll.u32 %v4815_v31, 16  ;;  %v4949_v45 = vshrl.u32 %v4816_v3, 16  ;;  %v2045_v39 = vunpack.c.l.b16 %v1886_v52  ;;  %v3222_v34 = vld [vmem:[#allocation2 + $0xc4] sm:$0xf] }
 0x26a   : > { %v2227_v48 = vadd.f32 %v2150_v21, %v7200_v42  ;;  %v1876_v42 = vsel %vm7319_vm5, %v1871_v51, %v7628_v28  ;;  %v7677_v28 = vrot.slane %v4931_v9, 4  ;;  %v4952_v51 = vshll.u32 %v4816_v3, 16 }
 0x26b   : > { %v2044_v18 = vunpack.c.l.b16 %v1876_v42  ;;  %v1890_v21 = vrot.slane %v1888_v62, 4  ;;  %v1893_v11 = vrot.slane %v1891_v61, 5  ;;  %v3485_v49 = vrot.slane %v3484_v41, 4  ;;  %v3223_v42 = vld [vmem:[#allocation2 + $0xc8] sm:$0xf] }
 0x26c   : > { %v2877_v47 = vadd.f32 %v7214_v13, %v2227_v48  ;;  %v1607_v13 = vld [vmem:[#allocation2 + $0xbc] sm:$0x1]  ;;  %v7679_v50 = vrot.slane %v1897_v43, 5  ;;  %v1903_v46 = vrot.slane %v1901_v15, 4  ;;  %v7681_v48 = vrot.slane %v4941_v17, 4 }
 0x26d   : > { %v3761_v6 = vpop.f32.mrf.mxu2  ;;  %v3495_v63 = vrot.slane %v3494_v33, 4  ;;  %v4951_v62 = vrot.slane %v4949_v45, 4  ;;  %v4954_v61 = vrot.slane %v4952_v51, 5  ;;  %v4958_v31 = vshll.u32 %v4817_v1, 16  ;;  %v6490_v51 = vld [vmem:[#allocation8 + $0x188] sm:$0xff] }
 0x26e   : > { %v7666_v44 = vadd.f32 %v3761_v6, %v3158_v4  ;;  %v3159_v2 = vadd.f32 %v7372_v40, %v2877_v47  ;;  %v3499_v6 = vrot.slane %v3497_v30, 5  ;;  %v4962_v3 = vshrl.u32 %v4817_v1, 16  ;;  %4407 = vmatpush.bf16.msra.mxu3 %v6490_v51 }
 0x26f   : > { %v2066_v41 = vpack.c.b16 %v2045_v39, %v2044_v18  ;;  %v1894_v43 = vor.u32 %v1893_v11, %v1890_v21  ;;  %v1907_v15 = vshll.u32 %v1607_v13, 16  ;;  %v1904_v40 = vor.u32 %v1903_v46, %v7679_v50 }
 0x270   : > { %v3502_v17 = vshrl.u32 %v3222_v34, 16  ;;  %v3505_v47 = vshll.u32 %v3222_v34, 16  ;;  %v3500_v33 = vsel %vm7319_vm5, %v3495_v63, %v3499_v6  ;;  %v3511_v30 = vshll.u32 %v3223_v42, 16  ;;  %v7698_v11 = vpop.f32.mrf.mxu1  ;;  %v1608_v63 = vld [vmem:[#allocation2 + $0xc4] sm:$0xf] }
 0x271   : > { %v2152_v10 = vpop.f32.mrf.mxu3  ;;  %v3515_v45 = vshrl.u32 %v3223_v42, 16  ;;  %v4946_v18 = vrot.slane %v4944_v23, 5  ;;  %v4955_v39 = vor.u32 %v4954_v61, %v4951_v62  ;;  %v7696_v21 = vrot.slane %v4958_v31, 5  ;;  %8407 = vst [vmem:[#allocation67_spill] sm:$0xff] %v7698_v11  ;;  %v1609_v62 = vld [vmem:[#allocation2 + $0xc8] sm:$0xf] }
 0x272   : > { %3803 = vmatmul.bf16.gmra.mxu2 %v3679_v7  ;;  %v2228_v4 = vadd.f32 %v2152_v10, %v7212_v8  ;;  %v3490_v8 = vsel %vm7319_vm5, %v3485_v49, %v7658_v14  ;;  %v7691_v7 = vpop.f32.mrf.mxu0  ;;  %v4964_v14 = vrot.slane %v4962_v3, 4  ;;  %v1895_v10 = vrot.slane %v1894_v43, 4  ;;  %v4844_v11 = vld [vmem:[#allocation2 + $0xf8] sm:$0xf] }
 0x273   : > { %4731 = vmatmul.bf16.gmra.mxu0 %v6481_v59  ;;  %8406 = vst [vmem:[#allocation66_spill] sm:$0xff] %v7691_v7  ;;  %v3658_v1 = vunpack.c.l.b16 %v3490_v8  ;;  %v1909_v49 = vrot.slane %v1907_v15, 5  ;;  %v3659_v46 = vunpack.c.l.b16 %v3500_v33  ;;  %v3504_v23 = vrot.slane %v3502_v17, 4  ;;  %v6482_v33 = vld [vmem:[#allocation2 + $0xb4] sm:$0xff] }
 0x274   : > { %v2878_v59 = vadd.f32 %v7222_v38, %v2228_v4  ;;  %v4937_v38 = vsel %vm7319_vm5, %v7677_v28, %v7652_v37  ;;  %v1905_v4 = vrot.slane %v1904_v40, 4  ;;  %v3517_v42 = vrot.slane %v3515_v45, 4  ;;  %v3224_v28 = vld [vmem:[#allocation2 + $0xcc] sm:$0x1] }
 0x275   : > { %v3764_v9 = vpop.f32.mrf.mxu2  ;;  %v4947_v37 = vsel %vm7319_vm5, %v7681_v48, %v4946_v18  ;;  %v4956_v31 = vrot.slane %v4955_v39, 4  ;;  %v4965_v3 = vor.u32 %v4964_v14, %v7696_v21  ;;  %v1915_v15 = vshll.u32 %v1608_v63, 16 }
 0x276   : > { %v7685_v52 = vadd.f32 %v3764_v9, %v3159_v2  ;;  %2194 = vmatmul.bf16.gmra.mxu3 %v2066_v41  ;;  %5383 = vmatmul.bf16.gmra.mxu1 %v5287_v5  ;;  %v4818_v5 = vld [vmem:[#allocation2 + $0x6c] sm:$0x1]  ;;  %v3507_v2 = vrot.slane %v3505_v47, 5  ;;  %v3160_v34 = vadd.f32 %v7383_v24, %v2878_v59  ;;  %v7706_v9 = vrot.slane %v3511_v30, 5 }
 0x277   : > { %v4968_v41 = vshll.u32 %v4818_v5, 16  ;;  %v1912_v24 = vshrl.u32 %v1608_v63, 16  ;;  %v1910_v8 = vsel %vm7319_vm5, %v1905_v4, %v1909_v49  ;;  %v1921_v17 = vshll.u32 %v1609_v62, 16  ;;  %v1610_v4 = vld [vmem:[#allocation2 + $0xcc] sm:$0x1] }
 0x278   : > { %v3508_v40 = vor.u32 %v3507_v2, %v3504_v23  ;;  %v1925_v47 = vshrl.u32 %v1609_v62, 16  ;;  %v3680_v59 = vpack.c.b16 %v3659_v46, %v3658_v1  ;;  %v3518_v30 = vor.u32 %v3517_v42, %v7706_v9  ;;  %v7728_v63 = vpop.f32.mrf.mxu1  ;;  %v3225_v62 = vld [vmem:[#allocation2 + $0xd4] sm:$0xf] }
 0x279   : > { %v2155_v13 = vpop.f32.mrf.mxu3  ;;  %v3521_v45 = vshll.u32 %v3224_v28, 16  ;;  %v5260_v51 = vunpack.c.l.b16 %v4947_v37  ;;  %v4966_v18 = vrot.slane %v4965_v3, 4  ;;  %v4970_v39 = vrot.slane %v4968_v41, 5  ;;  %8409 = vst [vmem:[#allocation69_spill] sm:$0xff] %v7728_v63  ;;  %v4840_v63 = vld [vmem:[#allocation2 + $0xe4] sm:$0xf] }
 0x27a   : > { %v2229_v6 = vadd.f32 %v2155_v13, %v7216_v32  ;;  %v1900_v32 = vsel %vm7319_vm5, %v1895_v10, %v7679_v50  ;;  %v4961_v50 = vsel %vm7319_vm5, %v4956_v31, %v7696_v21  ;;  %v7724_v14 = vpop.f32.mrf.mxu0  ;;  %v2047_v49 = vunpack.c.l.b16 %v1910_v8  ;;  %v3226_v31 = vld [vmem:[#allocation2 + $0xd8] sm:$0xf] }
 0x27b   : > { %8408 = vst [vmem:[#allocation68_spill] sm:$0xff] %v7724_v14  ;;  %v2046_v10 = vunpack.c.l.b16 %v1900_v32  ;;  %v1914_v5 = vrot.slane %v1912_v24, 4  ;;  %v5259_v13 = vunpack.c.l.b16 %v4937_v38  ;;  %v3509_v46 = vrot.slane %v3508_v40, 4 }
 0x27c   : > { %v2879_v48 = vadd.f32 %v7230_v0, %v2229_v6  ;;  %v1917_v0 = vrot.slane %v1915_v15, 5  ;;  %v7726_v23 = vrot.slane %v1921_v17, 5  ;;  %v1927_v2 = vrot.slane %v1925_v47, 4  ;;  %v4819_v15 = vld [vmem:[#allocation2 + $0x74] sm:$0xf] }
 0x27d   : > { %v3766_v61 = vpop.f32.mrf.mxu2  ;;  %v3523_v42 = vrot.slane %v3521_v45, 5  ;;  %v5288_v37 = vpack.c.b16 %v5260_v51, %v5259_v13  ;;  %v4971_v28 = vsel %vm7319_vm5, %v4966_v18, %v4970_v39  ;;  %v7734_v38 = vunpack.c.l.b16 %v4961_v50 }
 0x27e   : > { %v7712_v43 = vadd.f32 %v3766_v61, %v3160_v34  ;;  %v3161_v6 = vadd.f32 %v7396_v25, %v2879_v48  ;;  %v3519_v34 = vrot.slane %v3518_v30, 4  ;;  %v2067_v41 = vpack.c.b16 %v2047_v49, %v2046_v10  ;;  %v1611_v49 = vld [vmem:[#allocation2 + $0xd4] sm:$0xf] }
 0x27f   : > { %v1918_v32 = vor.u32 %v1917_v0, %v1914_v5  ;;  %v1931_v24 = vshll.u32 %v1610_v4, 16  ;;  %v3514_v25 = vsel %vm7319_vm5, %v3509_v46, %v7706_v9  ;;  %v1928_v8 = vor.u32 %v1927_v2, %v7726_v23  ;;  %v1612_v5 = vld [vmem:[#allocation2 + $0xd8] sm:$0xf] }
 0x280   : > { %v3526_v40 = vshrl.u32 %v3225_v62, 16  ;;  %v3529_v17 = vshll.u32 %v3225_v62, 16  ;;  %v3524_v48 = vsel %vm7319_vm5, %v3519_v34, %v3523_v42  ;;  %v4973_v30 = vshrl.u32 %v4819_v15, 16  ;;  %v3227_v62 = vld [vmem:[#allocation2 + $0xdc] sm:$0x1] }
 0x281   : > { %v2157_v1 = vpop.f32.mrf.mxu3  ;;  %v4976_v45 = vshll.u32 %v4819_v15, 16  ;;  %v3660_v18 = vunpack.c.l.b16 %v3514_v25  ;;  %v1919_v39 = vrot.slane %v1918_v32, 4  ;;  %v1933_v9 = vrot.slane %v1931_v24, 5 }
 0x282   : > { %3808 = vmatmul.bf16.gmra.mxu2 %v3680_v59  ;;  %v2230_v21 = vadd.f32 %v2157_v1, %v7228_v60  ;;  %v4820_v60 = vld [vmem:[#allocation2 + $0x78] sm:$0xf]  ;;  %v3535_v59 = vshll.u32 %v3226_v31, 16  ;;  %v7745_v10 = vunpack.c.l.b16 %v4971_v28  ;;  %v1929_v1 = vrot.slane %v1928_v8, 4  ;;  %v7747_v4 = vpop.f32.mrf.mxu0  ;;  %v4821_v8 = vld [vmem:[#allocation2 + $0x7c] sm:$0x1] }
 0x283   : > { %4736 = vmatmul.bf16.gmra.mxu0 %v6482_v33  ;;  %v3539_v33 = vshrl.u32 %v3226_v31, 16  ;;  %v4982_v51 = vshll.u32 %v4820_v60, 16  ;;  %v4986_v50 = vshrl.u32 %v4820_v60, 16  ;;  %v3528_v13 = vrot.slane %v3526_v40, 4  ;;  %8410 = vst [vmem:[#allocation70_spill] sm:$0xff] %v7747_v4 }
 0x284   : > { %v2880_v47 = vadd.f32 %v7234_v29, %v2230_v21  ;;  %v3661_v29 = vunpack.c.l.b16 %v3524_v48  ;;  %v3531_v46 = vrot.slane %v3529_v17, 5  ;;  %v1945_v28 = vshll.u32 %v1612_v5, 16  ;;  %v6483_v48 = vld [vmem:[#allocation2 + $0xc4] sm:$0xff] }
 0x285   : > { %v3769_v61 = vpop.f32.mrf.mxu2  ;;  %v3541_v34 = vrot.slane %v3539_v33, 4  ;;  %v1949_v31 = vshrl.u32 %v1612_v5, 16  ;;  %v4975_v24 = vrot.slane %v4973_v30, 4  ;;  %v7757_v15 = vrot.slane %v4982_v51, 5 }
 0x286   : > { %v7736_v3 = vadd.f32 %v3769_v61, %v3161_v6  ;;  %2199 = vmatmul.bf16.gmra.mxu3 %v2067_v41  ;;  %5388 = vmatmul.bf16.gmra.mxu1 %v5288_v37  ;;  %v3162_v21 = vadd.f32 %v7408_v16, %v2880_v47  ;;  %v7751_v6 = vrot.slane %v3535_v59, 5  ;;  %v1936_v61 = vshrl.u32 %v1611_v49, 16  ;;  %v7753_v41 = vpop.f32.mrf.mxu1 }
 0x287   : > { %v1939_v37 = vshll.u32 %v1611_v49, 16  ;;  %8411 = vst [vmem:[#allocation71_spill] sm:$0xff] %v7753_v41  ;;  %v4988_v60 = vrot.slane %v4986_v50, 4  ;;  %v1934_v16 = vsel %vm7319_vm5, %v1929_v1, %v1933_v9  ;;  %v3532_v25 = vor.u32 %v3531_v46, %v3528_v13  ;;  %v1613_v9 = vld [vmem:[#allocation2 + $0xdc] sm:$0x1] }
 0x288   : > { %v4978_v40 = vrot.slane %v4976_v45, 5  ;;  %v3681_v47 = vpack.c.b16 %v3661_v29, %v3660_v18  ;;  %v3542_v59 = vor.u32 %v3541_v34, %v7751_v6  ;;  %v3545_v33 = vshll.u32 %v3227_v62, 16 }
 0x289   : > { %v2160_v0 = vpop.f32.mrf.mxu3  ;;  %v1938_v30 = vrot.slane %v1936_v61, 4  ;;  %v1941_v51 = vrot.slane %v1939_v37, 5  ;;  %v7766_v50 = vrot.slane %v1945_v28, 5  ;;  %v1951_v49 = vrot.slane %v1949_v31, 4  ;;  %v3229_v37 = vld [vmem:[#allocation2 + $0xe8] sm:$0xf] }
 0x28a   : > { %v2231_v2 = vadd.f32 %v2160_v0, %v7232_v27  ;;  %v1924_v27 = vsel %vm7319_vm5, %v1919_v39, %v7726_v23  ;;  %v2049_v39 = vunpack.c.l.b16 %v1934_v16  ;;  %v4989_v5 = vor.u32 %v4988_v60, %v7757_v15  ;;  %v7774_v28 = vpop.f32.mrf.mxu0  ;;  %v4823_v16 = vld [vmem:[#allocation2 + $0x88] sm:$0xf] }
 0x28b   : > { %v2048_v23 = vunpack.c.l.b16 %v1924_v27  ;;  %v4992_v45 = vshll.u32 %v4821_v8, 16  ;;  %v3533_v18 = vrot.slane %v3532_v25, 4  ;;  %v3543_v13 = vrot.slane %v3542_v59, 4  ;;  %8412 = vst [vmem:[#allocation72_spill] sm:$0xff] %v7774_v28  ;;  %v8414_v8 = vld [vmem:[#allocation15_spill] sm:$0xff] }
 0x28c   : > { %v2881_v17 = vadd.f32 %v7248_v56, %v2231_v2  ;;  %v5289_v56 = vpack.c.b16 %v7745_v10, %v7734_v38  ;;  %v3547_v46 = vrot.slane %v3545_v33, 5  ;;  %v3228_v2 = vld [vmem:[#allocation2 + $0xe4] sm:$0xf]  ;;  %v1942_v34 = vor.u32 %v1941_v51, %v1938_v30 }
 0x28d   : > { %v3771_v42 = vpop.f32.mrf.mxu2  ;;  %v1955_v62 = vshll.u32 %v1613_v9, 16  ;;  %v4979_v61 = vor.u32 %v4978_v40, %v4975_v24  ;;  %v2068_v38 = vpack.c.b16 %v2049_v39, %v2048_v23  ;;  %v4990_v10 = vrot.slane %v4989_v5, 4 }
 0x28e   : > { %v7755_v32 = vadd.f32 %v3771_v42, %v3162_v21  ;;  %v3163_v1 = vadd.f32 %v7424_v36, %v2881_v17  ;;  %v1952_v42 = vor.u32 %v1951_v49, %v7766_v50  ;;  %v4994_v60 = vrot.slane %v4992_v45, 5  ;;  %v7781_v25 = vpop.f32.mrf.mxu1  ;;  %v1614_v49 = vld [vmem:[#allocation2 + $0xe4] sm:$0xf] }
 0x28f   : > { %v3550_v36 = vshrl.u32 %v3228_v2, 16  ;;  %v3553_v27 = vshll.u32 %v3228_v2, 16  ;;  %8413 = vst [vmem:[#allocation73_spill] sm:$0xff] %v7781_v25  ;;  %v3548_v24 = vsel %vm7319_vm5, %v3543_v13, %v3547_v46  ;;  %v3559_v40 = vshll.u32 %v3229_v37, 16 }
 0x290   : > { %v1943_v59 = vrot.slane %v1942_v34, 4  ;;  %v1953_v33 = vrot.slane %v1952_v42, 4  ;;  %v1957_v30 = vrot.slane %v1955_v62, 5  ;;  %v4980_v51 = vrot.slane %v4979_v61, 4  ;;  %v3230_v61 = vld [vmem:[#allocation2 + $0xec] sm:$0x1] }
 0x291   : > { %v2162_v0 = vpop.f32.mrf.mxu3  ;;  %v5006_v23 = vshll.u32 %v4823_v16, 16  ;;  %v3663_v5 = vunpack.c.l.b16 %v3548_v24  ;;  %v3552_v45 = vrot.slane %v3550_v36, 4  ;;  %v7792_v46 = vrot.slane %v3559_v40, 5 }
 0x292   : > { %3813 = vmatmul.bf16.gmra.mxu2 %v3681_v47  ;;  %v2232_v29 = vadd.f32 %v2162_v0, %v7246_v55  ;;  %v3538_v55 = vsel %vm7319_vm5, %v3533_v18, %v7751_v6  ;;  %v3563_v47 = vshrl.u32 %v3229_v37, 16  ;;  %v4995_v6 = vsel %vm7319_vm5, %v4990_v10, %v4994_v60  ;;  %v8415_v18 = vld [vmem:[#allocation14_spill] sm:$0xff]  ;;  %v7804_v40 = vpop.f32.mrf.mxu0 }
 0x293   : > { %4741 = vmatmul.bf16.gmra.mxu0 %v6483_v48  ;;  %v6489_v48 = vld [vmem:[#allocation8 + $0x180] sm:$0xff]  ;;  %v3662_v9 = vunpack.c.l.b16 %v3538_v55  ;;  %v3555_v0 = vrot.slane %v3553_v27, 5  ;;  %v1948_v42 = vsel %vm7319_vm5, %v1943_v59, %v7766_v50  ;;  %v1958_v62 = vsel %vm7319_vm5, %v1953_v33, %v1957_v30 }
 0x294   : > { %v2882_v17 = vadd.f32 %v8414_v8, %v2232_v29  ;;  %4408 = vmatpush.bf16.msra.mxu3 %v6489_v48  ;;  %v3565_v2 = vrot.slane %v3563_v47, 4  ;;  %v1960_v37 = vshrl.u32 %v1614_v49, 16  ;;  %v1963_v60 = vshll.u32 %v1614_v49, 16  ;;  %v6484_v47 = vld [vmem:[#allocation2 + $0xd4] sm:$0xff] }
 0x295   : > { %v3774_v21 = vpop.f32.mrf.mxu2  ;;  %v4985_v27 = vsel %vm7319_vm5, %v4980_v51, %v7757_v15  ;;  %v3556_v8 = vor.u32 %v3555_v0, %v3552_v45  ;;  %v3682_v50 = vpack.c.b16 %v3663_v5, %v3662_v9  ;;  %v5264_v48 = vunpack.c.l.b16 %v4995_v6  ;;  %v4824_v9 = vld [vmem:[#allocation2 + $0x8c] sm:$0x1] }
 0x296   : > { %v7776_v31 = vadd.f32 %v3774_v21, %v3163_v1  ;;  %2204 = vmatmul.bf16.gmra.mxu3 %v2068_v38  ;;  %5393 = vmatmul.bf16.gmra.mxu1 %v5289_v56  ;;  %v1615_v56 = vld [vmem:[#allocation2 + $0xe8] sm:$0xf]  ;;  %v4822_v21 = vld [vmem:[#allocation2 + $0x84] sm:$0xf]  ;;  %v5010_v38 = vshrl.u32 %v4823_v16, 16  ;;  %v3566_v59 = vor.u32 %v3565_v2, %v7792_v46  ;;  %v3569_v16 = vshll.u32 %v3230_v61, 16 }
 0x297   : > { %v8416_v1 = vld [vmem:[#allocation38_spill] sm:$0xff]  ;;  %v1969_v55 = vshll.u32 %v1615_v56, 16  ;;  %v1973_v36 = vshrl.u32 %v1615_v56, 16  ;;  %v5000_v24 = vshll.u32 %v4822_v21, 16  ;;  %v2050_v33 = vunpack.c.l.b16 %v1948_v42  ;;  %v7809_v56 = vpop.f32.mrf.mxu1 }
 0x298   : > { %v3164_v13 = vadd.f32 %v8416_v1, %v2882_v17  ;;  %v4997_v17 = vshrl.u32 %v4822_v21, 16  ;;  %v2051_v30 = vunpack.c.l.b16 %v1958_v62  ;;  %v7807_v49 = vrot.slane %v5006_v23, 5  ;;  %8417 = vst [vmem:[#allocation15_spill] sm:$0xff] %v7809_v56  ;;  %v1616_v1 = vld [vmem:[#allocation2 + $0xec] sm:$0x1]  ;;  %v8418_v21 = vld [vmem:[#allocation16_spill] sm:$0xff] }
 0x299   : > { %v2165_v39 = vpop.f32.mrf.mxu3  ;;  %v1962_v15 = vrot.slane %v1960_v37, 4  ;;  %v1965_v51 = vrot.slane %v1963_v60, 5  ;;  %v7811_v45 = vrot.slane %v1969_v55, 5  ;;  %v1975_v0 = vrot.slane %v1973_v36, 4  ;;  %v3231_v62 = vld [vmem:[#allocation2 + $0xf4] sm:$0xf] }
 0x29a   : > { %v7789_v29 = vadd.f32 %v2165_v39, %v8415_v18  ;;  %v5012_v39 = vrot.slane %v5010_v38, 4  ;;  %v5263_v6 = vunpack.c.l.b16 %v4985_v27  ;;  %v3557_v18 = vrot.slane %v3556_v8, 4  ;;  %v3232_v60 = vld [vmem:[#allocation2 + $0xf8] sm:$0xf]  ;;  %v4825_v8 = vld [vmem:[#allocation2 + $0x94] sm:$0xf] }
 0x29b   : > { %v5002_v2 = vrot.slane %v5000_v24, 5  ;;  %v3571_v42 = vrot.slane %v3569_v16, 5  ;;  %v5016_v38 = vshll.u32 %v4824_v9, 16  ;;  %v2069_v55 = vpack.c.b16 %v2051_v30, %v2050_v33  ;;  %v8431_v56 = vld [vmem:[#allocation29_spill] sm:$0xff] }
 0x29c   : > { %v5290_v61 = vpack.c.b16 %v5264_v48, %v5263_v6  ;;  %v5013_v37 = vor.u32 %v5012_v39, %v7807_v49  ;;  %v1966_v36 = vor.u32 %v1965_v51, %v1962_v15  ;;  %v1979_v27 = vshll.u32 %v1616_v1, 16  ;;  %v7823_v51 = vpop.f32.mrf.mxu0  ;;  %v4826_v6 = vld [vmem:[#allocation2 + $0x98] sm:$0xf] }
 0x29d   : > { %v3776_v34 = vpop.f32.mrf.mxu2  ;;  %v3583_v16 = vshll.u32 %v3232_v60, 16  ;;  %v3587_v39 = vshrl.u32 %v3232_v60, 16  ;;  %v5018_v30 = vrot.slane %v5016_v38, 5  ;;  %v5021_v15 = vshrl.u32 %v4825_v8, 16 }
 0x29e   : > { %v7799_v10 = vadd.f32 %v3776_v34, %v3164_v13  ;;  %v4999_v13 = vrot.slane %v4997_v17, 4  ;;  %v3567_v34 = vrot.slane %v3566_v59, 4  ;;  %v3562_v17 = vsel %vm7319_vm5, %v3557_v18, %v7792_v46 }
 0x29f   : > { %v3577_v59 = vshll.u32 %v3231_v62, 16  ;;  %v5014_v33 = vrot.slane %v5013_v37, 4  ;;  %v5024_v46 = vshll.u32 %v4825_v8, 16  ;;  %v3664_v1 = vunpack.c.l.b16 %v3562_v17 }
 0x2a0   : > { %v5003_v24 = vor.u32 %v5002_v2, %v4999_v13  ;;  %v3572_v48 = vsel %vm7319_vm5, %v3567_v34, %v3571_v42  ;;  %v7825_v34 = vpop.f32.mrf.mxu1  ;;  %v8420_v42 = vld [vmem:[#allocation18_spill] sm:$0xff]  ;;  %v7830_v38 = vrot.slane %v3583_v16, 5  ;;  %v3589_v60 = vrot.slane %v3587_v39, 4 }
 0x2a1   : > { %v2167_v5 = vpop.f32.mrf.mxu3  ;;  %v3665_v13 = vunpack.c.l.b16 %v3572_v48  ;;  %8419 = vst [vmem:[#allocation14_spill] sm:$0xff] %v7825_v34  ;;  %v3579_v37 = vrot.slane %v3577_v59, 5  ;;  %v5023_v8 = vrot.slane %v5021_v15, 4  ;;  %v5030_v17 = vshll.u32 %v4826_v6, 16  ;;  %v4834_v34 = vld [vmem:[#allocation2 + $0xc4] sm:$0xf] }
 0x2a2   : > { %3818 = vmatmul.bf16.gmra.mxu2 %v3682_v50  ;;  %v7814_v23 = vadd.f32 %v2167_v5, %v8418_v21  ;;  %v1976_v50 = vor.u32 %v1975_v0, %v7811_v45  ;;  %v1967_v0 = vrot.slane %v1966_v36, 4  ;;  %v1981_v5 = vrot.slane %v1979_v27, 5  ;;  %v3233_v27 = vld [vmem:[#allocation2 + $0xfc] sm:$0x1] }
 0x2a3   : > { %4746 = vmatmul.bf16.gmra.mxu0 %v6484_v47  ;;  %v3574_v47 = vshrl.u32 %v3231_v62, 16  ;;  %v5004_v2 = vrot.slane %v5003_v24, 4  ;;  %v5026_v48 = vrot.slane %v5024_v46, 5  ;;  %v5034_v59 = vshrl.u32 %v4826_v6, 16 }
 0x2a4   : > { %v1977_v9 = vrot.slane %v1976_v50, 4  ;;  %v5019_v50 = vsel %vm7319_vm5, %v5014_v33, %v5018_v30  ;;  %v1972_v24 = vsel %vm7319_vm5, %v1967_v0, %v7811_v45  ;;  %v3590_v33 = vor.u32 %v3589_v60, %v7830_v38 }
 0x2a5   : > { %v3576_v21 = vrot.slane %v3574_v47, 4  ;;  %v5009_v36 = vsel %vm7319_vm5, %v5004_v2, %v7807_v49  ;;  %v3683_v49 = vpack.c.b16 %v3665_v13, %v3664_v1  ;;  %v6485_v2 = vld [vmem:[#allocation2 + $0xe4] sm:$0xff]  ;;  %v3593_v30 = vshll.u32 %v3233_v27, 16  ;;  %v4827_v13 = vld [vmem:[#allocation2 + $0x9c] sm:$0x1] }
 0x2a6   : > { %2209 = vmatmul.bf16.gmra.mxu3 %v2069_v55  ;;  %5398 = vmatmul.bf16.gmra.mxu1 %v5290_v61  ;;  %v1617_v61 = vld [vmem:[#allocation2 + $0xf4] sm:$0xf]  ;;  %v1618_v55 = vld [vmem:[#allocation2 + $0xf8] sm:$0xf]  ;;  %v1982_v47 = vsel %vm7319_vm5, %v1977_v9, %v1981_v5  ;;  %v5265_v15 = vunpack.c.l.b16 %v5009_v36  ;;  %v5266_v4 = vunpack.c.l.b16 %v5019_v50  ;;  %v7843_v14 = vrot.slane %v5030_v17, 5 }
 0x2a7   : > { %v1984_v16 = vshrl.u32 %v1617_v61, 16  ;;  %v1987_v39 = vshll.u32 %v1617_v61, 16  ;;  %v3580_v28 = vor.u32 %v3579_v37, %v3576_v21  ;;  %v2052_v45 = vunpack.c.l.b16 %v1972_v24  ;;  %v7847_v21 = vpop.f32.mrf.mxu0  ;;  %v8421_v37 = vld [vmem:[#allocation20_spill] sm:$0xff] }
 0x2a8   : > { %v2053_v0 = vunpack.c.l.b16 %v1982_v47  ;;  %v5027_v9 = vor.u32 %v5026_v48, %v5023_v8  ;;  %v5036_v5 = vrot.slane %v5034_v59, 4  ;;  %v3591_v50 = vrot.slane %v3590_v33, 4  ;;  %v1619_v17 = vld [vmem:[#allocation2 + $0xfc] sm:$0x1]  ;;  %v7852_v24 = vpop.f32.mrf.mxu1 }
 0x2a9   : > { %v2170_v18 = vpop.f32.mrf.mxu3  ;;  %v1986_v46 = vrot.slane %v1984_v16, 4  ;;  %v1989_v61 = vrot.slane %v1987_v39, 5  ;;  %v3581_v36 = vrot.slane %v3580_v28, 4  ;;  %v3595_v27 = vrot.slane %v3593_v30, 5  ;;  %8422 = vst [vmem:[#allocation38_spill] sm:$0xff] %v7852_v24 }
 0x2aa   : > { %v7828_v62 = vadd.f32 %v2170_v18, %v8420_v42  ;;  %v1993_v18 = vshll.u32 %v1618_v55, 16  ;;  %v1997_v42 = vshrl.u32 %v1618_v55, 16  ;;  %v2070_v8 = vpack.c.b16 %v2053_v0, %v2052_v45  ;;  %v3234_v16 = vld [vmem:[#allocation2 + $0x104] sm:$0xf]  ;;  %v3235_v39 = vld [vmem:[#allocation2 + $0x108] sm:$0xf] }
 0x2ab   : > { %v5291_v47 = vpack.c.b16 %v5266_v4, %v5265_v15  ;;  %v5037_v48 = vor.u32 %v5036_v5, %v7843_v14  ;;  %v5040_v59 = vshll.u32 %v4827_v13, 16  ;;  %v3586_v28 = vsel %vm7319_vm5, %v3581_v36, %v7830_v38  ;;  %v4828_v13 = vld [vmem:[#allocation2 + $0xa4] sm:$0xf]  ;;  %v4829_v36 = vld [vmem:[#allocation2 + $0xa8] sm:$0xf] }
 0x2ac   : > { %v7845_v55 = vrot.slane %v1993_v18, 5  ;;  %v1999_v1 = vrot.slane %v1997_v42, 4  ;;  %v1990_v18 = vor.u32 %v1989_v61, %v1986_v46  ;;  %v5028_v33 = vrot.slane %v5027_v9, 4 }
 0x2ad   : > { %v3598_v4 = vshrl.u32 %v3234_v16, 16  ;;  %v3601_v30 = vshll.u32 %v3234_v16, 16  ;;  %v3607_v15 = vshll.u32 %v3235_v39, 16  ;;  %v3611_v45 = vshrl.u32 %v3235_v39, 16 }
 0x2ae   : > { %v2000_v42 = vor.u32 %v1999_v1, %v7845_v55  ;;  %v5038_v0 = vrot.slane %v5037_v48, 4  ;;  %v5042_v5 = vrot.slane %v5040_v59, 5  ;;  %v1991_v46 = vrot.slane %v1990_v18, 4  ;;  %v3874_v59 = vld [vmem:[#allocation2 + $0x28] sm:$0xf] }
 0x2af   : > { %v5033_v9 = vsel %vm7319_vm5, %v5028_v33, %v7843_v14  ;;  %v3613_v48 = vrot.slane %v3611_v45, 4  ;;  %v7867_v16 = vpop.f32.mrf.mxu0  ;;  %v3236_v18 = vld [vmem:[#allocation2 + $0x10c] sm:$0x1]  ;;  %v5058_v33 = vshrl.u32 %v4829_v36, 16 }
 0x2b0   : > { %v2001_v61 = vrot.slane %v2000_v42, 4  ;;  %v5043_v39 = vsel %vm7319_vm5, %v5038_v0, %v5042_v5  ;;  %v5045_v42 = vshrl.u32 %v4828_v13, 16  ;;  %v5267_v45 = vunpack.c.l.b16 %v5033_v9 }
 0x2b1   : > { %v2172_v6 = vpop.f32.mrf.mxu3  ;;  %v3617_v7 = vshll.u32 %v3236_v18, 16  ;;  %v3872_v18 = vld [vmem:[#allocation2 + $0x20] sm:$0x8] }
 0x2b2   : > { %3823 = vmatmul.bf16.gmra.mxu2 %v3683_v49  ;;  %v7850_v60 = vadd.f32 %v2172_v6, %v8421_v37  ;;  %v2003_v49 = vshll.u32 %v1619_v17, 16  ;;  %v8423_v37 = vld [vmem:[#allocation22_spill] sm:$0xff] }
 0x2b3   : > { %4751 = vmatmul.bf16.gmra.mxu0 %v6485_v2  ;;  %v3596_v2 = vsel %vm7319_vm5, %v3591_v50, %v3595_v27  ;;  %v3600_v50 = vrot.slane %v3598_v4, 4  ;;  %v3603_v27 = vrot.slane %v3601_v30, 5  ;;  %v7876_v4 = vpop.f32.mrf.mxu1 }
 0x2b4   : > { %v2005_v1 = vrot.slane %v2003_v49, 5  ;;  %v3667_v38 = vunpack.c.l.b16 %v3596_v2  ;;  %v5048_v49 = vshll.u32 %v4828_v13, 16  ;;  %v5054_v2 = vshll.u32 %v4829_v36, 16  ;;  %8424 = vst [vmem:[#allocation16_spill] sm:$0xff] %v7876_v4  ;;  %v3873_v13 = vld [vmem:[#allocation2 + $0x24] sm:$0xf] }
 0x2b5   : > { %v3604_v0 = vor.u32 %v3603_v27, %v3600_v50  ;;  %v5060_v36 = vrot.slane %v5058_v33, 4  ;;  %v3619_v50 = vrot.slane %v3617_v7, 5  ;;  %v3921_v7 = vshrl.u32 %v3872_v18, 16  ;;  %v3877_v18 = vld [vmem:[#allocation2 + $0x38] sm:$0xf] }
 0x2b6   : > { %2214 = vmatmul.bf16.gmra.mxu3 %v2070_v8  ;;  %5403 = vmatmul.bf16.gmra.mxu1 %v5291_v47  ;;  %v3666_v8 = vunpack.c.l.b16 %v3586_v28  ;;  %v3609_v47 = vrot.slane %v3607_v15, 5  ;;  %v1996_v28 = vsel %vm7319_vm5, %v1991_v46, %v7845_v55  ;;  %v2006_v14 = vsel %vm7319_vm5, %v2001_v61, %v2005_v1  ;;  %v6486_v15 = vld [vmem:[#allocation2 + $0xf4] sm:$0xff] }
 0x2b7   : > { %v2054_v20 = vunpack.c.l.b16 %v1996_v28  ;;  %v2055_v55 = vunpack.c.l.b16 %v2006_v14  ;;  %v5047_v46 = vrot.slane %v5045_v42, 4  ;;  %v5050_v26 = vrot.slane %v5048_v49, 5  ;;  %v7881_v42 = vpop.f32.mrf.mxu0 }
 0x2b8   : > { %v3684_v30 = vpack.c.b16 %v3667_v38, %v3666_v8  ;;  %v3614_v5 = vor.u32 %v3613_v48, %v3609_v47  ;;  %v5056_v1 = vrot.slane %v5054_v2, 5  ;;  %v3926_v8 = vshrl.u32 %v3873_v13, 16  ;;  %v4830_v38 = vld [vmem:[#allocation2 + $0xac] sm:$0x1] }
 0x2b9   : > { %v2175_v6 = vpop.f32.mrf.mxu3  ;;  %v3605_v9 = vrot.slane %v3604_v0, 4  ;;  %v2071_v27 = vpack.c.b16 %v2055_v55, %v2054_v20  ;;  %v5064_v14 = vshll.u32 %v4830_v38, 16  ;;  %v3938_v2 = vshll.u32 %v3874_v59, 16  ;;  %v4831_v55 = vld [vmem:[#allocation2 + $0xb4] sm:$0xf] }
 0x2ba   : > { %v7862_v17 = vadd.f32 %v2175_v6, %v8423_v37  ;;  %v3935_v6 = vshrl.u32 %v3874_v59, 16  ;;  %v5268_v37 = vunpack.c.l.b16 %v5043_v39  ;;  %v3615_v39 = vrot.slane %v3614_v5, 4 }
 0x2bb   : > { %v5061_v28 = vor.u32 %v5060_v36, %v5056_v1  ;;  %v3928_v49 = vrot.slane %v3926_v8, 7  ;;  %v7887_v20 = vpop.f32.mrf.mxu1  ;;  %v5066_v5 = vrot.slane %v5064_v14, 5  ;;  %v6187_v38 = vrot.slane %v3921_v7, 11 }
 0x2bc   : > { %v5292_v48 = vpack.c.b16 %v5268_v37, %v5267_v45  ;;  %v3620_v33 = vsel %vm7319_vm5, %v3615_v39, %v3619_v50  ;;  %8426 = vst [vmem:[#allocation18_spill] sm:$0xff] %v7887_v20  ;;  %v3929_v37 = vshll.u32 %v3873_v13, 16 }
 0x2bd   : > { %v5062_v0 = vrot.slane %v5061_v28, 4  ;;  %v3669_v36 = vunpack.c.l.b16 %v3620_v33  ;;  %v3933_v8 = vrot.slane %v3928_v49, 4 }
 0x2bf   : > { %v5067_v13 = vsel %vm7319_vm5, %v5062_v0, %v5066_v5  ;;  %v7900_v33 = vpop.f32.mrf.mxu0 }
 0x2c1   : > { %v2177_v61 = vpop.f32.mrf.mxu3 }
 0x2c2   : > { %3828 = vmatmul.bf16.gmra.mxu2 %v3684_v30  ;;  %v7879_v4 = vadd.f32 %v2177_v61, %v8425_v19  ;;  %v3937_v30 = vrot.slane %v3935_v6, 7  ;;  %v3610_v19 = vsel %vm7319_vm5, %v3605_v9, %v3609_v47  ;;  %v4832_v47 = vld [vmem:[#allocation2 + $0xb8] sm:$0xf]  ;;  %v3931_v9 = vor.u32 %v3929_v37, %v3928_v49  ;;  %v3876_v49 = vld [vmem:[#allocation2 + $0x34] sm:$0xf] }
 0x2c3   : > { %4756 = vmatmul.bf16.gmra.mxu0 %v6486_v15  ;;  %v5051_v15 = vor.u32 %v5050_v26, %v5047_v46  ;;  %v8427_v46 = vld [vmem:[#allocation25_spill] sm:$0xff]  ;;  %v3668_v59 = vunpack.c.l.b16 %v3610_v19  ;;  %v5082_v28 = vshrl.u32 %v4832_v47, 16  ;;  %v3951_v24 = vshll.u32 %v3876_v49, 16 }
 0x2c4   : > { %v3940_v45 = vor.u32 %v3938_v2, %v3937_v30  ;;  %v5072_v30 = vshll.u32 %v4831_v55, 16  ;;  %v6487_v2 = vld [vmem:[#allocation2 + $0x104] sm:$0xff]  ;;  %v3932_v19 = vsel %vm7058_vm2, %v6187_v38, %v3931_v9  ;;  %v4833_v38 = vld [vmem:[#allocation2 + $0xbc] sm:$0x1] }
 0x2c5   : > { %v5052_v6 = vrot.slane %v5051_v15, 4  ;;  %v5078_v15 = vshll.u32 %v4832_v47, 16  ;;  %v3685_v14 = vpack.c.b16 %v3669_v36, %v3668_v59  ;;  %v8430_v59 = vld [vmem:[#allocation27_spill] sm:$0xff]  ;;  %v3948_v47 = vshrl.u32 %v3876_v49, 16 }
 0x2c6   : > { %2219 = vmatmul.bf16.gmra.mxu3 %v2071_v27  ;;  %5408 = vmatmul.bf16.gmra.mxu1 %v5292_v48  ;;  %v3941_v50 = vsel %vm7058_vm2, %v3933_v8, %v3940_v45  ;;  %v5069_v48 = vshrl.u32 %v4831_v55, 16  ;;  %v5270_v45 = vunpack.c.l.b16 %v5067_v13  ;;  %v5074_v0 = vrot.slane %v5072_v30, 5 }
 0x2c7   : > { %v5057_v27 = vsel %vm7319_vm5, %v5052_v6, %v5056_v1  ;;  %v4290_v7 = vunpack.c.l.b16 %v3941_v50  ;;  %v3957_v6 = vshrl.u32 %v3877_v18, 16  ;;  %v5080_v5 = vrot.slane %v5078_v15, 5 }
 0x2c8   : > { %v5269_v1 = vunpack.c.l.b16 %v5057_v27  ;;  %v5071_v37 = vrot.slane %v5069_v48, 4  ;;  %v5084_v55 = vrot.slane %v5082_v28, 4  ;;  %v4289_v8 = vunpack.c.l.b16 %v3932_v19 }
 0x2c9   : > { %v2180_v26 = vpop.f32.mrf.mxu3  ;;  %v3959_v50 = vrot.slane %v3957_v6, 7  ;;  %v5088_v20 = vshll.u32 %v4833_v38, 16  ;;  %v3950_v48 = vrot.slane %v3948_v47, 7  ;;  %v3960_v30 = vshll.u32 %v3877_v18, 16 }
 0x2ca   : > { %v7890_v61 = vadd.f32 %v2180_v26, %v8427_v46  ;;  %v7902_v46 = vpop.f32.mrf.mxu1  ;;  %v4321_v9 = vpack.c.b16 %v4290_v7, %v4289_v8  ;;  %v5075_v27 = vor.u32 %v5074_v0, %v5071_v37  ;;  %v5085_v13 = vor.u32 %v5084_v55, %v5080_v5  ;;  %v3880_v55 = vld [vmem:[#allocation2 + $0x48] sm:$0xf] }
 0x2cb   : > { %8429 = vst [vmem:[#allocation20_spill] sm:$0xff] %v7902_v46  ;;  %v3962_v28 = vor.u32 %v3960_v30, %v3959_v50  ;;  %v5090_v19 = vrot.slane %v5088_v20, 5  ;;  %v3953_v37 = vor.u32 %v3951_v24, %v3950_v48  ;;  %v5093_v8 = vshrl.u32 %v4834_v34, 16 }
 0x2cc   : > { %v5096_v47 = vshll.u32 %v4834_v34, 16 }
 0x2d1   : > { %v2182_v26 = vpop.f32.mrf.mxu3 }
 0x2d2   : > { %3833 = vmatmul.bf16.gmra.mxu2 %v3685_v14  ;;  %v7905_v36 = vadd.f32 %v2182_v26, %v8430_v59  ;;  %v5293_v14 = vpack.c.b16 %v5270_v45, %v5269_v1  ;;  %v5076_v26 = vrot.slane %v5075_v27, 4  ;;  %v5086_v59 = vrot.slane %v5085_v13, 4  ;;  %v4835_v45 = vld [vmem:[#allocation2 + $0xc8] sm:$0xf]  ;;  %v7910_v0 = vpop.f32.mrf.mxu1 }
 0x2d3   : > { %4761 = vmatmul.bf16.gmra.mxu0 %v6487_v2  ;;  %v3875_v2 = vld [vmem:[#allocation2 + $0x30] sm:$0x8]  ;;  %v3955_v1 = vrot.slane %v3950_v48, 4  ;;  %8432 = vst [vmem:[#allocation22_spill] sm:$0xff] %v7910_v0  ;;  %v5095_v27 = vrot.slane %v5093_v8, 4  ;;  %v5098_v13 = vrot.slane %v5096_v47, 5 }
 0x2d4   : > { %v3943_v15 = vshrl.u32 %v3875_v2, 16  ;;  %v5081_v49 = vsel %vm7319_vm5, %v5076_v26, %v5080_v5  ;;  %v5091_v20 = vsel %vm7319_vm5, %v5086_v59, %v5090_v19  ;;  %v4836_v59 = vld [vmem:[#allocation2 + $0xcc] sm:$0x1]  ;;  %v3982_v47 = vshll.u32 %v3880_v55, 16 }
 0x2d5   : > { %v3963_v18 = vsel %vm7058_vm2, %v3955_v1, %v3962_v28  ;;  %v5271_v2 = vunpack.c.l.b16 %v5081_v49  ;;  %v5272_v50 = vunpack.c.l.b16 %v5091_v20  ;;  %v5112_v0 = vshll.u32 %v4836_v59, 16  ;;  %v3883_v59 = vld [vmem:[#allocation2 + $0x58] sm:$0xf] }
 0x2d6   : > { %4409 = vmatmul.bf16.vlgmr.msra.gmra.mxu3 %v4321_v9  ;;  %5413 = vmatmul.bf16.gmra.mxu1 %v5293_v14  ;;  %v6188_v6 = vrot.slane %v3943_v15, 11  ;;  %v4292_v24 = vunpack.c.l.b16 %v3963_v18  ;;  %v3879_v9 = vld [vmem:[#allocation2 + $0x44] sm:$0xf]  ;;  %v3979_v14 = vshrl.u32 %v3880_v55, 16  ;;  %v8433_v15 = vld [vmem:[#allocation31_spill] sm:$0xff] }
 0x2d7   : > { %v3970_v26 = vshrl.u32 %v3879_v9, 16  ;;  %v5294_v1 = vpack.c.b16 %v5272_v50, %v5271_v2  ;;  %v5114_v25 = vrot.slane %v5112_v0, 5  ;;  %v8436_v2 = vld [vmem:[#allocation33_spill] sm:$0xff] }
 0x2d8   : > { %v3954_v38 = vsel %vm7058_vm2, %v6188_v6, %v3953_v37  ;;  %v3981_v6 = vrot.slane %v3979_v14, 7  ;;  %v5099_v37 = vor.u32 %v5098_v13, %v5095_v27  ;;  %v4838_v27 = vld [vmem:[#allocation2 + $0xd8] sm:$0xf] }
 0x2d9   : > { %v2185_v46 = vpop.f32.mrf.mxu3  ;;  %v4291_v28 = vunpack.c.l.b16 %v3954_v38  ;;  %v3972_v8 = vrot.slane %v3970_v26, 7  ;;  %v3973_v38 = vshll.u32 %v3879_v9, 16 }
 0x2da   : > { %v7908_v7 = vadd.f32 %v2185_v46, %v8431_v56  ;;  %v5102_v56 = vshll.u32 %v4835_v45, 16  ;;  %v5106_v46 = vshrl.u32 %v4835_v45, 16  ;;  %v3878_v45 = vld [vmem:[#allocation2 + $0x40] sm:$0x8]  ;;  %v7923_v49 = vpop.f32.mrf.mxu1 }
 0x2db   : > { %v4322_v19 = vpack.c.b16 %v4292_v24, %v4291_v28  ;;  %8435 = vst [vmem:[#allocation25_spill] sm:$0xff] %v7923_v49  ;;  %v3965_v20 = vshrl.u32 %v3878_v45, 16  ;;  %v4837_v24 = vld [vmem:[#allocation2 + $0xd4] sm:$0xf]  ;;  %v3977_v14 = vrot.slane %v3972_v8, 4 }
 0x2dc   : > { %v5104_v34 = vrot.slane %v5102_v56, 5  ;;  %v5108_v30 = vrot.slane %v5106_v46, 4  ;;  %v3984_v56 = vor.u32 %v3982_v47, %v3981_v6  ;;  %v5100_v46 = vrot.slane %v5099_v37, 4  ;;  %v3882_v6 = vld [vmem:[#allocation2 + $0x54] sm:$0xf] }
 0x2dd   : > { %v6189_v13 = vrot.slane %v3965_v20, 11  ;;  %v5117_v26 = vshrl.u32 %v4837_v24, 16  ;;  %v5120_v0 = vshll.u32 %v4837_v24, 16  ;;  %v4001_v20 = vshrl.u32 %v3883_v59, 16 }
 0x2de   : > { %v5109_v18 = vor.u32 %v5108_v30, %v5104_v34  ;;  %v3975_v30 = vor.u32 %v3973_v38, %v3972_v8  ;;  %v3985_v28 = vsel %vm7058_vm2, %v3977_v14, %v3984_v56  ;;  %v5105_v55 = vsel %vm7319_vm5, %v5100_v46, %v5104_v34  ;;  %v4839_v14 = vld [vmem:[#allocation2 + $0xdc] sm:$0x1] }
 0x2df   : > { %v5273_v8 = vunpack.c.l.b16 %v5105_v55  ;;  %v5119_v34 = vrot.slane %v5117_v26, 4  ;;  %v5122_v46 = vrot.slane %v5120_v0, 5  ;;  %v4003_v49 = vrot.slane %v4001_v20, 7  ;;  %v4841_v20 = vld [vmem:[#allocation2 + $0xe8] sm:$0xf] }
 0x2e0   : > { %v3976_v45 = vsel %vm7058_vm2, %v6189_v13, %v3975_v30  ;;  %v3881_v30 = vld [vmem:[#allocation2 + $0x50] sm:$0x8]  ;;  %v5136_v55 = vshll.u32 %v4839_v14, 16  ;;  %v4004_v26 = vshll.u32 %v3883_v59, 16  ;;  %v3995_v41 = vshll.u32 %v3882_v6, 16 }
 0x2e1   : > { %v2187_v48 = vpop.f32.mrf.mxu3  ;;  %v4293_v24 = vunpack.c.l.b16 %v3976_v45  ;;  %v3987_v0 = vshrl.u32 %v3881_v30, 16  ;;  %v5154_v14 = vshrl.u32 %v4841_v20, 16 }
 0x2e2   : > { %v7921_v5 = vadd.f32 %v2187_v48, %v8433_v15  ;;  %v5110_v15 = vrot.slane %v5109_v18, 4  ;;  %v7936_v37 = vpop.f32.mrf.mxu1  ;;  %v4294_v18 = vunpack.c.l.b16 %v3985_v28  ;;  %v5138_v45 = vrot.slane %v5136_v55, 5 }
 0x2e3   : > { %8438 = vst [vmem:[#allocation27_spill] sm:$0xff] %v7936_v37  ;;  %v5123_v37 = vor.u32 %v5122_v46, %v5119_v34  ;;  %v6190_v34 = vrot.slane %v3987_v0, 11 }
 0x2e4   : > { %8434 = vst [vmem:[#allocation24_spill] sm:$0xff] %v7921_v5  ;;  %v5115_v9 = vsel %vm7319_vm5, %v5110_v15, %v5114_v25  ;;  %v8439_v25 = vld [vmem:[#allocation34_spill] sm:$0xff] }
 0x2e5   : > { %v5274_v47 = vunpack.c.l.b16 %v5115_v9 }
 0x2e6   : > { %4414 = vmatmul.bf16.gmra.mxu3 %v4322_v19  ;;  %5418 = vmatmul.bf16.gmra.mxu1 %v5294_v1  ;;  %v5126_v19 = vshll.u32 %v4838_v27, 16  ;;  %v5130_v1 = vshrl.u32 %v4838_v27, 16  ;;  %v4323_v27 = vpack.c.b16 %v4294_v18, %v4293_v24  ;;  %v8442_v18 = vld [vmem:[#allocation36_spill] sm:$0xff]  ;;  %v3886_v24 = vld [vmem:[#allocation2 + $0x68] sm:$0xf] }
 0x2e7   : > { %v5295_v13 = vpack.c.b16 %v5274_v47, %v5273_v8  ;;  %v4023_v55 = vshrl.u32 %v3886_v24, 16 }
 0x2e8   : > { %v5132_v38 = vrot.slane %v5130_v1, 4 }
 0x2e9   : > { %v2190_v48 = vpop.f32.mrf.mxu3 }
 0x2ea   : > { %v7926_v50 = vadd.f32 %v2190_v48, %v8436_v2  ;;  %v5128_v48 = vrot.slane %v5126_v19, 5  ;;  %v3992_v2 = vshrl.u32 %v3882_v6, 16  ;;  %v4006_v19 = vor.u32 %v4004_v26, %v4003_v49 }
 0x2eb   : > { %v5144_v49 = vshll.u32 %v4840_v63, 16 }
 0x2ec   : > { %8437 = vst [vmem:[#allocation13_spill] sm:$0xff] %v7926_v50  ;;  %v5133_v28 = vor.u32 %v5132_v38, %v5128_v48  ;;  %v3994_v9 = vrot.slane %v3992_v2, 7  ;;  %v5141_v38 = vshrl.u32 %v4840_v63, 16  ;;  %v5150_v2 = vshll.u32 %v4841_v20, 16  ;;  %v8446_v50 = vld [vmem:[#allocation41_spill] sm:$0xff] }
 0x2ed   : > { %v5146_v63 = vrot.slane %v5144_v49, 5 }
 0x2ee   : > { %v3999_v47 = vrot.slane %v3994_v9, 4  ;;  %v3997_v46 = vor.u32 %v3995_v41, %v3994_v9  ;;  %v5143_v26 = vrot.slane %v5141_v38, 4  ;;  %v5152_v0 = vrot.slane %v5150_v2, 5 }
 0x2ef   : > { %v4026_v2 = vshll.u32 %v3886_v24, 16  ;;  %v3889_v24 = vld [vmem:[#allocation2 + $0x78] sm:$0xf] }
 0x2f0   : > { %v4007_v59 = vsel %vm7058_vm2, %v3999_v47, %v4006_v19  ;;  %v5156_v19 = vrot.slane %v5154_v14, 4 }
 0x2f1   : > { %v2192_v56 = vpop.f32.mrf.mxu3  ;;  %v4296_v30 = vunpack.c.l.b16 %v4007_v59  ;;  %v5147_v59 = vor.u32 %v5146_v63, %v5143_v26 }
 0x2f2   : > { %v7939_v15 = vadd.f32 %v2192_v56, %v8439_v25  ;;  %v5124_v56 = vrot.slane %v5123_v37, 4  ;;  %v5134_v25 = vrot.slane %v5133_v28, 4 }
 0x2f4   : > { %8440 = vst [vmem:[#allocation29_spill] sm:$0xff] %v7939_v15  ;;  %v7941_v15 = vpop.f32.mrf.mxu1  ;;  %v5129_v6 = vsel %vm7319_vm5, %v5124_v56, %v5128_v48  ;;  %v5139_v37 = vsel %vm7319_vm5, %v5134_v25, %v5138_v45  ;;  %v8444_v48 = vld [vmem:[#allocation39_spill] sm:$0xff]  ;;  %v4842_v45 = vld [vmem:[#allocation2 + $0xec] sm:$0x1] }
 0x2f5   : > { %8441 = vst [vmem:[#allocation31_spill] sm:$0xff] %v7941_v15  ;;  %v5275_v41 = vunpack.c.l.b16 %v5129_v6  ;;  %v5276_v28 = vunpack.c.l.b16 %v5139_v37  ;;  %v5157_v6 = vor.u32 %v5156_v19, %v5152_v0  ;;  %v5160_v37 = vshll.u32 %v4842_v45, 16 }
 0x2f6   : > { %4419 = vmatmul.bf16.gmra.mxu3 %v4323_v27  ;;  %5423 = vmatmul.bf16.gmra.mxu1 %v5295_v13  ;;  %v3998_v27 = vsel %vm7058_vm2, %v6190_v34, %v3997_v46  ;;  %v3885_v13 = vld [vmem:[#allocation2 + $0x64] sm:$0xf]  ;;  %v4025_v46 = vrot.slane %v4023_v55, 7  ;;  %v5148_v15 = vrot.slane %v5147_v59, 4 }
 0x2f7   : > { %v4295_v56 = vunpack.c.l.b16 %v3998_v27  ;;  %v4014_v25 = vshrl.u32 %v3885_v13, 16  ;;  %v5296_v34 = vpack.c.b16 %v5276_v28, %v5275_v41  ;;  %v4017_v14 = vshll.u32 %v3885_v13, 16 }
 0x2f8   : > { %v5174_v13 = vshll.u32 %v4844_v11, 16 }
 0x2f9   : > { %v2195_v1 = vpop.f32.mrf.mxu3  ;;  %v4324_v20 = vpack.c.b16 %v4296_v30, %v4295_v56  ;;  %v4016_v49 = vrot.slane %v4014_v25, 7  ;;  %v5178_v56 = vshrl.u32 %v4844_v11, 16  ;;  %v5153_v25 = vsel %vm7319_vm5, %v5148_v15, %v5152_v0  ;;  %v4845_v15 = vld [vmem:[#allocation2 + $0xfc] sm:$0x1] }
 0x2fa   : > { %v7944_v8 = vadd.f32 %v2195_v1, %v8442_v18  ;;  %v3884_v18 = vld [vmem:[#allocation2 + $0x60] sm:$0x8]  ;;  %v8448_v0 = vld [vmem:[#allocation44_spill] sm:$0xff] }
 0x2fb   : > { %v4009_v38 = vshrl.u32 %v3884_v18, 16  ;;  %v4019_v28 = vor.u32 %v4017_v14, %v4016_v49  ;;  %v4021_v55 = vrot.slane %v4016_v49, 4  ;;  %v5176_v49 = vrot.slane %v5174_v13, 5 }
 0x2fc   : > { %8443 = vst [vmem:[#allocation33_spill] sm:$0xff] %v7944_v8  ;;  %v7957_v47 = vpop.f32.mrf.mxu1  ;;  %v5162_v8 = vrot.slane %v5160_v37, 5  ;;  %v5277_v37 = vunpack.c.l.b16 %v5153_v25  ;;  %v5180_v11 = vrot.slane %v5178_v56, 4 }
 0x2fd   : > { %v6191_v41 = vrot.slane %v4009_v38, 11 }
 0x301   : > { %v2197_v9 = vpop.f32.mrf.mxu3 }
 0x302   : > { %v7955_v1 = vadd.f32 %v2197_v9, %v8444_v48  ;;  %v4028_v9 = vor.u32 %v4026_v2, %v4025_v46  ;;  %v4843_v48 = vld [vmem:[#allocation2 + $0xf4] sm:$0xf]  ;;  %v4045_v46 = vshrl.u32 %v3889_v24, 16 }
 0x303   : > { %v5165_v26 = vshrl.u32 %v4843_v48, 16  ;;  %v5168_v63 = vshll.u32 %v4843_v48, 16 }
 0x304   : > { %8445 = vst [vmem:[#allocation34_spill] sm:$0xff] %v7955_v1  ;;  %v5158_v1 = vrot.slane %v5157_v6, 4  ;;  %v4029_v19 = vsel %vm7058_vm2, %v4021_v55, %v4028_v9  ;;  %v7968_v18 = vpop.f32.mrf.mxu1  ;;  %v4047_v48 = vrot.slane %v4045_v46, 7  ;;  %v5181_v55 = vor.u32 %v5180_v11, %v5176_v49 }
 0x305   : > { %v5167_v59 = vrot.slane %v5165_v26, 4  ;;  %v5170_v6 = vrot.slane %v5168_v63, 5  ;;  %v4048_v63 = vshll.u32 %v3889_v24, 16 }
 0x306   : > { %4424 = vmatmul.bf16.gmra.mxu3 %v4324_v20  ;;  %5428 = vmatmul.bf16.gmra.mxu1 %v5296_v34  ;;  %v5163_v45 = vsel %vm7319_vm5, %v5158_v1, %v5162_v8  ;;  %v4298_v20 = vunpack.c.l.b16 %v4029_v19  ;;  %v3888_v34 = vld [vmem:[#allocation2 + $0x74] sm:$0xf]  ;;  %v5184_v19 = vshll.u32 %v4845_v15, 16 }
 0x307   : > { %v5278_v38 = vunpack.c.l.b16 %v5163_v45  ;;  %v4036_v8 = vshrl.u32 %v3888_v34, 16  ;;  %v4050_v25 = vor.u32 %v4048_v63, %v4047_v48 }
 0x309   : > { %v2200_v27 = vpop.f32.mrf.mxu3  ;;  %v4038_v26 = vrot.slane %v4036_v8, 7  ;;  %v3892_v8 = vld [vmem:[#allocation2 + $0x88] sm:$0xf] }
 0x30a   : > { %v7960_v30 = vadd.f32 %v2200_v27, %v8446_v50  ;;  %v4020_v50 = vsel %vm7058_vm2, %v6191_v41, %v4019_v28  ;;  %v5297_v27 = vpack.c.b16 %v5278_v38, %v5277_v37  ;;  %v3887_v41 = vld [vmem:[#allocation2 + $0x70] sm:$0x8]  ;;  %v5171_v28 = vor.u32 %v5170_v6, %v5167_v59  ;;  %v4846_v59 = vld [vmem:[#allocation2 + $0x104] sm:$0xf]  ;;  %v4847_v6 = vld [vmem:[#allocation2 + $0x108] sm:$0xf] }
 0x30b   : > { %v4297_v14 = vunpack.c.l.b16 %v4020_v50  ;;  %v4031_v13 = vshrl.u32 %v3887_v41, 16  ;;  %v5182_v50 = vrot.slane %v5181_v55, 4  ;;  %v4043_v37 = vrot.slane %v4038_v26, 4 }
 0x30c   : > { %8447 = vst [vmem:[#allocation36_spill] sm:$0xff] %v7960_v30  ;;  %v7975_v56 = vpop.f32.mrf.mxu1  ;;  %v5172_v45 = vrot.slane %v5171_v28, 4  ;;  %v5198_v48 = vshll.u32 %v4847_v6, 16 }
 0x30d   : > { %v4325_v1 = vpack.c.b16 %v4298_v20, %v4297_v14  ;;  %v8450_v20 = vld [vmem:[#allocation46_spill] sm:$0xff]  ;;  %v6192_v38 = vrot.slane %v4031_v13, 11  ;;  %v4051_v24 = vsel %vm7058_vm2, %v4043_v37, %v4050_v25 }
 0x30e   : > { %v5177_v14 = vsel %vm7319_vm5, %v5172_v45, %v5176_v49  ;;  %v4300_v28 = vunpack.c.l.b16 %v4051_v24  ;;  %v5200_v49 = vrot.slane %v5198_v48, 5  ;;  %v4848_v37 = vld [vmem:[#allocation2 + $0x10c] sm:$0x1]  ;;  %v4070_v48 = vshll.u32 %v3892_v8, 16 }
 0x30f   : > { %v5279_v55 = vunpack.c.l.b16 %v5177_v14 }
 0x311   : > { %v2202_v2 = vpop.f32.mrf.mxu3 }
 0x312   : > { %v7973_v9 = vadd.f32 %v2202_v2, %v8448_v0  ;;  %v5186_v2 = vrot.slane %v5184_v19, 5  ;;  %v3891_v19 = vld [vmem:[#allocation2 + $0x84] sm:$0xf] }
 0x314   : > { %8449 = vst [vmem:[#allocation39_spill] sm:$0xff] %v7973_v9  ;;  %v4039_v9 = vshll.u32 %v3888_v34, 16  ;;  %v5187_v15 = vsel %vm7319_vm5, %v5182_v50, %v5186_v2  ;;  %v5192_v34 = vshll.u32 %v4846_v59, 16  ;;  %v8452_v50 = vld [vmem:[#allocation49_spill] sm:$0xff] }
 0x316   : > { %4429 = vmatmul.bf16.gmra.mxu3 %v4325_v1  ;;  %5433 = vmatmul.bf16.gmra.mxu1 %v5297_v27  ;;  %v4041_v11 = vor.u32 %v4039_v9, %v4038_v26  ;;  %v5189_v1 = vshrl.u32 %v4846_v59, 16  ;;  %v5202_v27 = vshrl.u32 %v4847_v6, 16  ;;  %v5280_v9 = vunpack.c.l.b16 %v5187_v15 }
 0x317   : > { %v4067_v26 = vshrl.u32 %v3892_v8, 16  ;;  %v5194_v25 = vrot.slane %v5192_v34, 5  ;;  %v4058_v59 = vshrl.u32 %v3891_v19, 16 }
 0x318   : > { %v4042_v41 = vsel %vm7058_vm2, %v6192_v38, %v4041_v11  ;;  %v5191_v13 = vrot.slane %v5189_v1, 4  ;;  %v5204_v45 = vrot.slane %v5202_v27, 4  ;;  %v5298_v38 = vpack.c.b16 %v5280_v9, %v5279_v55  ;;  %v3890_v11 = vld [vmem:[#allocation2 + $0x80] sm:$0x8] }
 0x319   : > { %v2205_v0 = vpop.f32.mrf.mxu3  ;;  %v4069_v24 = vrot.slane %v4067_v26, 7  ;;  %v4053_v1 = vshrl.u32 %v3890_v11, 16  ;;  %v4060_v34 = vrot.slane %v4058_v59, 7  ;;  %v4061_v27 = vshll.u32 %v3891_v19, 16  ;;  %v3893_v59 = vld [vmem:[#allocation2 + $0x90] sm:$0x8] }
 0x31a   : > { %v7978_v46 = vadd.f32 %v2205_v0, %v8450_v20  ;;  %v7988_v0 = vpop.f32.mrf.mxu1  ;;  %v4299_v20 = vunpack.c.l.b16 %v4042_v41  ;;  %v5195_v14 = vor.u32 %v5194_v25, %v5191_v13  ;;  %v5205_v15 = vor.u32 %v5204_v45, %v5200_v49  ;;  %v3894_v25 = vld [vmem:[#allocation2 + $0x94] sm:$0xf]  ;;  %v3895_v45 = vld [vmem:[#allocation2 + $0x98] sm:$0xf] }
 0x31b   : > { %v4072_v22 = vor.u32 %v4070_v48, %v4069_v24  ;;  %v4063_v55 = vor.u32 %v4061_v27, %v4060_v34  ;;  %v4065_v9 = vrot.slane %v4060_v34, 4  ;;  %v8455_v11 = vld [vmem:[#allocation55_spill] sm:$0xff]  ;;  %v4083_v34 = vshll.u32 %v3894_v25, 16 }
 0x31c   : > { %8451 = vst [vmem:[#allocation41_spill] sm:$0xff] %v7978_v46  ;;  %v4326_v6 = vpack.c.b16 %v4300_v28, %v4299_v20  ;;  %v5208_v46 = vshll.u32 %v4848_v37, 16  ;;  %v6193_v28 = vrot.slane %v4053_v1, 11  ;;  %v4092_v27 = vshll.u32 %v3895_v45, 16 }
 0x31d   : > { %v4073_v13 = vsel %vm7058_vm2, %v4065_v9, %v4072_v22 }
 0x31e   : > { %v5210_v41 = vrot.slane %v5208_v46, 5  ;;  %v4302_v46 = vunpack.c.l.b16 %v4073_v13  ;;  %v8456_v13 = vld [vmem:[#allocation57_spill] sm:$0xff] }
 0x321   : > { %v2207_v63 = vpop.f32.mrf.mxu3 }
 0x322   : > { %v7991_v2 = vadd.f32 %v2207_v63, %v8452_v50  ;;  %v5196_v63 = vrot.slane %v5195_v14, 4  ;;  %v5206_v50 = vrot.slane %v5205_v15, 4  ;;  %v7996_v26 = vpop.f32.mrf.mxu1  ;;  %v4075_v15 = vshrl.u32 %v3893_v59, 16 }
 0x324   : > { %8453 = vst [vmem:[#allocation44_spill] sm:$0xff] %v7991_v2  ;;  %v8454_v2 = vld [vmem:[#allocation52_spill] sm:$0xff]  ;;  %v5201_v8 = vsel %vm7319_vm5, %v5196_v63, %v5200_v49  ;;  %v5211_v19 = vsel %vm7319_vm5, %v5206_v50, %v5210_v41  ;;  %v6194_v41 = vrot.slane %v4075_v15, 11 }
 0x325   : > { %v5282_v20 = vunpack.c.l.b16 %v5211_v19 }
 0x326   : > { %4434 = vmatmul.bf16.gmra.mxu3 %v4326_v6  ;;  %5438 = vmatmul.bf16.gmra.mxu1 %v5298_v38  ;;  %v4080_v6 = vshrl.u32 %v3894_v25, 16  ;;  %v4089_v38 = vshrl.u32 %v3895_v45, 16  ;;  %v3898_v45 = vld [vmem:[#allocation2 + $0xa8] sm:$0xf] }
 0x328   : > { %v4082_v1 = vrot.slane %v4080_v6, 7  ;;  %v4091_v48 = vrot.slane %v4089_v38, 7  ;;  %v4111_v6 = vshrl.u32 %v3898_v45, 16  ;;  %v8457_v38 = vld [vmem:[#allocation59_spill] sm:$0xff] }
 0x329   : > { %v2210_v30 = vpop.f32.mrf.mxu3 }
 0x32a   : > { %v7994_v5 = vadd.f32 %v2210_v30, %v8454_v2  ;;  %v4064_v30 = vsel %vm7058_vm2, %v6193_v28, %v4063_v55  ;;  %v5281_v2 = vunpack.c.l.b16 %v5201_v8  ;;  %v8009_v63 = vpop.f32.mrf.mxu1  ;;  %v4085_v28 = vor.u32 %v4083_v34, %v4082_v1 }
 0x32b   : > { %v4301_v24 = vunpack.c.l.b16 %v4064_v30  ;;  %v4087_v55 = vrot.slane %v4082_v1, 4  ;;  %v4094_v9 = vor.u32 %v4092_v27, %v4091_v48  ;;  %v3897_v30 = vld [vmem:[#allocation2 + $0xa4] sm:$0xf]  ;;  %v4113_v1 = vrot.slane %v4111_v6, 7 }
 0x32c   : > { %v5299_v14 = vpack.c.b16 %v5282_v20, %v5281_v2  ;;  %v4086_v19 = vsel %vm7058_vm2, %v6194_v41, %v4085_v28  ;;  %v4102_v59 = vshrl.u32 %v3897_v30, 16  ;;  %v4105_v15 = vshll.u32 %v3897_v30, 16 }
 0x32d   : > { %v4327_v49 = vpack.c.b16 %v4302_v46, %v4301_v24  ;;  %v4095_v25 = vsel %vm7058_vm2, %v4087_v55, %v4094_v9  ;;  %v4303_v46 = vunpack.c.l.b16 %v4086_v19  ;;  %v4114_v34 = vshll.u32 %v3898_v45, 16  ;;  %v3900_v19 = vld [vmem:[#allocation2 + $0xb4] sm:$0xf] }
 0x32e   : > { %v4304_v2 = vunpack.c.l.b16 %v4095_v25  ;;  %v3901_v25 = vld [vmem:[#allocation2 + $0xb8] sm:$0xf] }
 0x32f   : > { %v4116_v28 = vor.u32 %v4114_v34, %v4113_v1 }
 0x330   : > { %v4328_v24 = vpack.c.b16 %v4304_v2, %v4303_v46  ;;  %v3899_v2 = vld [vmem:[#allocation2 + $0xb0] sm:$0x8] }
 0x331   : > { %v2212_v37 = vpop.f32.mrf.mxu3 }
 0x332   : > { %v8007_v22 = vadd.f32 %v2212_v37, %v8455_v11  ;;  %v3896_v37 = vld [vmem:[#allocation2 + $0xa0] sm:$0x8] }
 0x336   : > { %4439 = vmatmul.bf16.gmra.mxu3 %v4327_v49  ;;  %5443 = vmatmul.bf16.gmra.mxu1 %v5299_v14  ;;  %v4097_v49 = vshrl.u32 %v3896_v37, 16  ;;  %v4104_v14 = vrot.slane %v4102_v59, 7  ;;  %v4133_v37 = vshrl.u32 %v3901_v25, 16 }
 0x338   : > { %v6195_v27 = vrot.slane %v4097_v49, 11  ;;  %v4109_v41 = vrot.slane %v4104_v14, 4  ;;  %v4135_v49 = vrot.slane %v4133_v37, 7 }
 0x339   : > { %v2215_v50 = vpop.f32.mrf.mxu3 }
 0x33a   : > { %v8012_v8 = vadd.f32 %v2215_v50, %v8456_v13  ;;  %v4107_v50 = vor.u32 %v4105_v15, %v4104_v14  ;;  %v4117_v13 = vsel %vm7058_vm2, %v4109_v41, %v4116_v28  ;;  %v4136_v14 = vshll.u32 %v3901_v25, 16  ;;  %v8032_v41 = vpop.f32.mrf.mxu0  ;;  %v8034_v28 = vpop.f32.mrf.mxu1  ;;  %v3904_v25 = vld [vmem:[#allocation2 + $0xc8] sm:$0xf] }
 0x33b   : > { %v4306_v46 = vunpack.c.l.b16 %v4117_v13 }
 0x33c   : > { %v4108_v9 = vsel %vm7058_vm2, %v6195_v27, %v4107_v50  ;;  %v4138_v27 = vor.u32 %v4136_v14, %v4135_v49 }
 0x33d   : > { %v4305_v30 = vunpack.c.l.b16 %v4108_v9 }
 0x33f   : > { %v4329_v6 = vpack.c.b16 %v4306_v46, %v4305_v30 }
 0x341   : > { %v2217_v20 = vpop.f32.mrf.mxu3 }
 0x342   : > { %v8019_v11 = vadd.f32 %v2217_v20, %v8457_v38  ;;  %v4124_v20 = vshrl.u32 %v3900_v19, 16  ;;  %v8049_v49 = vpop.f32.mrf.mxu0 }
 0x344   : > { %v4126_v38 = vrot.slane %v4124_v20, 7 }
 0x346   : > { %4444 = vmatmul.bf16.gmra.mxu3 %v4328_v24  ;;  %v4127_v24 = vshll.u32 %v3900_v19, 16  ;;  %v3903_v19 = vld [vmem:[#allocation2 + $0xc4] sm:$0xf] }
 0x347   : > { %v4146_v20 = vshrl.u32 %v3903_v19, 16 }
 0x348   : > { %v4129_v34 = vor.u32 %v4127_v24, %v4126_v38 }
 0x349   : > { %v2220_v48 = vpop.f32.mrf.mxu3  ;;  %v4148_v14 = vrot.slane %v4146_v20, 7 }
 0x34a   : > { %v8022_v55 = vadd.f32 %v2220_v48, %v7583_v35  ;;  %v4119_v35 = vshrl.u32 %v3899_v2, 16  ;;  %v4131_v48 = vrot.slane %v4126_v38, 4  ;;  %v3902_v2 = vld [vmem:[#allocation2 + $0xc0] sm:$0x8] }
 0x34b   : > { %v4141_v24 = vshrl.u32 %v3902_v2, 16 }
 0x34c   : > { %v6196_v1 = vrot.slane %v4119_v35, 11  ;;  %v4139_v9 = vsel %vm7058_vm2, %v4131_v48, %v4138_v27  ;;  %v8051_v48 = vpop.f32.mrf.mxu2 }
 0x34d   : > { %v4308_v46 = vunpack.c.l.b16 %v4139_v9 }
 0x351   : > { %v2222_v45 = vpop.f32.mrf.mxu3 }
 0x352   : > { %v8029_v59 = vadd.f32 %v2222_v45, %v7614_v54  ;;  %v4130_v54 = vsel %vm7058_vm2, %v6196_v1, %v4129_v34  ;;  %v4158_v34 = vshll.u32 %v3904_v25, 16 }
 0x353   : > { %v4307_v30 = vunpack.c.l.b16 %v4130_v54  ;;  %v6197_v54 = vrot.slane %v4141_v24, 11 }
 0x356   : > { %4449 = vmatmul.bf16.gmra.mxu3 %v4329_v6  ;;  %v8045_v6 = vld [vmem:[%s8337_s4] ss:$0 sm:$0xff] }
 0x359   : > { %v4410_v15 = vpop.f32.mrf.mxu3 }
 0x35a   : > { %v4490_v50 = vadd.f32 %v4410_v15, %v7641_v53  ;;  %v4155_v53 = vshrl.u32 %v3904_v25, 16  ;;  %v4149_v15 = vshll.u32 %v3903_v19, 16 }
 0x35c   : > { %v4772_v13 = vadd.f32 %v7804_v40, %v4490_v50  ;;  %v4330_v40 = vpack.c.b16 %v4308_v46, %v4307_v30  ;;  %v4157_v1 = vrot.slane %v4155_v53, 7  ;;  %v8055_v50 = vpop.f32.mrf.mxu1  ;;  %v4151_v9 = vor.u32 %v4149_v15, %v4148_v14  ;;  %v3906_v53 = vld [vmem:[#allocation2 + $0xd4] sm:$0xf]  ;;  %v3905_v15 = vld [vmem:[#allocation2 + $0xd0] sm:$0x8] }
 0x35e   : > { %v5454_v37 = vadd.f32 %v7957_v47, %v4772_v13  ;;  %v4153_v13 = vrot.slane %v4148_v14, 4  ;;  %v4160_v30 = vor.u32 %v4158_v34, %v4157_v1  ;;  %v4152_v2 = vsel %vm7058_vm2, %v6197_v54, %v4151_v9 }
 0x35f   : > { %v4168_v1 = vshrl.u32 %v3906_v53, 16  ;;  %v4171_v9 = vshll.u32 %v3906_v53, 16 }
 0x360   : > { %v5490_v47 = vadd.f32 %v8045_v6, %v5454_v37  ;;  %v3907_v37 = vld [vmem:[#allocation2 + $0xd8] sm:$0xf] }
 0x361   : > { %v4412_v45 = vpop.f32.mrf.mxu3  ;;  %v4177_v34 = vshrl.u32 %v3907_v37, 16  ;;  %v4170_v54 = vrot.slane %v4168_v1, 7 }
 0x362   : > { %v4491_v35 = vadd.f32 %v4412_v45, %v7666_v44  ;;  %v5522_v19 = vmax.f32 %v5490_v47, 0.0 }
 0x364   : > { %v4773_v38 = vadd.f32 %v7823_v51, %v4491_v35  ;;  %v8069_v35 = vpop.f32.mrf.mxu0  ;;  %v8073_v24 = vpop.f32.mrf.mxu1 }
 0x366   : > { %v5455_v27 = vadd.f32 %v7968_v18, %v4773_v38  ;;  %4454 = vmatmul.bf16.gmra.mxu3 %v4330_v40  ;;  %v4161_v18 = vsel %vm7058_vm2, %v4153_v13, %v4160_v30  ;;  %v8071_v38 = vpop.f32.mrf.mxu2  ;;  %v4179_v13 = vrot.slane %v4177_v34, 7  ;;  %v4180_v30 = vshll.u32 %v3907_v37, 16  ;;  %v3909_v34 = vld [vmem:[#allocation2 + $0xe4] sm:$0xf] }
 0x367   : > { %v4310_v40 = vunpack.c.l.b16 %v4161_v18 }
 0x368   : > { %v5491_v44 = vadd.f32 %v8045_v6, %v5455_v27  ;;  %v4182_v18 = vor.u32 %v4180_v30, %v4179_v13 }
 0x369   : > { %v4415_v51 = vpop.f32.mrf.mxu3 }
 0x36a   : > { %v5523_v46 = vmax.f32 %v5491_v44, 0.0  ;;  %v4492_v25 = vadd.f32 %v4415_v51, %v7685_v52  ;;  %v4309_v52 = vunpack.c.l.b16 %v4152_v2  ;;  %v4163_v51 = vshrl.u32 %v3905_v15, 16 }
 0x36b   : > { %v4173_v2 = vor.u32 %v4171_v9, %v4170_v54 }
 0x36c   : > { %v6517_v45 = vpack.c.bf16 %v5523_v46, %v5522_v19  ;;  %v4774_v20 = vadd.f32 %v7847_v21, %v4492_v25  ;;  %v4331_v44 = vpack.c.b16 %v4310_v40, %v4309_v52  ;;  %v8086_v40 = vpop.f32.mrf.mxu1 }
 0x36e   : > { %6518 = vst [vmem:[%s8065_s12] sm:$0xff] %v6517_v45   ;;  %v5456_v47 = vadd.f32 %v7975_v56, %v4774_v20  ;;  %v8081_v45 = vpop.f32.mrf.mxu0  ;;  %v8083_v20 = vpop.f32.mrf.mxu2 }
 0x370   : > { %v5492_v19 = vadd.f32 %v8045_v6, %v5456_v47  ;;  %v3910_v47 = vld [vmem:[#allocation2 + $0xe8] sm:$0xf] }
 0x371   : > { %v4417_v14 = vpop.f32.mrf.mxu3 }
 0x372   : > { %v4493_v27 = vadd.f32 %v4417_v14, %v7712_v43  ;;  %v6198_v43 = vrot.slane %v4163_v51, 11  ;;  %v5524_v53 = vmax.f32 %v5492_v19, 0.0  ;;  %v3908_v51 = vld [vmem:[#allocation2 + $0xe0] sm:$0x8] }
 0x374   : > { %v4775_v21 = vadd.f32 %v7867_v16, %v4493_v27  ;;  %v4175_v16 = vrot.slane %v4170_v54, 4  ;;  %v4174_v14 = vsel %vm7058_vm2, %v6198_v43, %v4173_v2  ;;  %v4190_v54 = vshrl.u32 %v3909_v34, 16 }
 0x375   : > { %v4311_v27 = vunpack.c.l.b16 %v4174_v14  ;;  %v4193_v2 = vshll.u32 %v3909_v34, 16 }
 0x376   : > { %v5457_v46 = vadd.f32 %v7988_v0, %v4775_v21  ;;  %4459 = vmatmul.bf16.gmra.mxu3 %v4331_v44  ;;  %v4183_v15 = vsel %vm7058_vm2, %v4175_v16, %v4182_v18  ;;  %v8096_v30 = vpop.f32.mrf.mxu0  ;;  %v8098_v19 = vpop.f32.mrf.mxu2  ;;  %v4192_v43 = vrot.slane %v4190_v54, 7  ;;  %v4202_v18 = vshll.u32 %v3910_v47, 16  ;;  %v3912_v54 = vld [vmem:[#allocation2 + $0xf4] sm:$0xf] }
 0x377   : > { %v4312_v21 = vunpack.c.l.b16 %v4183_v15 }
 0x378   : > { %v5493_v25 = vadd.f32 %v8045_v6, %v5457_v46 }
 0x379   : > { %v4420_v56 = vpop.f32.mrf.mxu3 }
 0x37a   : > { %v5525_v52 = vmax.f32 %v5493_v25, 0.0  ;;  %v4494_v37 = vadd.f32 %v4420_v56, %v7736_v3  ;;  %v4199_v3 = vshrl.u32 %v3910_v47, 16  ;;  %v4332_v25 = vpack.c.b16 %v4312_v21, %v4311_v27  ;;  %v8101_v56 = vpop.f32.mrf.mxu1 }
 0x37c   : > { %v6522_v0 = vpack.c.bf16 %v5525_v52, %v5524_v53  ;;  %v4776_v1 = vadd.f32 %v7881_v42, %v4494_v37  ;;  %v4185_v42 = vshrl.u32 %v3908_v51, 16  ;;  %v4201_v16 = vrot.slane %v4199_v3, 7  ;;  %v3913_v3 = vld [vmem:[#allocation2 + $0xf8] sm:$0xf] }
 0x37e   : > { %6594 = vst [vmem:[%s8065_s12 + $0x8] sm:$0xff] %v6522_v0   ;;  %v5458_v9 = vadd.f32 %v7996_v26, %v4776_v1  ;;  %v6199_v37 = vrot.slane %v4185_v42, 11  ;;  %v4195_v0 = vor.u32 %v4193_v2, %v4192_v43  ;;  %v4204_v14 = vor.u32 %v4202_v18, %v4201_v16  ;;  %v8107_v21 = vpop.f32.mrf.mxu0  ;;  %v8458_v2 = vld [vmem:[#allocation17_spill] sm:$0xff] }
 0x37f   : > { %v4212_v42 = vshrl.u32 %v3912_v54, 16  ;;  %v2883_v16 = vadd.f32 %v8458_v2, %v7789_v29  ;;  %v8461_v2 = vld [vmem:[#allocation45_spill] sm:$0xff] }
 0x380   : > { %v5494_v53 = vadd.f32 %v8045_v6, %v5458_v9  ;;  %v4196_v47 = vsel %vm7058_vm2, %v6199_v37, %v4195_v0  ;;  %v4215_v37 = vshll.u32 %v3912_v54, 16 }
 0x381   : > { %v4422_v44 = vpop.f32.mrf.mxu3 }
 0x382   : > { %v4495_v13 = vadd.f32 %v4422_v44, %v7755_v32  ;;  %v5526_v15 = vmax.f32 %v5494_v53, 0.0  ;;  %v8113_v44 = vpop.f32.mrf.mxu2  ;;  %v8117_v9 = vpop.f32.mrf.mxu1 }
 0x384   : > { %v4777_v46 = vadd.f32 %v7900_v33, %v4495_v13  ;;  %v4197_v33 = vrot.slane %v4192_v43, 4  ;;  %v4313_v13 = vunpack.c.l.b16 %v4196_v47  ;;  %v4221_v43 = vshrl.u32 %v3913_v3, 16 }
 0x386   : > { %v5459_v26 = vadd.f32 %v8009_v63, %v4777_v46  ;;  %4464 = vmatmul.bf16.gmra.mxu3 %v4332_v25  ;;  %v4205_v63 = vsel %vm7058_vm2, %v4197_v33, %v4204_v14  ;;  %v3911_v25 = vld [vmem:[#allocation2 + $0xf0] sm:$0x8]  ;;  %v4223_v0 = vrot.slane %v4221_v43, 7  ;;  %v4224_v33 = vshll.u32 %v3913_v3, 16  ;;  %v8459_v14 = vld [vmem:[#allocation42_spill] sm:$0xff]  ;;  %v8127_v29 = vpop.f32.mrf.mxu0 }
 0x388   : > { %v5495_v32 = vadd.f32 %v8045_v6, %v5459_v26  ;;  %v4226_v3 = vor.u32 %v4224_v33, %v4223_v0  ;;  %v3914_v0 = vld [vmem:[#allocation2 + $0x100] sm:$0x8] }
 0x389   : > { %v4425_v52 = vpop.f32.mrf.mxu3 }
 0x38a   : > { %v5527_v1 = vmax.f32 %v5495_v32, 0.0  ;;  %v4496_v27 = vadd.f32 %v4425_v52, %v7776_v31  ;;  %v4314_v31 = vunpack.c.l.b16 %v4205_v63  ;;  %v4207_v32 = vshrl.u32 %v3911_v25, 16 }
 0x38b   : > { %v4214_v52 = vrot.slane %v4212_v42, 7 }
 0x38c   : > { %v6527_v34 = vpack.c.bf16 %v5527_v1, %v5526_v15  ;;  %v4778_v51 = vadd.f32 %v8032_v41, %v4496_v27  ;;  %v4333_v41 = vpack.c.b16 %v4314_v31, %v4313_v13  ;;  %v3165_v15 = vadd.f32 %v8459_v14, %v2883_v16  ;;  %v8460_v13 = vld [vmem:[#allocation19_spill] sm:$0xff] }
 0x38d   : > { %v6200_v63 = vrot.slane %v4207_v32, 11  ;;  %v4219_v54 = vrot.slane %v4214_v52, 4 }
 0x38e   : > { %6595 = vst [vmem:[%s8065_s12 + $0x10] sm:$0xff] %v6527_v34   ;;  %v5460_v18 = vadd.f32 %v8034_v28, %v4778_v51  ;;  %v3847_v28 = vadd.f32 %v8051_v48, %v3165_v15  ;;  %v8133_v34 = vpop.f32.mrf.mxu1  ;;  %v4217_v51 = vor.u32 %v4215_v37, %v4214_v52  ;;  %v8145_v52 = vpop.f32.mrf.mxu0  ;;  %v8462_v15 = vld [vmem:[#allocation21_spill] sm:$0xff] }
 0x38f   : > { %v4227_v43 = vsel %vm7058_vm2, %v4219_v54, %v4226_v3 }
 0x390   : > { %v5496_v1 = vadd.f32 %v8045_v6, %v5460_v18  ;;  %v4218_v48 = vsel %vm7058_vm2, %v6200_v63, %v4217_v51  ;;  %v4316_v32 = vunpack.c.l.b16 %v4227_v43  ;;  %v4229_v63 = vshrl.u32 %v3914_v0, 16 }
 0x391   : > { %v4427_v46 = vpop.f32.mrf.mxu3 }
 0x392   : > { %v4497_v53 = vadd.f32 %v4427_v46, %v7799_v10  ;;  %v8130_v10 = vpop.f32.mrf.mxu2  ;;  %v5528_v31 = vmax.f32 %v5496_v1, 0.0  ;;  %v2885_v1 = vadd.f32 %v8462_v15, %v7828_v62  ;;  %v3917_v15 = vld [vmem:[#allocation2 + $0x110] sm:$0x8] }
 0x394   : > { %v4779_v26 = vadd.f32 %v8049_v49, %v4497_v53  ;;  %v3915_v53 = vld [vmem:[#allocation2 + $0x104] sm:$0xf] }
 0x395   : > { %v4234_v33 = vshrl.u32 %v3915_v53, 16  ;;  %v4237_v54 = vshll.u32 %v3915_v53, 16 }
 0x396   : > { %v5461_v27 = vadd.f32 %v8055_v50, %v4779_v26  ;;  %4469 = vmatmul.bf16.gmra.mxu3 %v4333_v41  ;;  %v2884_v50 = vadd.f32 %v8460_v13, %v7814_v23  ;;  %v3916_v26 = vld [vmem:[#allocation2 + $0x108] sm:$0xf]  ;;  %v4315_v23 = vunpack.c.l.b16 %v4218_v48  ;;  %v6201_v48 = vrot.slane %v4229_v63, 11 }
 0x397   : > { %v4243_v14 = vshrl.u32 %v3916_v26, 16  ;;  %v4236_v51 = vrot.slane %v4234_v33, 7  ;;  %v4246_v13 = vshll.u32 %v3916_v26, 16 }
 0x398   : > { %v5497_v49 = vadd.f32 %v8045_v6, %v5461_v27  ;;  %v3166_v16 = vadd.f32 %v8461_v2, %v2884_v50  ;;  %v8463_v50 = vld [vmem:[#allocation48_spill] sm:$0xff] }
 0x399   : > { %v4430_v47 = vpop.f32.mrf.mxu3  ;;  %v4245_v3 = vrot.slane %v4243_v14, 7  ;;  %v4241_v43 = vrot.slane %v4236_v51, 4  ;;  %v8465_v14 = vld [vmem:[#allocation51_spill] sm:$0xff] }
 0x39a   : > { %v5529_v46 = vmax.f32 %v5497_v49, 0.0  ;;  %v4498_v25 = vadd.f32 %v4430_v47, %v3847_v28  ;;  %v3848_v41 = vadd.f32 %v8071_v38, %v3166_v16  ;;  %v8149_v27 = vpop.f32.mrf.mxu2  ;;  %v8152_v49 = vpop.f32.mrf.mxu1  ;;  %v4334_v47 = vpack.c.b16 %v4316_v32, %v4315_v23  ;;  %v8464_v16 = vld [vmem:[#allocation23_spill] sm:$0xff] }
 0x39b   : > { %v4248_v2 = vor.u32 %v4246_v13, %v4245_v3  ;;  %v8162_v23 = vpop.f32.mrf.mxu0  ;;  %v4849_v13 = vld [vmem:[#allocation2 + $0x114] sm:$0xf] }
 0x39c   : > { %v6532_v42 = vpack.c.bf16 %v5529_v46, %v5528_v31  ;;  %v4780_v18 = vadd.f32 %v8069_v35, %v4498_v25  ;;  %v3167_v31 = vadd.f32 %v8463_v50, %v2885_v1  ;;  %v3918_v1 = vld [vmem:[#allocation2 + $0x114] sm:$0xf]  ;;  %v4850_v50 = vld [vmem:[#allocation2 + $0x118] sm:$0xf] }
 0x39d   : > { %v4249_v33 = vsel %vm7058_vm2, %v4241_v43, %v4248_v2  ;;  %v4256_v63 = vshrl.u32 %v3918_v1, 16  ;;  %v5222_v43 = vshll.u32 %v4850_v50, 16 }
 0x39e   : > { %6596 = vst [vmem:[%s8065_s12 + $0x18] sm:$0xff] %v6532_v42   ;;  %v5462_v28 = vadd.f32 %v8073_v24, %v4780_v18  ;;  %v3849_v24 = vadd.f32 %v8083_v20, %v3167_v31  ;;  %v2886_v18 = vadd.f32 %v8464_v16, %v7850_v60 }
 0x39f   : > { %v4258_v2 = vrot.slane %v4256_v63, 7 }
 0x3a0   : > { %v5498_v46 = vadd.f32 %v8045_v6, %v5462_v28  ;;  %v3168_v60 = vadd.f32 %v8465_v14, %v2886_v18  ;;  %v6488_v28 = vld [vmem:[#allocation2 + $0x114] sm:$0xff] }
 0x3a1   : > { %v4432_v37 = vpop.f32.mrf.mxu3  ;;  %4766 = vmatmul.bf16.gmra.mxu0 %v6488_v28  ;;  %v4263_v63 = vrot.slane %v4258_v2, 4 }
 0x3a2   : > { %v4499_v35 = vadd.f32 %v4432_v37, %v3848_v41  ;;  %v5530_v53 = vmax.f32 %v5498_v46, 0.0  ;;  %v8166_v20 = vpop.f32.mrf.mxu1 }
 0x3a4   : > { %v4781_v38 = vadd.f32 %v8081_v45, %v4499_v35  ;;  %v4239_v45 = vor.u32 %v4237_v54, %v4236_v51  ;;  %v8466_v35 = vld [vmem:[#allocation26_spill] sm:$0xff]  ;;  %v3850_v51 = vadd.f32 %v8098_v19, %v3168_v60  ;;  %v4318_v54 = vunpack.c.l.b16 %v4249_v33 }
 0x3a6   : > { %v5463_v62 = vadd.f32 %v8086_v40, %v4781_v38  ;;  %4474 = vmatmul.bf16.gmra.mxu3 %v4334_v47  ;;  %v8164_v40 = vpop.f32.mrf.mxu2  ;;  %v4240_v0 = vsel %vm7058_vm2, %v6201_v48, %v4239_v45  ;;  %v2887_v38 = vadd.f32 %v8466_v35, %v7862_v17  ;;  %v3919_v47 = vld [vmem:[#allocation2 + $0x118] sm:$0xf]  ;;  %v4259_v48 = vshll.u32 %v3918_v1, 16  ;;  %v4851_v17 = vld [vmem:[#allocation2 + $0x11c] sm:$0x1] }
 0x3a7   : > { %v4265_v3 = vshrl.u32 %v3919_v47, 16  ;;  %v4268_v45 = vshll.u32 %v3919_v47, 16  ;;  %v5232_v14 = vshll.u32 %v4851_v17, 16 }
 0x3a8   : > { %v5499_v25 = vadd.f32 %v8045_v6, %v5463_v62  ;;  %v4251_v62 = vshrl.u32 %v3917_v15, 16 }
 0x3a9   : > { %v4435_v42 = vpop.f32.mrf.mxu3  ;;  %v4267_v16 = vrot.slane %v4265_v3, 7 }
 0x3aa   : > { %v5531_v26 = vmax.f32 %v5499_v25, 0.0  ;;  %v4500_v41 = vadd.f32 %v4435_v42, %v3849_v24  ;;  %v5213_v24 = vshrl.u32 %v4849_v13, 16  ;;  %v5216_v25 = vshll.u32 %v4849_v13, 16  ;;  %v8187_v47 = vpop.f32.mrf.mxu1 }
 0x3ab   : > { %v6202_v28 = vrot.slane %v4251_v62, 11  ;;  %v5234_v13 = vrot.slane %v5232_v14, 5 }
 0x3ac   : > { %v6537_v32 = vpack.c.bf16 %v5531_v26, %v5530_v53  ;;  %v4782_v37 = vadd.f32 %v8096_v30, %v4500_v41  ;;  %v4317_v30 = vunpack.c.l.b16 %v4240_v0  ;;  %v5215_v19 = vrot.slane %v5213_v24, 4  ;;  %v8467_v0 = vld [vmem:[#allocation54_spill] sm:$0xff] }
 0x3ad   : > { %v5218_v18 = vrot.slane %v5216_v25, 5  ;;  %v5224_v41 = vrot.slane %v5222_v43, 5 }
 0x3ae   : > { %6597 = vst [vmem:[%s8065_s12 + $0x20] sm:$0xff] %v6537_v32   ;;  %v5464_v31 = vadd.f32 %v8101_v56, %v4782_v37  ;;  %v4335_v26 = vpack.c.b16 %v4318_v54, %v4317_v30  ;;  %v5226_v32 = vshrl.u32 %v4850_v50, 16  ;;  %v3169_v56 = vadd.f32 %v8467_v0, %v2887_v38  ;;  %v8181_v37 = vpop.f32.mrf.mxu0  ;;  %v8183_v60 = vpop.f32.mrf.mxu2  ;;  %v8468_v50 = vld [vmem:[#allocation28_spill] sm:$0xff] }
 0x3af   : > { %v5219_v33 = vor.u32 %v5218_v18, %v5215_v19 }
 0x3b0   : > { %v5500_v15 = vadd.f32 %v8045_v6, %v5464_v31  ;;  %v5228_v35 = vrot.slane %v5226_v32, 4  ;;  %v3851_v38 = vadd.f32 %v8113_v44, %v3169_v56  ;;  %v2888_v31 = vadd.f32 %v8468_v50, %v7879_v4 }
 0x3b1   : > { %v4437_v46 = vpop.f32.mrf.mxu3  ;;  %v5220_v30 = vrot.slane %v5219_v33, 4  ;;  %v8470_v33 = vld [vmem:[#allocation30_spill] sm:$0xff] }
 0x3b2   : > { %v4501_v42 = vadd.f32 %v4437_v46, %v3850_v51  ;;  %v4270_v51 = vor.u32 %v4268_v45, %v4267_v16  ;;  %v5229_v3 = vor.u32 %v5228_v35, %v5224_v41  ;;  %v5532_v62 = vmax.f32 %v5500_v15, 0.0  ;;  %v5414_v39 = vpop.f32.mrf.mxu1 }
 0x3b3   : > { %v5225_v46 = vsel %vm7319_vm5, %v5220_v30, %v5224_v41  ;;  %v2889_v12 = vadd.f32 %v8470_v33, %v7890_v61 }
 0x3b4   : > { %v4783_v53 = vadd.f32 %v8107_v21, %v4501_v42  ;;  %v4261_v21 = vor.u32 %v4259_v48, %v4258_v2  ;;  %v5230_v42 = vrot.slane %v5229_v3, 4  ;;  %v4271_v44 = vsel %vm7058_vm2, %v4263_v63, %v4270_v51  ;;  %v8469_v2 = vld [vmem:[#allocation58_spill] sm:$0xff] }
 0x3b5   : > { %v5283_v45 = vunpack.c.l.b16 %v5225_v46  ;;  %v3170_v16 = vadd.f32 %v8469_v2, %v2888_v31 }
 0x3b6   : > { %v5465_v1 = vadd.f32 %v8117_v9, %v4783_v53  ;;  %4479 = vmatmul.bf16.gmra.mxu3 %v4335_v26  ;;  %v4262_v48 = vsel %vm7058_vm2, %v6202_v28, %v4261_v21  ;;  %v5235_v43 = vsel %vm7319_vm5, %v5230_v42, %v5234_v13  ;;  %v4320_v53 = vunpack.c.l.b16 %v4271_v44  ;;  %v4732_v26 = vpop.f32.mrf.mxu0  ;;  %v3801_v0 = vpop.f32.mrf.mxu2 }
 0x3b7   : > { %v5284_v4 = vunpack.c.l.b16 %v5235_v43  ;;  %v4319_v18 = vunpack.c.l.b16 %v4262_v48  ;;  %v3852_v32 = vadd.f32 %v8130_v10, %v3170_v16 }
 0x3b8   : > { %v5501_v54 = vadd.f32 %v8045_v6, %v5465_v1 }
 0x3b9   : > { %v4440_v9 = vpop.f32.mrf.mxu3  ;;  %v5300_v41 = vpack.c.b16 %v5284_v4, %v5283_v45  ;;  %v4336_v1 = vpack.c.b16 %v4320_v53, %v4319_v18  ;;  %v8474_v4 = vld [vmem:[#allocation24_spill] sm:$0xff] }
 0x3ba   : > { %v5533_v24 = vmax.f32 %v5501_v54, 0.0  ;;  %v4502_v25 = vadd.f32 %v4440_v9, %v3851_v38  ;;  %v5416_v50 = vpop.f32.mrf.mxu1 }
 0x3bb   : > { %5448 = vmatmul.bf16.gmra.mxu1 %v5300_v41  ;;  %v8476_v41 = vld [vmem:[#allocation65_spill] sm:$0xff] }
 0x3bc   : > { %v6542_v17 = vpack.c.bf16 %v5533_v24, %v5532_v62  ;;  %v4784_v19 = vadd.f32 %v8127_v29, %v4502_v25  ;;  %v8471_v29 = vld [vmem:[#allocation61_spill] sm:$0xff]  ;;  %v8473_v62 = vld [vmem:[#allocation35_spill] sm:$0xff] }
 0x3bd   : > { %v3171_v35 = vadd.f32 %v8471_v29, %v2889_v12  ;;  %v2891_v24 = vadd.f32 %v8473_v62, %v7908_v7 }
 0x3be   : > { %6598 = vst [vmem:[%s8065_s12 + $0x28] sm:$0xff] %v6542_v17   ;;  %v5466_v14 = vadd.f32 %v8133_v34, %v4784_v19  ;;  %v4734_v30 = vpop.f32.mrf.mxu0  ;;  %v8472_v34 = vld [vmem:[#allocation32_spill] sm:$0xff]  ;;  %v3804_v54 = vpop.f32.mrf.mxu2 }
 0x3bf   : > { %v3853_v63 = vadd.f32 %v8149_v27, %v3171_v35  ;;  %v2890_v38 = vadd.f32 %v8472_v34, %v7905_v36  ;;  %v8479_v35 = vld [vmem:[#allocation67_spill] sm:$0xff] }
 0x3c0   : > { %v5502_v21 = vadd.f32 %v8045_v6, %v5466_v14  ;;  %v8478_v14 = vld [vmem:[#allocation40_spill] sm:$0xff] }
 0x3c1   : > { %v4442_v56 = vpop.f32.mrf.mxu3  ;;  %v3172_v9 = vadd.f32 %v7604_v57, %v2890_v38  ;;  %v3173_v57 = vadd.f32 %v7639_v58, %v2891_v24 }
 0x3c2   : > { %v4503_v15 = vadd.f32 %v4442_v56, %v3852_v32  ;;  %v5534_v3 = vmax.f32 %v5502_v21, 0.0  ;;  %v5419_v45 = vpop.f32.mrf.mxu1 }
 0x3c3   : > { %v3854_v27 = vadd.f32 %v8164_v40, %v3172_v9  ;;  %v3855_v40 = vadd.f32 %v8183_v60, %v3173_v57  ;;  %v8477_v60 = vld [vmem:[#allocation13_spill] sm:$0xff] }
 0x3c4   : > { %v4785_v28 = vadd.f32 %v8145_v52, %v4503_v15  ;;  %v2893_v15 = vadd.f32 %v8478_v14, %v8477_v60 }
 0x3c6   : > { %v5467_v10 = vadd.f32 %v8152_v49, %v4785_v28  ;;  %4484 = vmatmul.bf16.gmra.mxu3 %v4336_v1  ;;  %v4737_v42 = vpop.f32.mrf.mxu0  ;;  %v3806_v48 = vpop.f32.mrf.mxu2  ;;  %v3175_v21 = vadd.f32 %v8479_v35, %v2893_v15 }
 0x3c8   : > { %v5503_v51 = vadd.f32 %v8045_v6, %v5467_v10 }
 0x3c9   : > { %v4445_v61 = vpop.f32.mrf.mxu3 }
 0x3ca   : > { %v5535_v52 = vmax.f32 %v5503_v51, 0.0  ;;  %v4504_v13 = vadd.f32 %v4445_v61, %v3853_v63  ;;  %v5421_v33 = vpop.f32.mrf.mxu1  ;;  %v3857_v61 = vadd.f32 %v3804_v54, %v3175_v21  ;;  %v8483_v54 = vld [vmem:[#allocation33_spill] sm:$0xff] }
 0x3cc   : > { %v6547_v31 = vpack.c.bf16 %v5535_v52, %v5534_v3  ;;  %v4786_v49 = vadd.f32 %v8162_v23, %v4504_v13  ;;  %v8480_v3 = vld [vmem:[#allocation29_spill] sm:$0xff]  ;;  %v8481_v52 = vld [vmem:[#allocation43_spill] sm:$0xff] }
 0x3cd   : > { %v2894_v13 = vadd.f32 %v8481_v52, %v8480_v3 }
 0x3ce   : > { %6599 = vst [vmem:[%s8065_s12 + $0x30] sm:$0xff] %v6547_v31   ;;  %v5468_v25 = vadd.f32 %v8166_v20, %v4786_v49  ;;  %v8475_v20 = vld [vmem:[#allocation37_spill] sm:$0xff]  ;;  %v4739_v53 = vpop.f32.mrf.mxu0  ;;  %v3809_v58 = vpop.f32.mrf.mxu2 }
 0x3cf   : > { %v2892_v2 = vadd.f32 %v8475_v20, %v8474_v4  ;;  %v8482_v49 = vld [vmem:[#allocation69_spill] sm:$0xff] }
 0x3d0   : > { %v5504_v17 = vadd.f32 %v8045_v6, %v5468_v25  ;;  %v8484_v25 = vld [vmem:[#allocation47_spill] sm:$0xff] }
 0x3d1   : > { %v4447_v46 = vpop.f32.mrf.mxu3  ;;  %v3174_v32 = vadd.f32 %v8476_v41, %v2892_v2 }
 0x3d2   : > { %v4505_v36 = vadd.f32 %v4447_v46, %v3854_v27  ;;  %v5536_v16 = vmax.f32 %v5504_v17, 0.0  ;;  %v5424_v38 = vpop.f32.mrf.mxu1  ;;  %v3176_v27 = vadd.f32 %v8482_v49, %v2894_v13 }
 0x3d4   : > { %v4787_v44 = vadd.f32 %v8181_v37, %v4505_v36  ;;  %v3858_v62 = vadd.f32 %v3806_v48, %v3176_v27  ;;  %v2895_v36 = vadd.f32 %v8484_v25, %v8483_v54 }
 0x3d6   : > { %v5469_v23 = vadd.f32 %v8187_v47, %v4787_v44  ;;  %v3856_v47 = vadd.f32 %v3801_v0, %v3174_v32  ;;  %v4742_v51 = vpop.f32.mrf.mxu0  ;;  %v3811_v34 = vpop.f32.mrf.mxu2 }
 0x3d8   : > { %v5505_v43 = vadd.f32 %v8045_v6, %v5469_v23 }
 0x3d9   : > { %v4450_v7 = vpop.f32.mrf.mxu3 }
 0x3da   : > { %v5537_v19 = vmax.f32 %v5505_v43, 0.0  ;;  %v4506_v18 = vadd.f32 %v4450_v7, %v3855_v40  ;;  %v5426_v23 = vpop.f32.mrf.mxu1  ;;  %v8485_v43 = vld [vmem:[#allocation71_spill] sm:$0xff] }
 0x3db   : > { %v3177_v7 = vadd.f32 %v8485_v43, %v2895_v36 }
 0x3dc   : > { %v6552_v37 = vpack.c.bf16 %v5537_v19, %v5536_v16  ;;  %v4788_v56 = vadd.f32 %v4732_v26, %v4506_v18  ;;  %v8486_v16 = vld [vmem:[#allocation34_spill] sm:$0xff] }
 0x3dd   : > { %v3859_v2 = vadd.f32 %v3809_v58, %v3177_v7  ;;  %v8487_v19 = vld [vmem:[#allocation50_spill] sm:$0xff]  ;;  %v8489_v58 = vld [vmem:[#allocation36_spill] sm:$0xff] }
 0x3de   : > { %6600 = vst [vmem:[%s8065_s12 + $0x38] sm:$0xff] %v6552_v37   ;;  %v5470_v1 = vadd.f32 %v5414_v39, %v4788_v56  ;;  %v3814_v44 = vpop.f32.mrf.mxu2  ;;  %v2896_v18 = vadd.f32 %v8487_v19, %v8486_v16 }
 0x3e0   : > { %v5506_v10 = vadd.f32 %v8045_v6, %v5470_v1  ;;  %v8490_v1 = vld [vmem:[#allocation53_spill] sm:$0xff] }
 0x3e1   : > { %v4452_v12 = vpop.f32.mrf.mxu3 }
 0x3e2   : > { %v4507_v28 = vadd.f32 %v4452_v12, %v3856_v47  ;;  %v5538_v31 = vmax.f32 %v5506_v10, 0.0  ;;  %v8488_v12 = vld [vmem:[#allocation73_spill] sm:$0xff] }
 0x3e3   : > { %v3178_v60 = vadd.f32 %v8488_v12, %v2896_v18 }
 0x3e4   : > { %v4789_v29 = vadd.f32 %v4734_v30, %v4507_v28  ;;  %v2897_v28 = vadd.f32 %v8490_v1, %v8489_v58 }
 0x3e5   : > { %v3860_v15 = vadd.f32 %v3811_v34, %v3178_v60 }
 0x3e6   : > { %v5471_v63 = vadd.f32 %v5416_v50, %v4789_v29  ;;  %v4744_v50 = vpop.f32.mrf.mxu0  ;;  %v3816_v56 = vpop.f32.mrf.mxu2 }
 0x3e8   : > { %v5507_v26 = vadd.f32 %v8045_v6, %v5471_v63  ;;  %v8491_v63 = vld [vmem:[#allocation15_spill] sm:$0xff] }
 0x3e9   : > { %v4455_v0 = vpop.f32.mrf.mxu3 }
 0x3ea   : > { %v5539_v39 = vmax.f32 %v5507_v26, 0.0  ;;  %v4508_v9 = vadd.f32 %v4455_v0, %v3857_v61  ;;  %v3179_v61 = vadd.f32 %v8491_v63, %v2897_v28  ;;  %v8501_v28 = vld [vmem:[#allocation63_spill] sm:$0xff] }
 0x3ec   : > { %v6557_v30 = vpack.c.bf16 %v5539_v39, %v5538_v31  ;;  %v4790_v46 = vadd.f32 %v4737_v42, %v4508_v9  ;;  %v3861_v13 = vadd.f32 %v3814_v44, %v3179_v61  ;;  %v8492_v31 = vld [vmem:[#allocation39_spill] sm:$0xff]  ;;  %v8493_v39 = vld [vmem:[#allocation56_spill] sm:$0xff]  ;;  %v8495_v44 = vld [vmem:[#allocation41_spill] sm:$0xff] }
 0x3ed   : > { %v2898_v9 = vadd.f32 %v8493_v39, %v8492_v31  ;;  %v8503_v39 = vld [vmem:[#allocation64_spill] sm:$0xff] }
 0x3ee   : > { %6601 = vst [vmem:[%s8065_s12 + $0x40] sm:$0xff] %v6557_v30   ;;  %v5472_v57 = vadd.f32 %v5419_v45, %v4790_v46  ;;  %v4747_v45 = vpop.f32.mrf.mxu0  ;;  %v3819_v26 = vpop.f32.mrf.mxu2  ;;  %v8494_v46 = vld [vmem:[#allocation14_spill] sm:$0xff] }
 0x3f0   : > { %v5508_v4 = vadd.f32 %v8045_v6, %v5472_v57 }
 0x3f1   : > { %v4457_v24 = vpop.f32.mrf.mxu3 }
 0x3f2   : > { %v4509_v17 = vadd.f32 %v4457_v24, %v3858_v62  ;;  %v5540_v37 = vmax.f32 %v5508_v4, 0.0  ;;  %v3180_v62 = vadd.f32 %v8494_v46, %v2898_v9  ;;  %v8497_v4 = vld [vmem:[#allocation38_spill] sm:$0xff]  ;;  %v2902_v9 = vadd.f32 %v8503_v39, %v8007_v22  ;;  %v8504_v46 = vld [vmem:[#allocation20_spill] sm:$0xff] }
 0x3f3   : > { %v8506_v22 = vld [vmem:[#allocation22_spill] sm:$0xff] }
 0x3f4   : > { %v4791_v40 = vadd.f32 %v4739_v53, %v4509_v17  ;;  %v5429_v53 = vpop.f32.mrf.mxu1  ;;  %v3862_v54 = vadd.f32 %v3816_v56, %v3180_v62  ;;  %v8496_v17 = vld [vmem:[#allocation60_spill] sm:$0xff]  ;;  %v3184_v62 = vadd.f32 %v8504_v46, %v2902_v9 }
 0x3f6   : > { %v5473_v20 = vadd.f32 %v5421_v33, %v4791_v40  ;;  %v4749_v10 = vpop.f32.mrf.mxu0  ;;  %v3821_v25 = vpop.f32.mrf.mxu2 }
 0x3f8   : > { %v5509_v42 = vadd.f32 %v8045_v6, %v5473_v20 }
 0x3f9   : > { %v4460_v48 = vpop.f32.mrf.mxu3 }
 0x3fa   : > { %v5541_v41 = vmax.f32 %v5509_v42, 0.0  ;;  %v4510_v32 = vadd.f32 %v4460_v48, %v3859_v2 }
 0x3fc   : > { %v6562_v47 = vpack.c.bf16 %v5541_v41, %v5540_v37  ;;  %v4792_v14 = vadd.f32 %v4742_v51, %v4510_v32  ;;  %v5431_v52 = vpop.f32.mrf.mxu1  ;;  %v8498_v37 = vld [vmem:[#allocation44_spill] sm:$0xff]  ;;  %v8499_v41 = vld [vmem:[#allocation62_spill] sm:$0xff] }
 0x3fd   : > { %v2900_v32 = vadd.f32 %v8499_v41, %v8498_v37 }
 0x3fe   : > { %6602 = vst [vmem:[%s8065_s12 + $0x48] sm:$0xff] %v6562_v47   ;;  %v5474_v29 = vadd.f32 %v5424_v38, %v4792_v14  ;;  %v4752_v24 = vpop.f32.mrf.mxu0  ;;  %v8500_v14 = vld [vmem:[#allocation16_spill] sm:$0xff] }
 0x400   : > { %v5510_v0 = vadd.f32 %v8045_v6, %v5474_v29  ;;  %v2901_v29 = vadd.f32 %v8501_v28, %v7994_v5 }
 0x401   : > { %v4462_v33 = vpop.f32.mrf.mxu3 }
 0x402   : > { %v4511_v35 = vadd.f32 %v4462_v33, %v3860_v15  ;;  %v5542_v30 = vmax.f32 %v5510_v0, 0.0  ;;  %v3182_v15 = vadd.f32 %v8500_v14, %v2900_v32  ;;  %v8502_v0 = vld [vmem:[#allocation18_spill] sm:$0xff] }
 0x404   : > { %v4793_v21 = vadd.f32 %v4744_v50, %v4511_v35  ;;  %v5434_v36 = vpop.f32.mrf.mxu1  ;;  %v3864_v58 = vadd.f32 %v3821_v25, %v3182_v15  ;;  %v8509_v15 = vld [vmem:[#allocation70_spill] sm:$0xff] }
 0x406   : > { %v5475_v3 = vadd.f32 %v5426_v23, %v4793_v21  ;;  %v2899_v23 = vadd.f32 %v8496_v17, %v8495_v44  ;;  %v4754_v19 = vpop.f32.mrf.mxu0 }
 0x408   : > { %v5511_v51 = vadd.f32 %v8045_v6, %v5475_v3  ;;  %v3181_v20 = vadd.f32 %v8497_v4, %v2899_v23  ;;  %v3183_v3 = vadd.f32 %v8502_v0, %v2901_v29 }
 0x409   : > { %v4465_v34 = vpop.f32.mrf.mxu3 }
 0x40a   : > { %v5543_v38 = vmax.f32 %v5511_v51, 0.0  ;;  %v4512_v49 = vadd.f32 %v4465_v34, %v3861_v13  ;;  %v3863_v48 = vadd.f32 %v3819_v26, %v3181_v20 }
 0x40c   : > { %v6567_v27 = vpack.c.bf16 %v5543_v38, %v5542_v30  ;;  %v4794_v50 = vadd.f32 %v4747_v45, %v4512_v49  ;;  %v3824_v45 = vpop.f32.mrf.mxu2  ;;  %v5436_v12 = vpop.f32.mrf.mxu1 }
 0x40d   : > { %v3865_v51 = vadd.f32 %v3824_v45, %v3183_v3 }
 0x40e   : > { %6603 = vst [vmem:[%s8065_s12 + $0x50] sm:$0xff] %v6567_v27   ;;  %v5476_v40 = vadd.f32 %v5429_v53, %v4794_v50 }
 0x410   : > { %v5512_v2 = vadd.f32 %v8045_v6, %v5476_v40 }
 0x411   : > { %v4467_v57 = vpop.f32.mrf.mxu3 }
 0x412   : > { %v4513_v43 = vadd.f32 %v4467_v57, %v3862_v54  ;;  %v5544_v56 = vmax.f32 %v5512_v2, 0.0  ;;  %v8505_v57 = vld [vmem:[#allocation66_spill] sm:$0xff] }
 0x413   : > { %v2903_v44 = vadd.f32 %v8505_v57, %v8012_v8 }
 0x414   : > { %v4795_v7 = vadd.f32 %v4749_v10, %v4513_v43  ;;  %v4757_v10 = vpop.f32.mrf.mxu0  ;;  %v3826_v63 = vpop.f32.mrf.mxu2 }
 0x415   : > { %v5439_v26 = vpop.f32.mrf.mxu1  ;;  %v3866_v25 = vadd.f32 %v3826_v63, %v3184_v62  ;;  %v3185_v43 = vadd.f32 %v8506_v22, %v2903_v44 }
 0x416   : > { %v5477_v42 = vadd.f32 %v5431_v52, %v4795_v7 }
 0x418   : > { %v5513_v16 = vadd.f32 %v8045_v6, %v5477_v42 }
 0x419   : > { %v4470_v18 = vpop.f32.mrf.mxu3 }
 0x41a   : > { %v5545_v47 = vmax.f32 %v5513_v16, 0.0  ;;  %v4514_v53 = vadd.f32 %v4470_v18, %v3863_v48  ;;  %v8507_v18 = vld [vmem:[#allocation68_spill] sm:$0xff] }
 0x41b   : > { %v2904_v37 = vadd.f32 %v8507_v18, %v8019_v11  ;;  %v8510_v11 = vld [vmem:[#allocation27_spill] sm:$0xff] }
 0x41c   : > { %v6572_v60 = vpack.c.bf16 %v5545_v47, %v5544_v56  ;;  %v4796_v33 = vadd.f32 %v4752_v24, %v4514_v53  ;;  %v4759_v27 = vpop.f32.mrf.mxu0  ;;  %v3829_v50 = vpop.f32.mrf.mxu2  ;;  %v8508_v56 = vld [vmem:[#allocation25_spill] sm:$0xff] }
 0x41d   : > { %v5441_v54 = vpop.f32.mrf.mxu1  ;;  %v3867_v2 = vadd.f32 %v3829_v50, %v3185_v43  ;;  %v3186_v47 = vadd.f32 %v8508_v56, %v2904_v37 }
 0x41e   : > { %6604 = vst [vmem:[%s8065_s12 + $0x58] sm:$0xff] %v6572_v60   ;;  %v5478_v35 = vadd.f32 %v5434_v36, %v4796_v33  ;;  %v2905_v33 = vadd.f32 %v8509_v15, %v8022_v55 }
 0x420   : > { %v5514_v52 = vadd.f32 %v8045_v6, %v5478_v35 }
 0x421   : > { %v4472_v1 = vpop.f32.mrf.mxu3 }
 0x422   : > { %v4515_v21 = vadd.f32 %v4472_v1, %v3864_v58  ;;  %v5546_v5 = vmax.f32 %v5514_v52, 0.0  ;;  %v8511_v52 = vld [vmem:[#allocation72_spill] sm:$0xff] }
 0x423   : > { %v2906_v55 = vadd.f32 %v8511_v52, %v8029_v59 }
 0x424   : > { %v4797_v61 = vadd.f32 %v4754_v19, %v4515_v21  ;;  %v4762_v20 = vpop.f32.mrf.mxu0  ;;  %v3831_v42 = vpop.f32.mrf.mxu2  ;;  %v3187_v21 = vadd.f32 %v8510_v11, %v2905_v33 }
 0x425   : > { %v5444_v16 = vpop.f32.mrf.mxu1 }
 0x426   : > { %v5479_v13 = vadd.f32 %v5436_v12, %v4797_v61  ;;  %v3868_v12 = vadd.f32 %v3831_v42, %v3186_v47 }
 0x428   : > { %v5515_v34 = vadd.f32 %v8045_v6, %v5479_v13 }
 0x429   : > { %v4475_v31 = vpop.f32.mrf.mxu3 }
 0x42a   : > { %v5547_v30 = vmax.f32 %v5515_v34, 0.0  ;;  %v4516_v38 = vadd.f32 %v4475_v31, %v3865_v51 }
 0x42c   : > { %v6577_v49 = vpack.c.bf16 %v5547_v30, %v5546_v5  ;;  %v4798_v24 = vadd.f32 %v4757_v10, %v4516_v38  ;;  %v4764_v60 = vpop.f32.mrf.mxu0  ;;  %v3834_v28 = vpop.f32.mrf.mxu2  ;;  %v8512_v5 = vld [vmem:[#allocation31_spill] sm:$0xff] }
 0x42d   : > { %v5446_v29 = vpop.f32.mrf.mxu1  ;;  %v3869_v61 = vadd.f32 %v3834_v28, %v3187_v21  ;;  %v3188_v30 = vadd.f32 %v8512_v5, %v2906_v55 }
 0x42e   : > { %6605 = vst [vmem:[%s8065_s12 + $0x60] sm:$0xff] %v6577_v49   ;;  %v5480_v17 = vadd.f32 %v5439_v26, %v4798_v24 }
 0x430   : > { %v5516_v7 = vadd.f32 %v8045_v6, %v5480_v17 }
 0x431   : > { %v4477_v36 = vpop.f32.mrf.mxu3 }
 0x432   : > { %v4517_v23 = vadd.f32 %v4477_v36, %v3866_v25  ;;  %v5548_v8 = vmax.f32 %v5516_v7, 0.0 }
 0x434   : > { %v4799_v40 = vadd.f32 %v4759_v27, %v4517_v23  ;;  %v4767_v0 = vpop.f32.mrf.mxu0  ;;  %v3836_v9 = vpop.f32.mrf.mxu2 }
 0x435   : > { %v3870_v49 = vadd.f32 %v3836_v9, %v3188_v30 }
 0x436   : > { %v5481_v4 = vadd.f32 %v5441_v54, %v4799_v40 }
 0x438   : > { %v5517_v48 = vadd.f32 %v8045_v6, %v5481_v4  ;;  %v5449_v31 = vpop.f32.mrf.mxu1 }
 0x439   : > { %v4480_v19 = vpop.f32.mrf.mxu3 }
 0x43a   : > { %v5549_v41 = vmax.f32 %v5517_v48, 0.0  ;;  %v4518_v32 = vadd.f32 %v4480_v19, %v3867_v2 }
 0x43c   : > { %v6582_v45 = vpack.c.bf16 %v5549_v41, %v5548_v8  ;;  %v4800_v53 = vadd.f32 %v4762_v20, %v4518_v32  ;;  %v4769_v50 = vpop.f32.mrf.mxu0 }
 0x43e   : > { %6606 = vst [vmem:[%s8065_s12 + $0x68] sm:$0xff] %v6582_v45   ;;  %v5482_v58 = vadd.f32 %v5444_v16, %v4800_v53 }
 0x440   : > { %v5518_v10 = vadd.f32 %v8045_v6, %v5482_v58  ;;  %v5451_v24 = vpop.f32.mrf.mxu1 }
 0x441   : > { %v4482_v14 = vpop.f32.mrf.mxu3 }
 0x442   : > { %v4519_v1 = vadd.f32 %v4482_v14, %v3868_v12  ;;  %v5550_v13 = vmax.f32 %v5518_v10, 0.0 }
 0x444   : > { %v4801_v35 = vadd.f32 %v4764_v60, %v4519_v1 }
 0x446   : > { %v5483_v63 = vadd.f32 %v5446_v29, %v4801_v35 }
 0x448   : > { %v5519_v26 = vadd.f32 %v8045_v6, %v5483_v63 }
 0x449   : > { %v4485_v3 = vpop.f32.mrf.mxu3 }
 0x44a   : > { %v5551_v51 = vmax.f32 %v5519_v26, 0.0  ;;  %v4520_v34 = vadd.f32 %v4485_v3, %v3869_v61 }
 0x44c   : > { %v6587_v39 = vpack.c.bf16 %v5551_v51, %v5550_v13  ;;  %v4802_v38 = vadd.f32 %v4767_v0, %v4520_v34 }
 0x44e   : > { %6607 = vst [vmem:[%s8065_s12 + $0x70] sm:$0xff] %v6587_v39   ;;  %v5484_v46 = vadd.f32 %v5449_v31, %v4802_v38 }
 0x450   : > { %v5520_v54 = vadd.f32 %v8045_v6, %v5484_v46 }
 0x451   : > { %v4487_v27 = vpop.f32.mrf.mxu3 }
 0x452   : > { %v4521_v62 = vadd.f32 %v4487_v27, %v3870_v49  ;;  %v5552_v57 = vmax.f32 %v5520_v54, 0.0 }
 0x454   : > { %v4803_v59 = vadd.f32 %v4769_v50, %v4521_v62 }
 0x456   : > { %v5485_v25 = vadd.f32 %v5451_v24, %v4803_v59 }
 0x458   : > { %v5521_v36 = vadd.f32 %v8045_v6, %v5485_v25 }
 0x45a   : > { %v5553_v44 = vmax.f32 %v5521_v36, 0.0 }
 0x45c   : > { %v6592_v17 = vpack.c.bf16 %v5553_v44, %v5552_v57 }
 0x45e   : > { %6608 = vst [vmem:[%s8065_s12 + $0x78] sm:$0xff] %v6592_v17  }
 0x45f   : > { %6816 = shalt.err (!%p6813_p10)
}
 0x460   : > { %s6866_s8 = smov 64   ;;  %s6867_s9 = smov 4  }
 0x461   : > { %6635 = dma.vmem_to_hbm [thread:$0]  (%p6970_p3), %s5632_s6, 2048, %s5634_s7, %s5619_s22, %s6866_s8, %s6866_s8, %s6867_s9  }
 0x462 PF: > { %s5648_s12 = sand.u32 1, %s6847_s18   ;;  %p8513_p12 = scmp.ge.s32.totalorder %s6859_s21, 2 }
 0x463   : > { %s5649_s13 = scalar_lea.sflag [#allocation5], %s5648_s12 }
 0x464   : > { %p6649_p13 = pnand %p8513_p12, %p6933_p6 }
 0x466   : > { %p6650_p0 = pneg %p6649_p13 }
 0x468   : > { %6842 = dma.done.wait (%p6650_p0), %s5649_s13, 2048  }
 0x469   : > { %6844 = vsyncadd (%p6650_p0), %s5649_s13, 4294965248  ;;  %p19_p5 = scmp.ge.s32.totalorder %s6960_s14, 4   ;;  %s8514_s18 = smov %s6851_s19 }
 0x46a   : > { %s8515_s19 = smov %s6855_s20  ;;  %s8516_s20 = smov %s6976_s23 }
 0x46b   : > { %s8517_s21 = smov %s6960_s14  ;;  %21 = sbr.rel (!%p19_p5) target bundleno = 6 (0x6), region = 104 }
 0x470   :  { %5655 = vsyncpa [#allocation4], 1 }
 0x471   :  { %5657 = vsyncpa [#allocation4 + $0x1], 1 }
 0x472   :  { %5658 = vsyncpa [#allocation7], 1 }
 0x473   :  { %5659 = vsyncpa [#allocation5], 1 }
 0x474   :  { %5661 = vsyncpa [#allocation5 + $0x1], 1 }

</bundles_post_ra>
